<compile_context>
chip_gen: v5e
topology: v5e:2x2
jax: 0.10.0
libtpu: 0.0.40
codegen_flags: <defaults>
</compile_context>

<pallas_src>
import functools

import jax
import jax.numpy as jnp
from jax import lax
from jax.experimental import pallas as pl
from jax.experimental.pallas import tpu as pltpu


def gru_stack_kernel(x_ref, w_ref, b_ref, out_ref, *, T, B, H, IN):
    """x_ref: (T, B, IN) bf16 time-major input.
    w_ref: (IN + 5H, 3H) bf16 packed weights [wih1; whh1; wih2; whh2; wih3; whh3].
    b_ref: (8, 128) f32 packed biases / fc params (see _pack_params)."""
    f32 = jnp.float32
    bf16 = jnp.bfloat16

    # ---- static row offsets of each weight matrix inside the packed slab ----
    sizes = [IN, H, H, H, H, H]                    # wih1 whh1 wih2 whh2 wih3 whh3
    offs, row = [], 0
    for s in sizes:
        offs.append((row, row + s))
        row += s
    wih = [w_ref[offs[k][0]:offs[k][1], :] for k in (0, 2, 4)]   # (in_l, 3H) bf16
    whh = [w_ref[offs[k][0]:offs[k][1], :] for k in (1, 3, 5)]   # (H,    3H) bf16

    # ---- biases (hoisted broadcasts, done once per layer) ----
    # rows 0..2: bx_l = [bih_r+bhh_r | bih_z+bhh_z | bih_n]   (1, 3H)
    # rows 3..5: bn_l = bhh_n                                  (1, H)
    # row 6: fc weight (1, H);  row 7 col 0: fc bias
    bx = [jnp.broadcast_to(b_ref[l:l + 1, :3 * H], (B, 3 * H)) for l in range(3)]
    bn = [jnp.broadcast_to(b_ref[3 + l:4 + l, :H], (B, H)) for l in range(3)]
    fcw = jnp.broadcast_to(b_ref[6:7, :H], (B, H))
    fcb = b_ref[7:8, 0:1]

    h0 = jnp.zeros((B, H), f32)
    h0_bf = h0.astype(bf16)

    # Layer-0 inputs are the timestep slices of x (whole-tile reads, already bf16).
    inp_bf = [x_ref[t] for t in range(T)]

    h_last = None
    for l in range(3):                       # layers, fully unrolled
        wih_l, whh_l = wih[l], whh[l]
        bx_l, bn_l = bx[l], bn[l]
        h, h_bf = h0, h0_bf
        outs_bf = []
        for t in range(T):                   # time, fully unrolled
            # Input projection: depends only on the previous wave -> off the
            # serial chain; bias folded here so it costs nothing on the chain.
            gi = jnp.dot(inp_bf[t], wih_l, preferred_element_type=f32) + bx_l
            # Recurrent projection: the only op on the serial dependency chain.
            gh = jnp.dot(h_bf, whh_l, preferred_element_type=f32)
            rz = jax.nn.sigmoid(gi[:, :2 * H] + gh[:, :2 * H])     # fused r,z
            r = rz[:, :H]
            z = rz[:, H:]
            n = jnp.tanh(gi[:, 2 * H:] + r * (gh[:, 2 * H:] + bn_l))
            h = n + z * (h - n)              # == (1-z)*n + z*h
            h_bf = h.astype(bf16)
            outs_bf.append(h_bf)
        inp_bf = outs_bf                     # wavefront hand-off to next layer
        h_last = h

    # ---- fc on the last timestep: VPU multiply + lane reduce ----
    out_ref[...] = jnp.sum(h_last * fcw, axis=-1, keepdims=True) + fcb


def _pack_params(p, H):
    """Pack all weights into one bf16 slab and all biases/fc into one (8,128) f32 tile."""
    w_slab = jnp.concatenate(
        [p["wih1"], p["whh1"], p["wih2"], p["whh2"], p["wih3"], p["whh3"]],
        axis=0).astype(jnp.bfloat16)                      # (IN + 5H, 3H)

    b_slab = jnp.zeros((8, 128), jnp.float32)
    for l in (1, 2, 3):
        bih = p[f"bih{l}"][0]                              # (3H,)
        bhh = p[f"bhh{l}"][0]                              # (3H,)
        bx = bih.at[:2 * H].add(bhh[:2 * H])               # fold bhh_{r,z}; keep bhh_n apart
        b_slab = b_slab.at[l - 1, :3 * H].set(bx)
        b_slab = b_slab.at[2 + l, :H].set(bhh[2 * H:])     # rows 3..5 = bhh_n
    b_slab = b_slab.at[6, :H].set(p["fcw"][:, 0])
    b_slab = b_slab.at[7, 0].set(p["fcb"][0, 0])
    return w_slab, b_slab


def gru_model_forward(x, params):
    """x: (B, T, input_size) float32 -> (B, 1) float32."""
    B, T, IN = x.shape
    H = params["whh1"].shape[0]
    w_slab, b_slab = _pack_params(params, H)
    x_tm = jnp.transpose(x, (1, 0, 2)).astype(jnp.bfloat16)   # (T, B, IN) time-major

    vmem = pl.BlockSpec(memory_space=pltpu.MemorySpace.VMEM)
    kernel = functools.partial(gru_stack_kernel, T=T, B=B, H=H, IN=IN)
    return pl.pallas_call(
        kernel,
        out_shape=jax.ShapeDtypeStruct((B, 1), jnp.float32),
        in_specs=[vmem, vmem, vmem],
        out_specs=vmem,
    )(x_tm, w_slab, b_slab)


def init_params(key, input_size, hidden_size):
    """Deterministic params. Gate-fused layout: columns [r | z | n]."""
    H = hidden_size
    bound = 1.0 / float(hidden_size ** 0.5)
    kit = iter(jax.random.split(key, 14))

    def u(shape):
        return jax.random.uniform(next(kit), shape, jnp.float32, -bound, bound)

    params = {}
    in_sizes = {1: input_size, 2: H, 3: H}
    for layer in (1, 2, 3):
        i = in_sizes[layer]
        params[f"wih{layer}"] = u((i, 3 * H))   # W_ih^T, gate-fused columns
        params[f"whh{layer}"] = u((H, 3 * H))   # W_hh^T, gate-fused columns
        params[f"bih{layer}"] = u((1, 3 * H))
        params[f"bhh{layer}"] = u((1, 3 * H))
    params["fcw"] = u((H, 1))
    params["fcb"] = u((1, 1))
    return params


# ---- pure-JAX reference (PyTorch nn.GRU semantics) for the sanity check ----
def _gru_layer_ref(x, wih, whh, bih, bhh):
    B, T, _ = x.shape
    H = whh.shape[0]

    def cell(h, x_t):
        gi = x_t @ wih + bih
        gh = h @ whh + bhh
        r = jax.nn.sigmoid(gi[:, :H] + gh[:, :H])
        z = jax.nn.sigmoid(gi[:, H:2 * H] + gh[:, H:2 * H])
        n = jnp.tanh(gi[:, 2 * H:] + r * gh[:, 2 * H:])
        h_new = (1.0 - z) * n + z * h
        return h_new, h_new

    _, ys = lax.scan(cell, jnp.zeros((B, H), jnp.float32),
                     jnp.transpose(x, (1, 0, 2)))
    return jnp.transpose(ys, (1, 0, 2))


def _ref_forward(x, p):
    out = _gru_layer_ref(x, p["wih1"], p["whh1"], p["bih1"], p["bhh1"])
    out = _gru_layer_ref(out, p["wih2"], p["whh2"], p["bih2"], p["bhh2"])
    out = _gru_layer_ref(out, p["wih3"], p["whh3"], p["bih3"], p["bhh3"])
    return out[:, -1, :] @ p["fcw"] + p["fcb"]


if __name__ == "__main__":
    B, T, INPUT, HIDDEN = 2, 8, 16, 32
    key = jax.random.PRNGKey(0)
    kx, kp = jax.random.split(key)
    x = jax.random.normal(kx, (B, T, INPUT), jnp.float32)
    params = init_params(kp, INPUT, HIDDEN)

    y = gru_model_forward(x, params)
    y = jax.block_until_ready(y)
    assert y.shape == (B, 1), y.shape

    y_ref = jax.block_until_ready(_ref_forward(x, params))
    assert jnp.allclose(y, y_ref, atol=5e-2, rtol=5e-2), (y, y_ref)

    print("KERNEL_OK")
</pallas_src>

<mosaic_0001>
module attributes {stable_mosaic.version = 11 : i64} {
  func.func @gru_stack_kernel(%arg0: memref<8x2x16xbf16, #tpu.memory_space<vmem>>, %arg1: memref<176x96xbf16, #tpu.memory_space<vmem>>, %arg2: memref<8x128xf32, #tpu.memory_space<vmem>>, %arg3: memref<2x1xf32, #tpu.memory_space<vmem>>) attributes {dimension_semantics = [], scalar_prefetch = 0 : i64, scratch_operands = 0 : i64, tpu.core_type = #tpu.core_type<tc>} {
    %c0 = arith.constant 0 : index
    %c0_0 = arith.constant 0 : index
    %0 = vector.load %arg1[%c0, %c0_0] : memref<176x96xbf16, #tpu.memory_space<vmem>>, vector<16x96xbf16>
    %c48 = arith.constant 48 : index
    %c0_1 = arith.constant 0 : index
    %1 = vector.load %arg1[%c48, %c0_1] : memref<176x96xbf16, #tpu.memory_space<vmem>>, vector<32x96xbf16>
    %c112 = arith.constant 112 : index
    %c0_2 = arith.constant 0 : index
    %2 = vector.load %arg1[%c112, %c0_2] : memref<176x96xbf16, #tpu.memory_space<vmem>>, vector<32x96xbf16>
    %c16 = arith.constant 16 : index
    %c0_3 = arith.constant 0 : index
    %3 = vector.load %arg1[%c16, %c0_3] : memref<176x96xbf16, #tpu.memory_space<vmem>>, vector<32x96xbf16>
    %c80 = arith.constant 80 : index
    %c0_4 = arith.constant 0 : index
    %4 = vector.load %arg1[%c80, %c0_4] : memref<176x96xbf16, #tpu.memory_space<vmem>>, vector<32x96xbf16>
    %c144 = arith.constant 144 : index
    %c0_5 = arith.constant 0 : index
    %5 = vector.load %arg1[%c144, %c0_5] : memref<176x96xbf16, #tpu.memory_space<vmem>>, vector<32x96xbf16>
    %c0_6 = arith.constant 0 : index
    %c0_7 = arith.constant 0 : index
    %6 = vector.load %arg2[%c0_6, %c0_7] : memref<8x128xf32, #tpu.memory_space<vmem>>, vector<1x96xf32>
    %7 = vector.shape_cast %6 : vector<1x96xf32> to vector<1x96xf32>
    %8 = vector.broadcast %7 : vector<1x96xf32> to vector<2x96xf32>
    %c1 = arith.constant 1 : index
    %c0_8 = arith.constant 0 : index
    %9 = vector.load %arg2[%c1, %c0_8] : memref<8x128xf32, #tpu.memory_space<vmem>>, vector<1x96xf32>
    %10 = vector.shape_cast %9 : vector<1x96xf32> to vector<1x96xf32>
    %11 = vector.broadcast %10 : vector<1x96xf32> to vector<2x96xf32>
    %c2 = arith.constant 2 : index
    %c0_9 = arith.constant 0 : index
    %12 = vector.load %arg2[%c2, %c0_9] : memref<8x128xf32, #tpu.memory_space<vmem>>, vector<1x96xf32>
    %13 = vector.shape_cast %12 : vector<1x96xf32> to vector<1x96xf32>
    %14 = vector.broadcast %13 : vector<1x96xf32> to vector<2x96xf32>
    %c3 = arith.constant 3 : index
    %c0_10 = arith.constant 0 : index
    %15 = vector.load %arg2[%c3, %c0_10] : memref<8x128xf32, #tpu.memory_space<vmem>>, vector<1x32xf32>
    %16 = vector.shape_cast %15 : vector<1x32xf32> to vector<1x32xf32>
    %17 = vector.broadcast %16 : vector<1x32xf32> to vector<2x32xf32>
    %c4 = arith.constant 4 : index
    %c0_11 = arith.constant 0 : index
    %18 = vector.load %arg2[%c4, %c0_11] : memref<8x128xf32, #tpu.memory_space<vmem>>, vector<1x32xf32>
    %19 = vector.shape_cast %18 : vector<1x32xf32> to vector<1x32xf32>
    %20 = vector.broadcast %19 : vector<1x32xf32> to vector<2x32xf32>
    %c5 = arith.constant 5 : index
    %c0_12 = arith.constant 0 : index
    %21 = vector.load %arg2[%c5, %c0_12] : memref<8x128xf32, #tpu.memory_space<vmem>>, vector<1x32xf32>
    %22 = vector.shape_cast %21 : vector<1x32xf32> to vector<1x32xf32>
    %23 = vector.broadcast %22 : vector<1x32xf32> to vector<2x32xf32>
    %c6 = arith.constant 6 : index
    %c0_13 = arith.constant 0 : index
    %24 = vector.load %arg2[%c6, %c0_13] : memref<8x128xf32, #tpu.memory_space<vmem>>, vector<1x32xf32>
    %25 = vector.shape_cast %24 : vector<1x32xf32> to vector<1x32xf32>
    %26 = vector.broadcast %25 : vector<1x32xf32> to vector<2x32xf32>
    %c7 = arith.constant 7 : index
    %c0_14 = arith.constant 0 : index
    %27 = vector.load %arg2[%c7, %c0_14] : memref<8x128xf32, #tpu.memory_space<vmem>>, vector<1x1xf32>
    %cst = arith.constant 0.000000e+00 : f32
    %28 = vector.broadcast %cst : f32 to vector<2x32xf32>
    %29 = arith.truncf %28 : vector<2x32xf32> to vector<2x32xbf16>
    %c0_15 = arith.constant 0 : index
    %c0_16 = arith.constant 0 : index
    %c0_17 = arith.constant 0 : index
    %30 = vector.load %arg0[%c0_15, %c0_16, %c0_17] : memref<8x2x16xbf16, #tpu.memory_space<vmem>>, vector<1x2x16xbf16>
    %31 = vector.shape_cast %30 : vector<1x2x16xbf16> to vector<2x16xbf16>
    %c1_18 = arith.constant 1 : index
    %c0_19 = arith.constant 0 : index
    %c0_20 = arith.constant 0 : index
    %32 = vector.load %arg0[%c1_18, %c0_19, %c0_20] : memref<8x2x16xbf16, #tpu.memory_space<vmem>>, vector<1x2x16xbf16>
    %33 = vector.shape_cast %32 : vector<1x2x16xbf16> to vector<2x16xbf16>
    %c2_21 = arith.constant 2 : index
    %c0_22 = arith.constant 0 : index
    %c0_23 = arith.constant 0 : index
    %34 = vector.load %arg0[%c2_21, %c0_22, %c0_23] : memref<8x2x16xbf16, #tpu.memory_space<vmem>>, vector<1x2x16xbf16>
    %35 = vector.shape_cast %34 : vector<1x2x16xbf16> to vector<2x16xbf16>
    %c3_24 = arith.constant 3 : index
    %c0_25 = arith.constant 0 : index
    %c0_26 = arith.constant 0 : index
    %36 = vector.load %arg0[%c3_24, %c0_25, %c0_26] : memref<8x2x16xbf16, #tpu.memory_space<vmem>>, vector<1x2x16xbf16>
    %37 = vector.shape_cast %36 : vector<1x2x16xbf16> to vector<2x16xbf16>
    %c4_27 = arith.constant 4 : index
    %c0_28 = arith.constant 0 : index
    %c0_29 = arith.constant 0 : index
    %38 = vector.load %arg0[%c4_27, %c0_28, %c0_29] : memref<8x2x16xbf16, #tpu.memory_space<vmem>>, vector<1x2x16xbf16>
    %39 = vector.shape_cast %38 : vector<1x2x16xbf16> to vector<2x16xbf16>
    %c5_30 = arith.constant 5 : index
    %c0_31 = arith.constant 0 : index
    %c0_32 = arith.constant 0 : index
    %40 = vector.load %arg0[%c5_30, %c0_31, %c0_32] : memref<8x2x16xbf16, #tpu.memory_space<vmem>>, vector<1x2x16xbf16>
    %41 = vector.shape_cast %40 : vector<1x2x16xbf16> to vector<2x16xbf16>
    %c6_33 = arith.constant 6 : index
    %c0_34 = arith.constant 0 : index
    %c0_35 = arith.constant 0 : index
    %42 = vector.load %arg0[%c6_33, %c0_34, %c0_35] : memref<8x2x16xbf16, #tpu.memory_space<vmem>>, vector<1x2x16xbf16>
    %43 = vector.shape_cast %42 : vector<1x2x16xbf16> to vector<2x16xbf16>
    %c7_36 = arith.constant 7 : index
    %c0_37 = arith.constant 0 : index
    %c0_38 = arith.constant 0 : index
    %44 = vector.load %arg0[%c7_36, %c0_37, %c0_38] : memref<8x2x16xbf16, #tpu.memory_space<vmem>>, vector<1x2x16xbf16>
    %45 = vector.shape_cast %44 : vector<1x2x16xbf16> to vector<2x16xbf16>
    %cst_39 = arith.constant dense<0.000000e+00> : vector<2x96xf32>
    %46 = tpu.matmul %31, %0, %cst_39 {dimension_numbers = #tpu.dot_dimension_numbers<[1], [0], [0], [1], [0, 0, 1, 1], [], []>} : vector<2x16xbf16>, vector<16x96xbf16>, vector<2x96xf32> -> vector<2x96xf32>
    %47 = arith.addf %46, %8 : vector<2x96xf32>
    %cst_40 = arith.constant dense<0.000000e+00> : vector<2x96xf32>
    %48 = tpu.matmul %29, %3, %cst_40 {dimension_numbers = #tpu.dot_dimension_numbers<[1], [0], [0], [1], [0, 0, 1, 1], [], []>} : vector<2x32xbf16>, vector<32x96xbf16>, vector<2x96xf32> -> vector<2x96xf32>
    %49 = vector.extract_strided_slice %47 {offsets = [0, 0], sizes = [2, 64], strides = [1, 1]} : vector<2x96xf32> to vector<2x64xf32>
    %50 = vector.extract_strided_slice %48 {offsets = [0, 0], sizes = [2, 64], strides = [1, 1]} : vector<2x96xf32> to vector<2x64xf32>
    %51 = arith.addf %49, %50 : vector<2x64xf32>
    %52 = arith.negf %51 : vector<2x64xf32>
    %53 = math.exp %52 : vector<2x64xf32>
    %cst_41 = arith.constant 1.000000e+00 : f32
    %54 = vector.broadcast %cst_41 : f32 to vector<2x64xf32>
    %55 = arith.addf %54, %53 : vector<2x64xf32>
    %56 = arith.divf %54, %55 : vector<2x64xf32>
    %57 = vector.extract_strided_slice %56 {offsets = [0, 0], sizes = [2, 32], strides = [1, 1]} : vector<2x64xf32> to vector<2x32xf32>
    %58 = vector.extract_strided_slice %56 {offsets = [0, 32], sizes = [2, 32], strides = [1, 1]} : vector<2x64xf32> to vector<2x32xf32>
    %59 = vector.extract_strided_slice %47 {offsets = [0, 64], sizes = [2, 32], strides = [1, 1]} : vector<2x96xf32> to vector<2x32xf32>
    %60 = vector.extract_strided_slice %48 {offsets = [0, 64], sizes = [2, 32], strides = [1, 1]} : vector<2x96xf32> to vector<2x32xf32>
    %61 = arith.addf %60, %17 : vector<2x32xf32>
    %62 = arith.mulf %57, %61 : vector<2x32xf32>
    %63 = arith.addf %59, %62 : vector<2x32xf32>
    %64 = math.tanh %63 : vector<2x32xf32>
    %65 = arith.subf %28, %64 : vector<2x32xf32>
    %66 = arith.mulf %58, %65 : vector<2x32xf32>
    %67 = arith.addf %64, %66 : vector<2x32xf32>
    %68 = arith.truncf %67 : vector<2x32xf32> to vector<2x32xbf16>
    %cst_42 = arith.constant dense<0.000000e+00> : vector<2x96xf32>
    %69 = tpu.matmul %33, %0, %cst_42 {dimension_numbers = #tpu.dot_dimension_numbers<[1], [0], [0], [1], [0, 0, 1, 1], [], []>} : vector<2x16xbf16>, vector<16x96xbf16>, vector<2x96xf32> -> vector<2x96xf32>
    %70 = arith.addf %69, %8 : vector<2x96xf32>
    %cst_43 = arith.constant dense<0.000000e+00> : vector<2x96xf32>
    %71 = tpu.matmul %68, %3, %cst_43 {dimension_numbers = #tpu.dot_dimension_numbers<[1], [0], [0], [1], [0, 0, 1, 1], [], []>} : vector<2x32xbf16>, vector<32x96xbf16>, vector<2x96xf32> -> vector<2x96xf32>
    %72 = vector.extract_strided_slice %70 {offsets = [0, 0], sizes = [2, 64], strides = [1, 1]} : vector<2x96xf32> to vector<2x64xf32>
    %73 = vector.extract_strided_slice %71 {offsets = [0, 0], sizes = [2, 64], strides = [1, 1]} : vector<2x96xf32> to vector<2x64xf32>
    %74 = arith.addf %72, %73 : vector<2x64xf32>
    %75 = arith.negf %74 : vector<2x64xf32>
    %76 = math.exp %75 : vector<2x64xf32>
    %cst_44 = arith.constant 1.000000e+00 : f32
    %77 = vector.broadcast %cst_44 : f32 to vector<2x64xf32>
    %78 = arith.addf %77, %76 : vector<2x64xf32>
    %79 = arith.divf %77, %78 : vector<2x64xf32>
    %80 = vector.extract_strided_slice %79 {offsets = [0, 0], sizes = [2, 32], strides = [1, 1]} : vector<2x64xf32> to vector<2x32xf32>
    %81 = vector.extract_strided_slice %79 {offsets = [0, 32], sizes = [2, 32], strides = [1, 1]} : vector<2x64xf32> to vector<2x32xf32>
    %82 = vector.extract_strided_slice %70 {offsets = [0, 64], sizes = [2, 32], strides = [1, 1]} : vector<2x96xf32> to vector<2x32xf32>
    %83 = vector.extract_strided_slice %71 {offsets = [0, 64], sizes = [2, 32], strides = [1, 1]} : vector<2x96xf32> to vector<2x32xf32>
    %84 = arith.addf %83, %17 : vector<2x32xf32>
    %85 = arith.mulf %80, %84 : vector<2x32xf32>
    %86 = arith.addf %82, %85 : vector<2x32xf32>
    %87 = math.tanh %86 : vector<2x32xf32>
    %88 = arith.subf %67, %87 : vector<2x32xf32>
    %89 = arith.mulf %81, %88 : vector<2x32xf32>
    %90 = arith.addf %87, %89 : vector<2x32xf32>
    %91 = arith.truncf %90 : vector<2x32xf32> to vector<2x32xbf16>
    %cst_45 = arith.constant dense<0.000000e+00> : vector<2x96xf32>
    %92 = tpu.matmul %35, %0, %cst_45 {dimension_numbers = #tpu.dot_dimension_numbers<[1], [0], [0], [1], [0, 0, 1, 1], [], []>} : vector<2x16xbf16>, vector<16x96xbf16>, vector<2x96xf32> -> vector<2x96xf32>
    %93 = arith.addf %92, %8 : vector<2x96xf32>
    %cst_46 = arith.constant dense<0.000000e+00> : vector<2x96xf32>
    %94 = tpu.matmul %91, %3, %cst_46 {dimension_numbers = #tpu.dot_dimension_numbers<[1], [0], [0], [1], [0, 0, 1, 1], [], []>} : vector<2x32xbf16>, vector<32x96xbf16>, vector<2x96xf32> -> vector<2x96xf32>
    %95 = vector.extract_strided_slice %93 {offsets = [0, 0], sizes = [2, 64], strides = [1, 1]} : vector<2x96xf32> to vector<2x64xf32>
    %96 = vector.extract_strided_slice %94 {offsets = [0, 0], sizes = [2, 64], strides = [1, 1]} : vector<2x96xf32> to vector<2x64xf32>
    %97 = arith.addf %95, %96 : vector<2x64xf32>
    %98 = arith.negf %97 : vector<2x64xf32>
    %99 = math.exp %98 : vector<2x64xf32>
    %cst_47 = arith.constant 1.000000e+00 : f32
    %100 = vector.broadcast %cst_47 : f32 to vector<2x64xf32>
    %101 = arith.addf %100, %99 : vector<2x64xf32>
    %102 = arith.divf %100, %101 : vector<2x64xf32>
    %103 = vector.extract_strided_slice %102 {offsets = [0, 0], sizes = [2, 32], strides = [1, 1]} : vector<2x64xf32> to vector<2x32xf32>
    %104 = vector.extract_strided_slice %102 {offsets = [0, 32], sizes = [2, 32], strides = [1, 1]} : vector<2x64xf32> to vector<2x32xf32>
    %105 = vector.extract_strided_slice %93 {offsets = [0, 64], sizes = [2, 32], strides = [1, 1]} : vector<2x96xf32> to vector<2x32xf32>
    %106 = vector.extract_strided_slice %94 {offsets = [0, 64], sizes = [2, 32], strides = [1, 1]} : vector<2x96xf32> to vector<2x32xf32>
    %107 = arith.addf %106, %17 : vector<2x32xf32>
    %108 = arith.mulf %103, %107 : vector<2x32xf32>
    %109 = arith.addf %105, %108 : vector<2x32xf32>
    %110 = math.tanh %109 : vector<2x32xf32>
    %111 = arith.subf %90, %110 : vector<2x32xf32>
    %112 = arith.mulf %104, %111 : vector<2x32xf32>
    %113 = arith.addf %110, %112 : vector<2x32xf32>
    %114 = arith.truncf %113 : vector<2x32xf32> to vector<2x32xbf16>
    %cst_48 = arith.constant dense<0.000000e+00> : vector<2x96xf32>
    %115 = tpu.matmul %37, %0, %cst_48 {dimension_numbers = #tpu.dot_dimension_numbers<[1], [0], [0], [1], [0, 0, 1, 1], [], []>} : vector<2x16xbf16>, vector<16x96xbf16>, vector<2x96xf32> -> vector<2x96xf32>
    %116 = arith.addf %115, %8 : vector<2x96xf32>
    %cst_49 = arith.constant dense<0.000000e+00> : vector<2x96xf32>
    %117 = tpu.matmul %114, %3, %cst_49 {dimension_numbers = #tpu.dot_dimension_numbers<[1], [0], [0], [1], [0, 0, 1, 1], [], []>} : vector<2x32xbf16>, vector<32x96xbf16>, vector<2x96xf32> -> vector<2x96xf32>
    %118 = vector.extract_strided_slice %116 {offsets = [0, 0], sizes = [2, 64], strides = [1, 1]} : vector<2x96xf32> to vector<2x64xf32>
    %119 = vector.extract_strided_slice %117 {offsets = [0, 0], sizes = [2, 64], strides = [1, 1]} : vector<2x96xf32> to vector<2x64xf32>
    %120 = arith.addf %118, %119 : vector<2x64xf32>
    %121 = arith.negf %120 : vector<2x64xf32>
    %122 = math.exp %121 : vector<2x64xf32>
    %cst_50 = arith.constant 1.000000e+00 : f32
    %123 = vector.broadcast %cst_50 : f32 to vector<2x64xf32>
    %124 = arith.addf %123, %122 : vector<2x64xf32>
    %125 = arith.divf %123, %124 : vector<2x64xf32>
    %126 = vector.extract_strided_slice %125 {offsets = [0, 0], sizes = [2, 32], strides = [1, 1]} : vector<2x64xf32> to vector<2x32xf32>
    %127 = vector.extract_strided_slice %125 {offsets = [0, 32], sizes = [2, 32], strides = [1, 1]} : vector<2x64xf32> to vector<2x32xf32>
    %128 = vector.extract_strided_slice %116 {offsets = [0, 64], sizes = [2, 32], strides = [1, 1]} : vector<2x96xf32> to vector<2x32xf32>
    %129 = vector.extract_strided_slice %117 {offsets = [0, 64], sizes = [2, 32], strides = [1, 1]} : vector<2x96xf32> to vector<2x32xf32>
    %130 = arith.addf %129, %17 : vector<2x32xf32>
    %131 = arith.mulf %126, %130 : vector<2x32xf32>
    %132 = arith.addf %128, %131 : vector<2x32xf32>
    %133 = math.tanh %132 : vector<2x32xf32>
    %134 = arith.subf %113, %133 : vector<2x32xf32>
    %135 = arith.mulf %127, %134 : vector<2x32xf32>
    %136 = arith.addf %133, %135 : vector<2x32xf32>
    %137 = arith.truncf %136 : vector<2x32xf32> to vector<2x32xbf16>
    %cst_51 = arith.constant dense<0.000000e+00> : vector<2x96xf32>
    %138 = tpu.matmul %39, %0, %cst_51 {dimension_numbers = #tpu.dot_dimension_numbers<[1], [0], [0], [1], [0, 0, 1, 1], [], []>} : vector<2x16xbf16>, vector<16x96xbf16>, vector<2x96xf32> -> vector<2x96xf32>
    %139 = arith.addf %138, %8 : vector<2x96xf32>
    %cst_52 = arith.constant dense<0.000000e+00> : vector<2x96xf32>
    %140 = tpu.matmul %137, %3, %cst_52 {dimension_numbers = #tpu.dot_dimension_numbers<[1], [0], [0], [1], [0, 0, 1, 1], [], []>} : vector<2x32xbf16>, vector<32x96xbf16>, vector<2x96xf32> -> vector<2x96xf32>
    %141 = vector.extract_strided_slice %139 {offsets = [0, 0], sizes = [2, 64], strides = [1, 1]} : vector<2x96xf32> to vector<2x64xf32>
    %142 = vector.extract_strided_slice %140 {offsets = [0, 0], sizes = [2, 64], strides = [1, 1]} : vector<2x96xf32> to vector<2x64xf32>
    %143 = arith.addf %141, %142 : vector<2x64xf32>
    %144 = arith.negf %143 : vector<2x64xf32>
    %145 = math.exp %144 : vector<2x64xf32>
    %cst_53 = arith.constant 1.000000e+00 : f32
    %146 = vector.broadcast %cst_53 : f32 to vector<2x64xf32>
    %147 = arith.addf %146, %145 : vector<2x64xf32>
    %148 = arith.divf %146, %147 : vector<2x64xf32>
    %149 = vector.extract_strided_slice %148 {offsets = [0, 0], sizes = [2, 32], strides = [1, 1]} : vector<2x64xf32> to vector<2x32xf32>
    %150 = vector.extract_strided_slice %148 {offsets = [0, 32], sizes = [2, 32], strides = [1, 1]} : vector<2x64xf32> to vector<2x32xf32>
    %151 = vector.extract_strided_slice %139 {offsets = [0, 64], sizes = [2, 32], strides = [1, 1]} : vector<2x96xf32> to vector<2x32xf32>
    %152 = vector.extract_strided_slice %140 {offsets = [0, 64], sizes = [2, 32], strides = [1, 1]} : vector<2x96xf32> to vector<2x32xf32>
    %153 = arith.addf %152, %17 : vector<2x32xf32>
    %154 = arith.mulf %149, %153 : vector<2x32xf32>
    %155 = arith.addf %151, %154 : vector<2x32xf32>
    %156 = math.tanh %155 : vector<2x32xf32>
    %157 = arith.subf %136, %156 : vector<2x32xf32>
    %158 = arith.mulf %150, %157 : vector<2x32xf32>
    %159 = arith.addf %156, %158 : vector<2x32xf32>
    %160 = arith.truncf %159 : vector<2x32xf32> to vector<2x32xbf16>
    %cst_54 = arith.constant dense<0.000000e+00> : vector<2x96xf32>
    %161 = tpu.matmul %41, %0, %cst_54 {dimension_numbers = #tpu.dot_dimension_numbers<[1], [0], [0], [1], [0, 0, 1, 1], [], []>} : vector<2x16xbf16>, vector<16x96xbf16>, vector<2x96xf32> -> vector<2x96xf32>
    %162 = arith.addf %161, %8 : vector<2x96xf32>
    %cst_55 = arith.constant dense<0.000000e+00> : vector<2x96xf32>
    %163 = tpu.matmul %160, %3, %cst_55 {dimension_numbers = #tpu.dot_dimension_numbers<[1], [0], [0], [1], [0, 0, 1, 1], [], []>} : vector<2x32xbf16>, vector<32x96xbf16>, vector<2x96xf32> -> vector<2x96xf32>
    %164 = vector.extract_strided_slice %162 {offsets = [0, 0], sizes = [2, 64], strides = [1, 1]} : vector<2x96xf32> to vector<2x64xf32>
    %165 = vector.extract_strided_slice %163 {offsets = [0, 0], sizes = [2, 64], strides = [1, 1]} : vector<2x96xf32> to vector<2x64xf32>
    %166 = arith.addf %164, %165 : vector<2x64xf32>
    %167 = arith.negf %166 : vector<2x64xf32>
    %168 = math.exp %167 : vector<2x64xf32>
    %cst_56 = arith.constant 1.000000e+00 : f32
    %169 = vector.broadcast %cst_56 : f32 to vector<2x64xf32>
    %170 = arith.addf %169, %168 : vector<2x64xf32>
    %171 = arith.divf %169, %170 : vector<2x64xf32>
    %172 = vector.extract_strided_slice %171 {offsets = [0, 0], sizes = [2, 32], strides = [1, 1]} : vector<2x64xf32> to vector<2x32xf32>
    %173 = vector.extract_strided_slice %171 {offsets = [0, 32], sizes = [2, 32], strides = [1, 1]} : vector<2x64xf32> to vector<2x32xf32>
    %174 = vector.extract_strided_slice %162 {offsets = [0, 64], sizes = [2, 32], strides = [1, 1]} : vector<2x96xf32> to vector<2x32xf32>
    %175 = vector.extract_strided_slice %163 {offsets = [0, 64], sizes = [2, 32], strides = [1, 1]} : vector<2x96xf32> to vector<2x32xf32>
    %176 = arith.addf %175, %17 : vector<2x32xf32>
    %177 = arith.mulf %172, %176 : vector<2x32xf32>
    %178 = arith.addf %174, %177 : vector<2x32xf32>
    %179 = math.tanh %178 : vector<2x32xf32>
    %180 = arith.subf %159, %179 : vector<2x32xf32>
    %181 = arith.mulf %173, %180 : vector<2x32xf32>
    %182 = arith.addf %179, %181 : vector<2x32xf32>
    %183 = arith.truncf %182 : vector<2x32xf32> to vector<2x32xbf16>
    %cst_57 = arith.constant dense<0.000000e+00> : vector<2x96xf32>
    %184 = tpu.matmul %43, %0, %cst_57 {dimension_numbers = #tpu.dot_dimension_numbers<[1], [0], [0], [1], [0, 0, 1, 1], [], []>} : vector<2x16xbf16>, vector<16x96xbf16>, vector<2x96xf32> -> vector<2x96xf32>
    %185 = arith.addf %184, %8 : vector<2x96xf32>
    %cst_58 = arith.constant dense<0.000000e+00> : vector<2x96xf32>
    %186 = tpu.matmul %183, %3, %cst_58 {dimension_numbers = #tpu.dot_dimension_numbers<[1], [0], [0], [1], [0, 0, 1, 1], [], []>} : vector<2x32xbf16>, vector<32x96xbf16>, vector<2x96xf32> -> vector<2x96xf32>
    %187 = vector.extract_strided_slice %185 {offsets = [0, 0], sizes = [2, 64], strides = [1, 1]} : vector<2x96xf32> to vector<2x64xf32>
    %188 = vector.extract_strided_slice %186 {offsets = [0, 0], sizes = [2, 64], strides = [1, 1]} : vector<2x96xf32> to vector<2x64xf32>
    %189 = arith.addf %187, %188 : vector<2x64xf32>
    %190 = arith.negf %189 : vector<2x64xf32>
    %191 = math.exp %190 : vector<2x64xf32>
    %cst_59 = arith.constant 1.000000e+00 : f32
    %192 = vector.broadcast %cst_59 : f32 to vector<2x64xf32>
    %193 = arith.addf %192, %191 : vector<2x64xf32>
    %194 = arith.divf %192, %193 : vector<2x64xf32>
    %195 = vector.extract_strided_slice %194 {offsets = [0, 0], sizes = [2, 32], strides = [1, 1]} : vector<2x64xf32> to vector<2x32xf32>
    %196 = vector.extract_strided_slice %194 {offsets = [0, 32], sizes = [2, 32], strides = [1, 1]} : vector<2x64xf32> to vector<2x32xf32>
    %197 = vector.extract_strided_slice %185 {offsets = [0, 64], sizes = [2, 32], strides = [1, 1]} : vector<2x96xf32> to vector<2x32xf32>
    %198 = vector.extract_strided_slice %186 {offsets = [0, 64], sizes = [2, 32], strides = [1, 1]} : vector<2x96xf32> to vector<2x32xf32>
    %199 = arith.addf %198, %17 : vector<2x32xf32>
    %200 = arith.mulf %195, %199 : vector<2x32xf32>
    %201 = arith.addf %197, %200 : vector<2x32xf32>
    %202 = math.tanh %201 : vector<2x32xf32>
    %203 = arith.subf %182, %202 : vector<2x32xf32>
    %204 = arith.mulf %196, %203 : vector<2x32xf32>
    %205 = arith.addf %202, %204 : vector<2x32xf32>
    %206 = arith.truncf %205 : vector<2x32xf32> to vector<2x32xbf16>
    %cst_60 = arith.constant dense<0.000000e+00> : vector<2x96xf32>
    %207 = tpu.matmul %45, %0, %cst_60 {dimension_numbers = #tpu.dot_dimension_numbers<[1], [0], [0], [1], [0, 0, 1, 1], [], []>} : vector<2x16xbf16>, vector<16x96xbf16>, vector<2x96xf32> -> vector<2x96xf32>
    %208 = arith.addf %207, %8 : vector<2x96xf32>
    %cst_61 = arith.constant dense<0.000000e+00> : vector<2x96xf32>
    %209 = tpu.matmul %206, %3, %cst_61 {dimension_numbers = #tpu.dot_dimension_numbers<[1], [0], [0], [1], [0, 0, 1, 1], [], []>} : vector<2x32xbf16>, vector<32x96xbf16>, vector<2x96xf32> -> vector<2x96xf32>
    %210 = vector.extract_strided_slice %208 {offsets = [0, 0], sizes = [2, 64], strides = [1, 1]} : vector<2x96xf32> to vector<2x64xf32>
    %211 = vector.extract_strided_slice %209 {offsets = [0, 0], sizes = [2, 64], strides = [1, 1]} : vector<2x96xf32> to vector<2x64xf32>
    %212 = arith.addf %210, %211 : vector<2x64xf32>
    %213 = arith.negf %212 : vector<2x64xf32>
    %214 = math.exp %213 : vector<2x64xf32>
    %cst_62 = arith.constant 1.000000e+00 : f32
    %215 = vector.broadcast %cst_62 : f32 to vector<2x64xf32>
    %216 = arith.addf %215, %214 : vector<2x64xf32>
    %217 = arith.divf %215, %216 : vector<2x64xf32>
    %218 = vector.extract_strided_slice %217 {offsets = [0, 0], sizes = [2, 32], strides = [1, 1]} : vector<2x64xf32> to vector<2x32xf32>
    %219 = vector.extract_strided_slice %217 {offsets = [0, 32], sizes = [2, 32], strides = [1, 1]} : vector<2x64xf32> to vector<2x32xf32>
    %220 = vector.extract_strided_slice %208 {offsets = [0, 64], sizes = [2, 32], strides = [1, 1]} : vector<2x96xf32> to vector<2x32xf32>
    %221 = vector.extract_strided_slice %209 {offsets = [0, 64], sizes = [2, 32], strides = [1, 1]} : vector<2x96xf32> to vector<2x32xf32>
    %222 = arith.addf %221, %17 : vector<2x32xf32>
    %223 = arith.mulf %218, %222 : vector<2x32xf32>
    %224 = arith.addf %220, %223 : vector<2x32xf32>
    %225 = math.tanh %224 : vector<2x32xf32>
    %226 = arith.subf %205, %225 : vector<2x32xf32>
    %227 = arith.mulf %219, %226 : vector<2x32xf32>
    %228 = arith.addf %225, %227 : vector<2x32xf32>
    %229 = arith.truncf %228 : vector<2x32xf32> to vector<2x32xbf16>
    %cst_63 = arith.constant dense<0.000000e+00> : vector<2x96xf32>
    %230 = tpu.matmul %68, %1, %cst_63 {dimension_numbers = #tpu.dot_dimension_numbers<[1], [0], [0], [1], [0, 0, 1, 1], [], []>} : vector<2x32xbf16>, vector<32x96xbf16>, vector<2x96xf32> -> vector<2x96xf32>
    %231 = arith.addf %230, %11 : vector<2x96xf32>
    %cst_64 = arith.constant dense<0.000000e+00> : vector<2x96xf32>
    %232 = tpu.matmul %29, %4, %cst_64 {dimension_numbers = #tpu.dot_dimension_numbers<[1], [0], [0], [1], [0, 0, 1, 1], [], []>} : vector<2x32xbf16>, vector<32x96xbf16>, vector<2x96xf32> -> vector<2x96xf32>
    %233 = vector.extract_strided_slice %231 {offsets = [0, 0], sizes = [2, 64], strides = [1, 1]} : vector<2x96xf32> to vector<2x64xf32>
    %234 = vector.extract_strided_slice %232 {offsets = [0, 0], sizes = [2, 64], strides = [1, 1]} : vector<2x96xf32> to vector<2x64xf32>
    %235 = arith.addf %233, %234 : vector<2x64xf32>
    %236 = arith.negf %235 : vector<2x64xf32>
    %237 = math.exp %236 : vector<2x64xf32>
    %cst_65 = arith.constant 1.000000e+00 : f32
    %238 = vector.broadcast %cst_65 : f32 to vector<2x64xf32>
    %239 = arith.addf %238, %237 : vector<2x64xf32>
    %240 = arith.divf %238, %239 : vector<2x64xf32>
    %241 = vector.extract_strided_slice %240 {offsets = [0, 0], sizes = [2, 32], strides = [1, 1]} : vector<2x64xf32> to vector<2x32xf32>
    %242 = vector.extract_strided_slice %240 {offsets = [0, 32], sizes = [2, 32], strides = [1, 1]} : vector<2x64xf32> to vector<2x32xf32>
    %243 = vector.extract_strided_slice %231 {offsets = [0, 64], sizes = [2, 32], strides = [1, 1]} : vector<2x96xf32> to vector<2x32xf32>
    %244 = vector.extract_strided_slice %232 {offsets = [0, 64], sizes = [2, 32], strides = [1, 1]} : vector<2x96xf32> to vector<2x32xf32>
    %245 = arith.addf %244, %20 : vector<2x32xf32>
    %246 = arith.mulf %241, %245 : vector<2x32xf32>
    %247 = arith.addf %243, %246 : vector<2x32xf32>
    %248 = math.tanh %247 : vector<2x32xf32>
    %249 = arith.subf %28, %248 : vector<2x32xf32>
    %250 = arith.mulf %242, %249 : vector<2x32xf32>
    %251 = arith.addf %248, %250 : vector<2x32xf32>
    %252 = arith.truncf %251 : vector<2x32xf32> to vector<2x32xbf16>
    %cst_66 = arith.constant dense<0.000000e+00> : vector<2x96xf32>
    %253 = tpu.matmul %91, %1, %cst_66 {dimension_numbers = #tpu.dot_dimension_numbers<[1], [0], [0], [1], [0, 0, 1, 1], [], []>} : vector<2x32xbf16>, vector<32x96xbf16>, vector<2x96xf32> -> vector<2x96xf32>
    %254 = arith.addf %253, %11 : vector<2x96xf32>
    %cst_67 = arith.constant dense<0.000000e+00> : vector<2x96xf32>
    %255 = tpu.matmul %252, %4, %cst_67 {dimension_numbers = #tpu.dot_dimension_numbers<[1], [0], [0], [1], [0, 0, 1, 1], [], []>} : vector<2x32xbf16>, vector<32x96xbf16>, vector<2x96xf32> -> vector<2x96xf32>
    %256 = vector.extract_strided_slice %254 {offsets = [0, 0], sizes = [2, 64], strides = [1, 1]} : vector<2x96xf32> to vector<2x64xf32>
    %257 = vector.extract_strided_slice %255 {offsets = [0, 0], sizes = [2, 64], strides = [1, 1]} : vector<2x96xf32> to vector<2x64xf32>
    %258 = arith.addf %256, %257 : vector<2x64xf32>
    %259 = arith.negf %258 : vector<2x64xf32>
    %260 = math.exp %259 : vector<2x64xf32>
    %cst_68 = arith.constant 1.000000e+00 : f32
    %261 = vector.broadcast %cst_68 : f32 to vector<2x64xf32>
    %262 = arith.addf %261, %260 : vector<2x64xf32>
    %263 = arith.divf %261, %262 : vector<2x64xf32>
    %264 = vector.extract_strided_slice %263 {offsets = [0, 0], sizes = [2, 32], strides = [1, 1]} : vector<2x64xf32> to vector<2x32xf32>
    %265 = vector.extract_strided_slice %263 {offsets = [0, 32], sizes = [2, 32], strides = [1, 1]} : vector<2x64xf32> to vector<2x32xf32>
    %266 = vector.extract_strided_slice %254 {offsets = [0, 64], sizes = [2, 32], strides = [1, 1]} : vector<2x96xf32> to vector<2x32xf32>
    %267 = vector.extract_strided_slice %255 {offsets = [0, 64], sizes = [2, 32], strides = [1, 1]} : vector<2x96xf32> to vector<2x32xf32>
    %268 = arith.addf %267, %20 : vector<2x32xf32>
    %269 = arith.mulf %264, %268 : vector<2x32xf32>
    %270 = arith.addf %266, %269 : vector<2x32xf32>
    %271 = math.tanh %270 : vector<2x32xf32>
    %272 = arith.subf %251, %271 : vector<2x32xf32>
    %273 = arith.mulf %265, %272 : vector<2x32xf32>
    %274 = arith.addf %271, %273 : vector<2x32xf32>
    %275 = arith.truncf %274 : vector<2x32xf32> to vector<2x32xbf16>
    %cst_69 = arith.constant dense<0.000000e+00> : vector<2x96xf32>
    %276 = tpu.matmul %114, %1, %cst_69 {dimension_numbers = #tpu.dot_dimension_numbers<[1], [0], [0], [1], [0, 0, 1, 1], [], []>} : vector<2x32xbf16>, vector<32x96xbf16>, vector<2x96xf32> -> vector<2x96xf32>
    %277 = arith.addf %276, %11 : vector<2x96xf32>
    %cst_70 = arith.constant dense<0.000000e+00> : vector<2x96xf32>
    %278 = tpu.matmul %275, %4, %cst_70 {dimension_numbers = #tpu.dot_dimension_numbers<[1], [0], [0], [1], [0, 0, 1, 1], [], []>} : vector<2x32xbf16>, vector<32x96xbf16>, vector<2x96xf32> -> vector<2x96xf32>
    %279 = vector.extract_strided_slice %277 {offsets = [0, 0], sizes = [2, 64], strides = [1, 1]} : vector<2x96xf32> to vector<2x64xf32>
    %280 = vector.extract_strided_slice %278 {offsets = [0, 0], sizes = [2, 64], strides = [1, 1]} : vector<2x96xf32> to vector<2x64xf32>
    %281 = arith.addf %279, %280 : vector<2x64xf32>
    %282 = arith.negf %281 : vector<2x64xf32>
    %283 = math.exp %282 : vector<2x64xf32>
    %cst_71 = arith.constant 1.000000e+00 : f32
    %284 = vector.broadcast %cst_71 : f32 to vector<2x64xf32>
    %285 = arith.addf %284, %283 : vector<2x64xf32>
    %286 = arith.divf %284, %285 : vector<2x64xf32>
    %287 = vector.extract_strided_slice %286 {offsets = [0, 0], sizes = [2, 32], strides = [1, 1]} : vector<2x64xf32> to vector<2x32xf32>
    %288 = vector.extract_strided_slice %286 {offsets = [0, 32], sizes = [2, 32], strides = [1, 1]} : vector<2x64xf32> to vector<2x32xf32>
    %289 = vector.extract_strided_slice %277 {offsets = [0, 64], sizes = [2, 32], strides = [1, 1]} : vector<2x96xf32> to vector<2x32xf32>
    %290 = vector.extract_strided_slice %278 {offsets = [0, 64], sizes = [2, 32], strides = [1, 1]} : vector<2x96xf32> to vector<2x32xf32>
    %291 = arith.addf %290, %20 : vector<2x32xf32>
    %292 = arith.mulf %287, %291 : vector<2x32xf32>
    %293 = arith.addf %289, %292 : vector<2x32xf32>
    %294 = math.tanh %293 : vector<2x32xf32>
    %295 = arith.subf %274, %294 : vector<2x32xf32>
    %296 = arith.mulf %288, %295 : vector<2x32xf32>
    %297 = arith.addf %294, %296 : vector<2x32xf32>
    %298 = arith.truncf %297 : vector<2x32xf32> to vector<2x32xbf16>
    %cst_72 = arith.constant dense<0.000000e+00> : vector<2x96xf32>
    %299 = tpu.matmul %137, %1, %cst_72 {dimension_numbers = #tpu.dot_dimension_numbers<[1], [0], [0], [1], [0, 0, 1, 1], [], []>} : vector<2x32xbf16>, vector<32x96xbf16>, vector<2x96xf32> -> vector<2x96xf32>
    %300 = arith.addf %299, %11 : vector<2x96xf32>
    %cst_73 = arith.constant dense<0.000000e+00> : vector<2x96xf32>
    %301 = tpu.matmul %298, %4, %cst_73 {dimension_numbers = #tpu.dot_dimension_numbers<[1], [0], [0], [1], [0, 0, 1, 1], [], []>} : vector<2x32xbf16>, vector<32x96xbf16>, vector<2x96xf32> -> vector<2x96xf32>
    %302 = vector.extract_strided_slice %300 {offsets = [0, 0], sizes = [2, 64], strides = [1, 1]} : vector<2x96xf32> to vector<2x64xf32>
    %303 = vector.extract_strided_slice %301 {offsets = [0, 0], sizes = [2, 64], strides = [1, 1]} : vector<2x96xf32> to vector<2x64xf32>
    %304 = arith.addf %302, %303 : vector<2x64xf32>
    %305 = arith.negf %304 : vector<2x64xf32>
    %306 = math.exp %305 : vector<2x64xf32>
    %cst_74 = arith.constant 1.000000e+00 : f32
    %307 = vector.broadcast %cst_74 : f32 to vector<2x64xf32>
    %308 = arith.addf %307, %306 : vector<2x64xf32>
    %309 = arith.divf %307, %308 : vector<2x64xf32>
    %310 = vector.extract_strided_slice %309 {offsets = [0, 0], sizes = [2, 32], strides = [1, 1]} : vector<2x64xf32> to vector<2x32xf32>
    %311 = vector.extract_strided_slice %309 {offsets = [0, 32], sizes = [2, 32], strides = [1, 1]} : vector<2x64xf32> to vector<2x32xf32>
    %312 = vector.extract_strided_slice %300 {offsets = [0, 64], sizes = [2, 32], strides = [1, 1]} : vector<2x96xf32> to vector<2x32xf32>
    %313 = vector.extract_strided_slice %301 {offsets = [0, 64], sizes = [2, 32], strides = [1, 1]} : vector<2x96xf32> to vector<2x32xf32>
    %314 = arith.addf %313, %20 : vector<2x32xf32>
    %315 = arith.mulf %310, %314 : vector<2x32xf32>
    %316 = arith.addf %312, %315 : vector<2x32xf32>
    %317 = math.tanh %316 : vector<2x32xf32>
    %318 = arith.subf %297, %317 : vector<2x32xf32>
    %319 = arith.mulf %311, %318 : vector<2x32xf32>
    %320 = arith.addf %317, %319 : vector<2x32xf32>
    %321 = arith.truncf %320 : vector<2x32xf32> to vector<2x32xbf16>
    %cst_75 = arith.constant dense<0.000000e+00> : vector<2x96xf32>
    %322 = tpu.matmul %160, %1, %cst_75 {dimension_numbers = #tpu.dot_dimension_numbers<[1], [0], [0], [1], [0, 0, 1, 1], [], []>} : vector<2x32xbf16>, vector<32x96xbf16>, vector<2x96xf32> -> vector<2x96xf32>
    %323 = arith.addf %322, %11 : vector<2x96xf32>
    %cst_76 = arith.constant dense<0.000000e+00> : vector<2x96xf32>
    %324 = tpu.matmul %321, %4, %cst_76 {dimension_numbers = #tpu.dot_dimension_numbers<[1], [0], [0], [1], [0, 0, 1, 1], [], []>} : vector<2x32xbf16>, vector<32x96xbf16>, vector<2x96xf32> -> vector<2x96xf32>
    %325 = vector.extract_strided_slice %323 {offsets = [0, 0], sizes = [2, 64], strides = [1, 1]} : vector<2x96xf32> to vector<2x64xf32>
    %326 = vector.extract_strided_slice %324 {offsets = [0, 0], sizes = [2, 64], strides = [1, 1]} : vector<2x96xf32> to vector<2x64xf32>
    %327 = arith.addf %325, %326 : vector<2x64xf32>
    %328 = arith.negf %327 : vector<2x64xf32>
    %329 = math.exp %328 : vector<2x64xf32>
    %cst_77 = arith.constant 1.000000e+00 : f32
    %330 = vector.broadcast %cst_77 : f32 to vector<2x64xf32>
    %331 = arith.addf %330, %329 : vector<2x64xf32>
    %332 = arith.divf %330, %331 : vector<2x64xf32>
    %333 = vector.extract_strided_slice %332 {offsets = [0, 0], sizes = [2, 32], strides = [1, 1]} : vector<2x64xf32> to vector<2x32xf32>
    %334 = vector.extract_strided_slice %332 {offsets = [0, 32], sizes = [2, 32], strides = [1, 1]} : vector<2x64xf32> to vector<2x32xf32>
    %335 = vector.extract_strided_slice %323 {offsets = [0, 64], sizes = [2, 32], strides = [1, 1]} : vector<2x96xf32> to vector<2x32xf32>
    %336 = vector.extract_strided_slice %324 {offsets = [0, 64], sizes = [2, 32], strides = [1, 1]} : vector<2x96xf32> to vector<2x32xf32>
    %337 = arith.addf %336, %20 : vector<2x32xf32>
    %338 = arith.mulf %333, %337 : vector<2x32xf32>
    %339 = arith.addf %335, %338 : vector<2x32xf32>
    %340 = math.tanh %339 : vector<2x32xf32>
    %341 = arith.subf %320, %340 : vector<2x32xf32>
    %342 = arith.mulf %334, %341 : vector<2x32xf32>
    %343 = arith.addf %340, %342 : vector<2x32xf32>
    %344 = arith.truncf %343 : vector<2x32xf32> to vector<2x32xbf16>
    %cst_78 = arith.constant dense<0.000000e+00> : vector<2x96xf32>
    %345 = tpu.matmul %183, %1, %cst_78 {dimension_numbers = #tpu.dot_dimension_numbers<[1], [0], [0], [1], [0, 0, 1, 1], [], []>} : vector<2x32xbf16>, vector<32x96xbf16>, vector<2x96xf32> -> vector<2x96xf32>
    %346 = arith.addf %345, %11 : vector<2x96xf32>
    %cst_79 = arith.constant dense<0.000000e+00> : vector<2x96xf32>
    %347 = tpu.matmul %344, %4, %cst_79 {dimension_numbers = #tpu.dot_dimension_numbers<[1], [0], [0], [1], [0, 0, 1, 1], [], []>} : vector<2x32xbf16>, vector<32x96xbf16>, vector<2x96xf32> -> vector<2x96xf32>
    %348 = vector.extract_strided_slice %346 {offsets = [0, 0], sizes = [2, 64], strides = [1, 1]} : vector<2x96xf32> to vector<2x64xf32>
    %349 = vector.extract_strided_slice %347 {offsets = [0, 0], sizes = [2, 64], strides = [1, 1]} : vector<2x96xf32> to vector<2x64xf32>
    %350 = arith.addf %348, %349 : vector<2x64xf32>
    %351 = arith.negf %350 : vector<2x64xf32>
    %352 = math.exp %351 : vector<2x64xf32>
    %cst_80 = arith.constant 1.000000e+00 : f32
    %353 = vector.broadcast %cst_80 : f32 to vector<2x64xf32>
    %354 = arith.addf %353, %352 : vector<2x64xf32>
    %355 = arith.divf %353, %354 : vector<2x64xf32>
    %356 = vector.extract_strided_slice %355 {offsets = [0, 0], sizes = [2, 32], strides = [1, 1]} : vector<2x64xf32> to vector<2x32xf32>
    %357 = vector.extract_strided_slice %355 {offsets = [0, 32], sizes = [2, 32], strides = [1, 1]} : vector<2x64xf32> to vector<2x32xf32>
    %358 = vector.extract_strided_slice %346 {offsets = [0, 64], sizes = [2, 32], strides = [1, 1]} : vector<2x96xf32> to vector<2x32xf32>
    %359 = vector.extract_strided_slice %347 {offsets = [0, 64], sizes = [2, 32], strides = [1, 1]} : vector<2x96xf32> to vector<2x32xf32>
    %360 = arith.addf %359, %20 : vector<2x32xf32>
    %361 = arith.mulf %356, %360 : vector<2x32xf32>
    %362 = arith.addf %358, %361 : vector<2x32xf32>
    %363 = math.tanh %362 : vector<2x32xf32>
    %364 = arith.subf %343, %363 : vector<2x32xf32>
    %365 = arith.mulf %357, %364 : vector<2x32xf32>
    %366 = arith.addf %363, %365 : vector<2x32xf32>
    %367 = arith.truncf %366 : vector<2x32xf32> to vector<2x32xbf16>
    %cst_81 = arith.constant dense<0.000000e+00> : vector<2x96xf32>
    %368 = tpu.matmul %206, %1, %cst_81 {dimension_numbers = #tpu.dot_dimension_numbers<[1], [0], [0], [1], [0, 0, 1, 1], [], []>} : vector<2x32xbf16>, vector<32x96xbf16>, vector<2x96xf32> -> vector<2x96xf32>
    %369 = arith.addf %368, %11 : vector<2x96xf32>
    %cst_82 = arith.constant dense<0.000000e+00> : vector<2x96xf32>
    %370 = tpu.matmul %367, %4, %cst_82 {dimension_numbers = #tpu.dot_dimension_numbers<[1], [0], [0], [1], [0, 0, 1, 1], [], []>} : vector<2x32xbf16>, vector<32x96xbf16>, vector<2x96xf32> -> vector<2x96xf32>
    %371 = vector.extract_strided_slice %369 {offsets = [0, 0], sizes = [2, 64], strides = [1, 1]} : vector<2x96xf32> to vector<2x64xf32>
    %372 = vector.extract_strided_slice %370 {offsets = [0, 0], sizes = [2, 64], strides = [1, 1]} : vector<2x96xf32> to vector<2x64xf32>
    %373 = arith.addf %371, %372 : vector<2x64xf32>
    %374 = arith.negf %373 : vector<2x64xf32>
    %375 = math.exp %374 : vector<2x64xf32>
    %cst_83 = arith.constant 1.000000e+00 : f32
    %376 = vector.broadcast %cst_83 : f32 to vector<2x64xf32>
    %377 = arith.addf %376, %375 : vector<2x64xf32>
    %378 = arith.divf %376, %377 : vector<2x64xf32>
    %379 = vector.extract_strided_slice %378 {offsets = [0, 0], sizes = [2, 32], strides = [1, 1]} : vector<2x64xf32> to vector<2x32xf32>
    %380 = vector.extract_strided_slice %378 {offsets = [0, 32], sizes = [2, 32], strides = [1, 1]} : vector<2x64xf32> to vector<2x32xf32>
    %381 = vector.extract_strided_slice %369 {offsets = [0, 64], sizes = [2, 32], strides = [1, 1]} : vector<2x96xf32> to vector<2x32xf32>
    %382 = vector.extract_strided_slice %370 {offsets = [0, 64], sizes = [2, 32], strides = [1, 1]} : vector<2x96xf32> to vector<2x32xf32>
    %383 = arith.addf %382, %20 : vector<2x32xf32>
    %384 = arith.mulf %379, %383 : vector<2x32xf32>
    %385 = arith.addf %381, %384 : vector<2x32xf32>
    %386 = math.tanh %385 : vector<2x32xf32>
    %387 = arith.subf %366, %386 : vector<2x32xf32>
    %388 = arith.mulf %380, %387 : vector<2x32xf32>
    %389 = arith.addf %386, %388 : vector<2x32xf32>
    %390 = arith.truncf %389 : vector<2x32xf32> to vector<2x32xbf16>
    %cst_84 = arith.constant dense<0.000000e+00> : vector<2x96xf32>
    %391 = tpu.matmul %229, %1, %cst_84 {dimension_numbers = #tpu.dot_dimension_numbers<[1], [0], [0], [1], [0, 0, 1, 1], [], []>} : vector<2x32xbf16>, vector<32x96xbf16>, vector<2x96xf32> -> vector<2x96xf32>
    %392 = arith.addf %391, %11 : vector<2x96xf32>
    %cst_85 = arith.constant dense<0.000000e+00> : vector<2x96xf32>
    %393 = tpu.matmul %390, %4, %cst_85 {dimension_numbers = #tpu.dot_dimension_numbers<[1], [0], [0], [1], [0, 0, 1, 1], [], []>} : vector<2x32xbf16>, vector<32x96xbf16>, vector<2x96xf32> -> vector<2x96xf32>
    %394 = vector.extract_strided_slice %392 {offsets = [0, 0], sizes = [2, 64], strides = [1, 1]} : vector<2x96xf32> to vector<2x64xf32>
    %395 = vector.extract_strided_slice %393 {offsets = [0, 0], sizes = [2, 64], strides = [1, 1]} : vector<2x96xf32> to vector<2x64xf32>
    %396 = arith.addf %394, %395 : vector<2x64xf32>
    %397 = arith.negf %396 : vector<2x64xf32>
    %398 = math.exp %397 : vector<2x64xf32>
    %cst_86 = arith.constant 1.000000e+00 : f32
    %399 = vector.broadcast %cst_86 : f32 to vector<2x64xf32>
    %400 = arith.addf %399, %398 : vector<2x64xf32>
    %401 = arith.divf %399, %400 : vector<2x64xf32>
    %402 = vector.extract_strided_slice %401 {offsets = [0, 0], sizes = [2, 32], strides = [1, 1]} : vector<2x64xf32> to vector<2x32xf32>
    %403 = vector.extract_strided_slice %401 {offsets = [0, 32], sizes = [2, 32], strides = [1, 1]} : vector<2x64xf32> to vector<2x32xf32>
    %404 = vector.extract_strided_slice %392 {offsets = [0, 64], sizes = [2, 32], strides = [1, 1]} : vector<2x96xf32> to vector<2x32xf32>
    %405 = vector.extract_strided_slice %393 {offsets = [0, 64], sizes = [2, 32], strides = [1, 1]} : vector<2x96xf32> to vector<2x32xf32>
    %406 = arith.addf %405, %20 : vector<2x32xf32>
    %407 = arith.mulf %402, %406 : vector<2x32xf32>
    %408 = arith.addf %404, %407 : vector<2x32xf32>
    %409 = math.tanh %408 : vector<2x32xf32>
    %410 = arith.subf %389, %409 : vector<2x32xf32>
    %411 = arith.mulf %403, %410 : vector<2x32xf32>
    %412 = arith.addf %409, %411 : vector<2x32xf32>
    %413 = arith.truncf %412 : vector<2x32xf32> to vector<2x32xbf16>
    %cst_87 = arith.constant dense<0.000000e+00> : vector<2x96xf32>
    %414 = tpu.matmul %252, %2, %cst_87 {dimension_numbers = #tpu.dot_dimension_numbers<[1], [0], [0], [1], [0, 0, 1, 1], [], []>} : vector<2x32xbf16>, vector<32x96xbf16>, vector<2x96xf32> -> vector<2x96xf32>
    %415 = arith.addf %414, %14 : vector<2x96xf32>
    %cst_88 = arith.constant dense<0.000000e+00> : vector<2x96xf32>
    %416 = tpu.matmul %29, %5, %cst_88 {dimension_numbers = #tpu.dot_dimension_numbers<[1], [0], [0], [1], [0, 0, 1, 1], [], []>} : vector<2x32xbf16>, vector<32x96xbf16>, vector<2x96xf32> -> vector<2x96xf32>
    %417 = vector.extract_strided_slice %415 {offsets = [0, 0], sizes = [2, 64], strides = [1, 1]} : vector<2x96xf32> to vector<2x64xf32>
    %418 = vector.extract_strided_slice %416 {offsets = [0, 0], sizes = [2, 64], strides = [1, 1]} : vector<2x96xf32> to vector<2x64xf32>
    %419 = arith.addf %417, %418 : vector<2x64xf32>
    %420 = arith.negf %419 : vector<2x64xf32>
    %421 = math.exp %420 : vector<2x64xf32>
    %cst_89 = arith.constant 1.000000e+00 : f32
    %422 = vector.broadcast %cst_89 : f32 to vector<2x64xf32>
    %423 = arith.addf %422, %421 : vector<2x64xf32>
    %424 = arith.divf %422, %423 : vector<2x64xf32>
    %425 = vector.extract_strided_slice %424 {offsets = [0, 0], sizes = [2, 32], strides = [1, 1]} : vector<2x64xf32> to vector<2x32xf32>
    %426 = vector.extract_strided_slice %424 {offsets = [0, 32], sizes = [2, 32], strides = [1, 1]} : vector<2x64xf32> to vector<2x32xf32>
    %427 = vector.extract_strided_slice %415 {offsets = [0, 64], sizes = [2, 32], strides = [1, 1]} : vector<2x96xf32> to vector<2x32xf32>
    %428 = vector.extract_strided_slice %416 {offsets = [0, 64], sizes = [2, 32], strides = [1, 1]} : vector<2x96xf32> to vector<2x32xf32>
    %429 = arith.addf %428, %23 : vector<2x32xf32>
    %430 = arith.mulf %425, %429 : vector<2x32xf32>
    %431 = arith.addf %427, %430 : vector<2x32xf32>
    %432 = math.tanh %431 : vector<2x32xf32>
    %433 = arith.subf %28, %432 : vector<2x32xf32>
    %434 = arith.mulf %426, %433 : vector<2x32xf32>
    %435 = arith.addf %432, %434 : vector<2x32xf32>
    %436 = arith.truncf %435 : vector<2x32xf32> to vector<2x32xbf16>
    %cst_90 = arith.constant dense<0.000000e+00> : vector<2x96xf32>
    %437 = tpu.matmul %275, %2, %cst_90 {dimension_numbers = #tpu.dot_dimension_numbers<[1], [0], [0], [1], [0, 0, 1, 1], [], []>} : vector<2x32xbf16>, vector<32x96xbf16>, vector<2x96xf32> -> vector<2x96xf32>
    %438 = arith.addf %437, %14 : vector<2x96xf32>
    %cst_91 = arith.constant dense<0.000000e+00> : vector<2x96xf32>
    %439 = tpu.matmul %436, %5, %cst_91 {dimension_numbers = #tpu.dot_dimension_numbers<[1], [0], [0], [1], [0, 0, 1, 1], [], []>} : vector<2x32xbf16>, vector<32x96xbf16>, vector<2x96xf32> -> vector<2x96xf32>
    %440 = vector.extract_strided_slice %438 {offsets = [0, 0], sizes = [2, 64], strides = [1, 1]} : vector<2x96xf32> to vector<2x64xf32>
    %441 = vector.extract_strided_slice %439 {offsets = [0, 0], sizes = [2, 64], strides = [1, 1]} : vector<2x96xf32> to vector<2x64xf32>
    %442 = arith.addf %440, %441 : vector<2x64xf32>
    %443 = arith.negf %442 : vector<2x64xf32>
    %444 = math.exp %443 : vector<2x64xf32>
    %cst_92 = arith.constant 1.000000e+00 : f32
    %445 = vector.broadcast %cst_92 : f32 to vector<2x64xf32>
    %446 = arith.addf %445, %444 : vector<2x64xf32>
    %447 = arith.divf %445, %446 : vector<2x64xf32>
    %448 = vector.extract_strided_slice %447 {offsets = [0, 0], sizes = [2, 32], strides = [1, 1]} : vector<2x64xf32> to vector<2x32xf32>
    %449 = vector.extract_strided_slice %447 {offsets = [0, 32], sizes = [2, 32], strides = [1, 1]} : vector<2x64xf32> to vector<2x32xf32>
    %450 = vector.extract_strided_slice %438 {offsets = [0, 64], sizes = [2, 32], strides = [1, 1]} : vector<2x96xf32> to vector<2x32xf32>
    %451 = vector.extract_strided_slice %439 {offsets = [0, 64], sizes = [2, 32], strides = [1, 1]} : vector<2x96xf32> to vector<2x32xf32>
    %452 = arith.addf %451, %23 : vector<2x32xf32>
    %453 = arith.mulf %448, %452 : vector<2x32xf32>
    %454 = arith.addf %450, %453 : vector<2x32xf32>
    %455 = math.tanh %454 : vector<2x32xf32>
    %456 = arith.subf %435, %455 : vector<2x32xf32>
    %457 = arith.mulf %449, %456 : vector<2x32xf32>
    %458 = arith.addf %455, %457 : vector<2x32xf32>
    %459 = arith.truncf %458 : vector<2x32xf32> to vector<2x32xbf16>
    %cst_93 = arith.constant dense<0.000000e+00> : vector<2x96xf32>
    %460 = tpu.matmul %298, %2, %cst_93 {dimension_numbers = #tpu.dot_dimension_numbers<[1], [0], [0], [1], [0, 0, 1, 1], [], []>} : vector<2x32xbf16>, vector<32x96xbf16>, vector<2x96xf32> -> vector<2x96xf32>
    %461 = arith.addf %460, %14 : vector<2x96xf32>
    %cst_94 = arith.constant dense<0.000000e+00> : vector<2x96xf32>
    %462 = tpu.matmul %459, %5, %cst_94 {dimension_numbers = #tpu.dot_dimension_numbers<[1], [0], [0], [1], [0, 0, 1, 1], [], []>} : vector<2x32xbf16>, vector<32x96xbf16>, vector<2x96xf32> -> vector<2x96xf32>
    %463 = vector.extract_strided_slice %461 {offsets = [0, 0], sizes = [2, 64], strides = [1, 1]} : vector<2x96xf32> to vector<2x64xf32>
    %464 = vector.extract_strided_slice %462 {offsets = [0, 0], sizes = [2, 64], strides = [1, 1]} : vector<2x96xf32> to vector<2x64xf32>
    %465 = arith.addf %463, %464 : vector<2x64xf32>
    %466 = arith.negf %465 : vector<2x64xf32>
    %467 = math.exp %466 : vector<2x64xf32>
    %cst_95 = arith.constant 1.000000e+00 : f32
    %468 = vector.broadcast %cst_95 : f32 to vector<2x64xf32>
    %469 = arith.addf %468, %467 : vector<2x64xf32>
    %470 = arith.divf %468, %469 : vector<2x64xf32>
    %471 = vector.extract_strided_slice %470 {offsets = [0, 0], sizes = [2, 32], strides = [1, 1]} : vector<2x64xf32> to vector<2x32xf32>
    %472 = vector.extract_strided_slice %470 {offsets = [0, 32], sizes = [2, 32], strides = [1, 1]} : vector<2x64xf32> to vector<2x32xf32>
    %473 = vector.extract_strided_slice %461 {offsets = [0, 64], sizes = [2, 32], strides = [1, 1]} : vector<2x96xf32> to vector<2x32xf32>
    %474 = vector.extract_strided_slice %462 {offsets = [0, 64], sizes = [2, 32], strides = [1, 1]} : vector<2x96xf32> to vector<2x32xf32>
    %475 = arith.addf %474, %23 : vector<2x32xf32>
    %476 = arith.mulf %471, %475 : vector<2x32xf32>
    %477 = arith.addf %473, %476 : vector<2x32xf32>
    %478 = math.tanh %477 : vector<2x32xf32>
    %479 = arith.subf %458, %478 : vector<2x32xf32>
    %480 = arith.mulf %472, %479 : vector<2x32xf32>
    %481 = arith.addf %478, %480 : vector<2x32xf32>
    %482 = arith.truncf %481 : vector<2x32xf32> to vector<2x32xbf16>
    %cst_96 = arith.constant dense<0.000000e+00> : vector<2x96xf32>
    %483 = tpu.matmul %321, %2, %cst_96 {dimension_numbers = #tpu.dot_dimension_numbers<[1], [0], [0], [1], [0, 0, 1, 1], [], []>} : vector<2x32xbf16>, vector<32x96xbf16>, vector<2x96xf32> -> vector<2x96xf32>
    %484 = arith.addf %483, %14 : vector<2x96xf32>
    %cst_97 = arith.constant dense<0.000000e+00> : vector<2x96xf32>
    %485 = tpu.matmul %482, %5, %cst_97 {dimension_numbers = #tpu.dot_dimension_numbers<[1], [0], [0], [1], [0, 0, 1, 1], [], []>} : vector<2x32xbf16>, vector<32x96xbf16>, vector<2x96xf32> -> vector<2x96xf32>
    %486 = vector.extract_strided_slice %484 {offsets = [0, 0], sizes = [2, 64], strides = [1, 1]} : vector<2x96xf32> to vector<2x64xf32>
    %487 = vector.extract_strided_slice %485 {offsets = [0, 0], sizes = [2, 64], strides = [1, 1]} : vector<2x96xf32> to vector<2x64xf32>
    %488 = arith.addf %486, %487 : vector<2x64xf32>
    %489 = arith.negf %488 : vector<2x64xf32>
    %490 = math.exp %489 : vector<2x64xf32>
    %cst_98 = arith.constant 1.000000e+00 : f32
    %491 = vector.broadcast %cst_98 : f32 to vector<2x64xf32>
    %492 = arith.addf %491, %490 : vector<2x64xf32>
    %493 = arith.divf %491, %492 : vector<2x64xf32>
    %494 = vector.extract_strided_slice %493 {offsets = [0, 0], sizes = [2, 32], strides = [1, 1]} : vector<2x64xf32> to vector<2x32xf32>
    %495 = vector.extract_strided_slice %493 {offsets = [0, 32], sizes = [2, 32], strides = [1, 1]} : vector<2x64xf32> to vector<2x32xf32>
    %496 = vector.extract_strided_slice %484 {offsets = [0, 64], sizes = [2, 32], strides = [1, 1]} : vector<2x96xf32> to vector<2x32xf32>
    %497 = vector.extract_strided_slice %485 {offsets = [0, 64], sizes = [2, 32], strides = [1, 1]} : vector<2x96xf32> to vector<2x32xf32>
    %498 = arith.addf %497, %23 : vector<2x32xf32>
    %499 = arith.mulf %494, %498 : vector<2x32xf32>
    %500 = arith.addf %496, %499 : vector<2x32xf32>
    %501 = math.tanh %500 : vector<2x32xf32>
    %502 = arith.subf %481, %501 : vector<2x32xf32>
    %503 = arith.mulf %495, %502 : vector<2x32xf32>
    %504 = arith.addf %501, %503 : vector<2x32xf32>
    %505 = arith.truncf %504 : vector<2x32xf32> to vector<2x32xbf16>
    %cst_99 = arith.constant dense<0.000000e+00> : vector<2x96xf32>
    %506 = tpu.matmul %344, %2, %cst_99 {dimension_numbers = #tpu.dot_dimension_numbers<[1], [0], [0], [1], [0, 0, 1, 1], [], []>} : vector<2x32xbf16>, vector<32x96xbf16>, vector<2x96xf32> -> vector<2x96xf32>
    %507 = arith.addf %506, %14 : vector<2x96xf32>
    %cst_100 = arith.constant dense<0.000000e+00> : vector<2x96xf32>
    %508 = tpu.matmul %505, %5, %cst_100 {dimension_numbers = #tpu.dot_dimension_numbers<[1], [0], [0], [1], [0, 0, 1, 1], [], []>} : vector<2x32xbf16>, vector<32x96xbf16>, vector<2x96xf32> -> vector<2x96xf32>
    %509 = vector.extract_strided_slice %507 {offsets = [0, 0], sizes = [2, 64], strides = [1, 1]} : vector<2x96xf32> to vector<2x64xf32>
    %510 = vector.extract_strided_slice %508 {offsets = [0, 0], sizes = [2, 64], strides = [1, 1]} : vector<2x96xf32> to vector<2x64xf32>
    %511 = arith.addf %509, %510 : vector<2x64xf32>
    %512 = arith.negf %511 : vector<2x64xf32>
    %513 = math.exp %512 : vector<2x64xf32>
    %cst_101 = arith.constant 1.000000e+00 : f32
    %514 = vector.broadcast %cst_101 : f32 to vector<2x64xf32>
    %515 = arith.addf %514, %513 : vector<2x64xf32>
    %516 = arith.divf %514, %515 : vector<2x64xf32>
    %517 = vector.extract_strided_slice %516 {offsets = [0, 0], sizes = [2, 32], strides = [1, 1]} : vector<2x64xf32> to vector<2x32xf32>
    %518 = vector.extract_strided_slice %516 {offsets = [0, 32], sizes = [2, 32], strides = [1, 1]} : vector<2x64xf32> to vector<2x32xf32>
    %519 = vector.extract_strided_slice %507 {offsets = [0, 64], sizes = [2, 32], strides = [1, 1]} : vector<2x96xf32> to vector<2x32xf32>
    %520 = vector.extract_strided_slice %508 {offsets = [0, 64], sizes = [2, 32], strides = [1, 1]} : vector<2x96xf32> to vector<2x32xf32>
    %521 = arith.addf %520, %23 : vector<2x32xf32>
    %522 = arith.mulf %517, %521 : vector<2x32xf32>
    %523 = arith.addf %519, %522 : vector<2x32xf32>
    %524 = math.tanh %523 : vector<2x32xf32>
    %525 = arith.subf %504, %524 : vector<2x32xf32>
    %526 = arith.mulf %518, %525 : vector<2x32xf32>
    %527 = arith.addf %524, %526 : vector<2x32xf32>
    %528 = arith.truncf %527 : vector<2x32xf32> to vector<2x32xbf16>
    %cst_102 = arith.constant dense<0.000000e+00> : vector<2x96xf32>
    %529 = tpu.matmul %367, %2, %cst_102 {dimension_numbers = #tpu.dot_dimension_numbers<[1], [0], [0], [1], [0, 0, 1, 1], [], []>} : vector<2x32xbf16>, vector<32x96xbf16>, vector<2x96xf32> -> vector<2x96xf32>
    %530 = arith.addf %529, %14 : vector<2x96xf32>
    %cst_103 = arith.constant dense<0.000000e+00> : vector<2x96xf32>
    %531 = tpu.matmul %528, %5, %cst_103 {dimension_numbers = #tpu.dot_dimension_numbers<[1], [0], [0], [1], [0, 0, 1, 1], [], []>} : vector<2x32xbf16>, vector<32x96xbf16>, vector<2x96xf32> -> vector<2x96xf32>
    %532 = vector.extract_strided_slice %530 {offsets = [0, 0], sizes = [2, 64], strides = [1, 1]} : vector<2x96xf32> to vector<2x64xf32>
    %533 = vector.extract_strided_slice %531 {offsets = [0, 0], sizes = [2, 64], strides = [1, 1]} : vector<2x96xf32> to vector<2x64xf32>
    %534 = arith.addf %532, %533 : vector<2x64xf32>
    %535 = arith.negf %534 : vector<2x64xf32>
    %536 = math.exp %535 : vector<2x64xf32>
    %cst_104 = arith.constant 1.000000e+00 : f32
    %537 = vector.broadcast %cst_104 : f32 to vector<2x64xf32>
    %538 = arith.addf %537, %536 : vector<2x64xf32>
    %539 = arith.divf %537, %538 : vector<2x64xf32>
    %540 = vector.extract_strided_slice %539 {offsets = [0, 0], sizes = [2, 32], strides = [1, 1]} : vector<2x64xf32> to vector<2x32xf32>
    %541 = vector.extract_strided_slice %539 {offsets = [0, 32], sizes = [2, 32], strides = [1, 1]} : vector<2x64xf32> to vector<2x32xf32>
    %542 = vector.extract_strided_slice %530 {offsets = [0, 64], sizes = [2, 32], strides = [1, 1]} : vector<2x96xf32> to vector<2x32xf32>
    %543 = vector.extract_strided_slice %531 {offsets = [0, 64], sizes = [2, 32], strides = [1, 1]} : vector<2x96xf32> to vector<2x32xf32>
    %544 = arith.addf %543, %23 : vector<2x32xf32>
    %545 = arith.mulf %540, %544 : vector<2x32xf32>
    %546 = arith.addf %542, %545 : vector<2x32xf32>
    %547 = math.tanh %546 : vector<2x32xf32>
    %548 = arith.subf %527, %547 : vector<2x32xf32>
    %549 = arith.mulf %541, %548 : vector<2x32xf32>
    %550 = arith.addf %547, %549 : vector<2x32xf32>
    %551 = arith.truncf %550 : vector<2x32xf32> to vector<2x32xbf16>
    %cst_105 = arith.constant dense<0.000000e+00> : vector<2x96xf32>
    %552 = tpu.matmul %390, %2, %cst_105 {dimension_numbers = #tpu.dot_dimension_numbers<[1], [0], [0], [1], [0, 0, 1, 1], [], []>} : vector<2x32xbf16>, vector<32x96xbf16>, vector<2x96xf32> -> vector<2x96xf32>
    %553 = arith.addf %552, %14 : vector<2x96xf32>
    %cst_106 = arith.constant dense<0.000000e+00> : vector<2x96xf32>
    %554 = tpu.matmul %551, %5, %cst_106 {dimension_numbers = #tpu.dot_dimension_numbers<[1], [0], [0], [1], [0, 0, 1, 1], [], []>} : vector<2x32xbf16>, vector<32x96xbf16>, vector<2x96xf32> -> vector<2x96xf32>
    %555 = vector.extract_strided_slice %553 {offsets = [0, 0], sizes = [2, 64], strides = [1, 1]} : vector<2x96xf32> to vector<2x64xf32>
    %556 = vector.extract_strided_slice %554 {offsets = [0, 0], sizes = [2, 64], strides = [1, 1]} : vector<2x96xf32> to vector<2x64xf32>
    %557 = arith.addf %555, %556 : vector<2x64xf32>
    %558 = arith.negf %557 : vector<2x64xf32>
    %559 = math.exp %558 : vector<2x64xf32>
    %cst_107 = arith.constant 1.000000e+00 : f32
    %560 = vector.broadcast %cst_107 : f32 to vector<2x64xf32>
    %561 = arith.addf %560, %559 : vector<2x64xf32>
    %562 = arith.divf %560, %561 : vector<2x64xf32>
    %563 = vector.extract_strided_slice %562 {offsets = [0, 0], sizes = [2, 32], strides = [1, 1]} : vector<2x64xf32> to vector<2x32xf32>
    %564 = vector.extract_strided_slice %562 {offsets = [0, 32], sizes = [2, 32], strides = [1, 1]} : vector<2x64xf32> to vector<2x32xf32>
    %565 = vector.extract_strided_slice %553 {offsets = [0, 64], sizes = [2, 32], strides = [1, 1]} : vector<2x96xf32> to vector<2x32xf32>
    %566 = vector.extract_strided_slice %554 {offsets = [0, 64], sizes = [2, 32], strides = [1, 1]} : vector<2x96xf32> to vector<2x32xf32>
    %567 = arith.addf %566, %23 : vector<2x32xf32>
    %568 = arith.mulf %563, %567 : vector<2x32xf32>
    %569 = arith.addf %565, %568 : vector<2x32xf32>
    %570 = math.tanh %569 : vector<2x32xf32>
    %571 = arith.subf %550, %570 : vector<2x32xf32>
    %572 = arith.mulf %564, %571 : vector<2x32xf32>
    %573 = arith.addf %570, %572 : vector<2x32xf32>
    %574 = arith.truncf %573 : vector<2x32xf32> to vector<2x32xbf16>
    %cst_108 = arith.constant dense<0.000000e+00> : vector<2x96xf32>
    %575 = tpu.matmul %413, %2, %cst_108 {dimension_numbers = #tpu.dot_dimension_numbers<[1], [0], [0], [1], [0, 0, 1, 1], [], []>} : vector<2x32xbf16>, vector<32x96xbf16>, vector<2x96xf32> -> vector<2x96xf32>
    %576 = arith.addf %575, %14 : vector<2x96xf32>
    %cst_109 = arith.constant dense<0.000000e+00> : vector<2x96xf32>
    %577 = tpu.matmul %574, %5, %cst_109 {dimension_numbers = #tpu.dot_dimension_numbers<[1], [0], [0], [1], [0, 0, 1, 1], [], []>} : vector<2x32xbf16>, vector<32x96xbf16>, vector<2x96xf32> -> vector<2x96xf32>
    %578 = vector.extract_strided_slice %576 {offsets = [0, 0], sizes = [2, 64], strides = [1, 1]} : vector<2x96xf32> to vector<2x64xf32>
    %579 = vector.extract_strided_slice %577 {offsets = [0, 0], sizes = [2, 64], strides = [1, 1]} : vector<2x96xf32> to vector<2x64xf32>
    %580 = arith.addf %578, %579 : vector<2x64xf32>
    %581 = arith.negf %580 : vector<2x64xf32>
    %582 = math.exp %581 : vector<2x64xf32>
    %cst_110 = arith.constant 1.000000e+00 : f32
    %583 = vector.broadcast %cst_110 : f32 to vector<2x64xf32>
    %584 = arith.addf %583, %582 : vector<2x64xf32>
    %585 = arith.divf %583, %584 : vector<2x64xf32>
    %586 = vector.extract_strided_slice %585 {offsets = [0, 0], sizes = [2, 32], strides = [1, 1]} : vector<2x64xf32> to vector<2x32xf32>
    %587 = vector.extract_strided_slice %585 {offsets = [0, 32], sizes = [2, 32], strides = [1, 1]} : vector<2x64xf32> to vector<2x32xf32>
    %588 = vector.extract_strided_slice %576 {offsets = [0, 64], sizes = [2, 32], strides = [1, 1]} : vector<2x96xf32> to vector<2x32xf32>
    %589 = vector.extract_strided_slice %577 {offsets = [0, 64], sizes = [2, 32], strides = [1, 1]} : vector<2x96xf32> to vector<2x32xf32>
    %590 = arith.addf %589, %23 : vector<2x32xf32>
    %591 = arith.mulf %586, %590 : vector<2x32xf32>
    %592 = arith.addf %588, %591 : vector<2x32xf32>
    %593 = math.tanh %592 : vector<2x32xf32>
    %594 = arith.subf %573, %593 : vector<2x32xf32>
    %595 = arith.mulf %587, %594 : vector<2x32xf32>
    %596 = arith.addf %593, %595 : vector<2x32xf32>
    %597 = arith.mulf %596, %26 : vector<2x32xf32>
    %cst_111 = arith.constant dense<0.000000e+00> : vector<2xf32>
    %598 = vector.multi_reduction <add>, %597, %cst_111 [1] : vector<2x32xf32> to vector<2xf32>
    %599 = vector.shape_cast %598 : vector<2xf32> to vector<2x1xf32>
    %600 = vector.broadcast %27 : vector<1x1xf32> to vector<2x1xf32>
    %601 = arith.addf %599, %600 : vector<2x1xf32>
    %c0_112 = arith.constant 0 : index
    %c0_113 = arith.constant 0 : index
    %602 = vector.load %arg3[%c0_112, %c0_113] : memref<2x1xf32, #tpu.memory_space<vmem>>, vector<2x1xf32>
    tpu.vector_store %arg3[%c0_112, %c0_113], %601 {strides = array<i32>} : memref<2x1xf32, #tpu.memory_space<vmem>>, vector<2x1xf32>,
    return
  }
}

</mosaic_0001>

<bundles_post_ra>
// kernel: tpu_custom_call.1
= control target key start
LH: loop header
LB: loop body
LE: loop exit
PB: predicated region body
PF: predicated region fallthrough
CT: control target
= control target key end

     0   :  { %8 = vsyncpa [#allocation3], 0  ;;  %s2916_s0 = inlined_call_operand.hbm [shape: bf16[8,2,16], index: 0, kind: input, shape index: {}]   ;;  %s2917_s1 = inlined_call_operand.hbm [shape: bf16[176,96], index: 1, kind: input, shape index: {}]   ;;  %s2918_s2 = inlined_call_operand.hbm [shape: f32[8,128], index: 2, kind: input, shape index: {}]   ;;  %s2919_s3 = inlined_call_operand.vmem [shape: f32[2,1], index: 3, kind: output, shape index: {}]  }
   0x1   :  { %9 = vsyncpa [#allocation5], 0  ;;  %s27_s14 = sshll.u32 %s2917_s1, 4  ;;  %s2423_s15 = smov [#allocation4]   ;;  %s28_s14 = int_to_ptr.hbm [resolvable:$true] %s27_s14 }
   0x2   :  { %s29_s16 = sshll.u32 %s2423_s15, 4  ;;  %s14_s19 = sshll.u32 %s2916_s0, 4  ;;  %s30_s16 = int_to_ptr.vmem [resolvable:$true] %s29_s16  ;;  %s15_s19 = int_to_ptr.hbm [resolvable:$true] %s14_s19 }
   0x3   :  { %s2424_s20 = smov 64   ;;  %s2425_s21 = smov 4  }
   0x4   :  { %35 = dma.hbm_to_vmem [thread:$0]  %s28_s14, 1408, %s30_s16, [#allocation5], %s2424_s20, %s2424_s20, %s2425_s21  }
   0x5   :  { %s2426_s22 = smov [#allocation2]   ;;  %s2427_s24 = smov 16  }
   0x6   :  { %s16_s23 = sshll.u32 %s2426_s22, 4  ;;  %s2428_s25 = smov 1   ;;  %s17_s23 = int_to_ptr.vmem [resolvable:$true] %s16_s23 }
   0x7   :  { %22 = dma.hbm_to_vmem [thread:$0]  %s15_s19, 128, %s17_s23, [#allocation3], %s2427_s24, %s2427_s24, %s2428_s25  }
   0x8   :  { %s41_s27 = sshll.u32 %s2918_s2, 4  ;;  %s2429_s28 = smov [#allocation6]   ;;  %s42_s27 = int_to_ptr.hbm [resolvable:$true] %s41_s27 }
   0x9   :  { %s43_s29 = sshll.u32 %s2429_s28, 4  ;;  %s44_s29 = int_to_ptr.vmem [resolvable:$true] %s43_s29 }
   0xa   :  { %46 = dma.hbm_to_vmem [thread:$0]  %s42_s27, 128, %s44_s29, [#allocation5]  }
   0xb   :  { %2419 = dma.done.wait [#allocation3], 128  }
   0xc   :  { %2420 = vsyncadd [#allocation3], 4294967168 }
   0xd   :  { %2421 = dma.done.wait [#allocation5], 1536  }
   0xe   :  { %2422 = vsyncadd [#allocation5], 4294965760  ;;  %v2464_v0 = vld [vmem:[#allocation4 + $0x10] sm:$0xff]  ;;  %v2466_v1 = vld [vmem:[#allocation4] sm:$0xff]  ;;  %vm118_vm0 = vcmask 130048   ;;  %v2430_v5 = vmov 0  }
   0xf   :  { %v2468_v2 = vld [vmem:[#allocation4 + $0x8] sm:$0xff]  ;;  %v2193_v3 = vld [vmem:[#allocation6 + $0x3] ss:$0 sm:$0xff]  ;;  %157 = vmatpush.bf16.msra.mxu1 %v2464_v0  ;;  %129 = vmatpush.bf16.msra.mxu0 %v2466_v1  ;;  %v97_v4 = vld [vmem:[#allocation2] sm:$0x1]  ;;  %s2431_s0 = smov 96  }
  0x10   :  { %185 = vrot.lane.b32.xlu0 %v2193_v3, %s2424_s20  ;;  %240 = vmatpush.bf16.msra.mxu3 %v2464_v0  ;;  %v2491_v12 = vld [vmem:[#allocation6] ss:$0 sm:$0xff]  ;;  %s2432_s2 = smov 32   ;;  %v101_v36 = vld [vmem:[#allocation2 + $0x2] sm:$0x1]  ;;  %v2502_v39 = vld [vmem:[#allocation4 + $0x20] sm:$0xff] }
  0x11   :  { %222 = vmatpush.bf16.msra.mxu2 %v2466_v1  ;;  %v99_v37 = vld [vmem:[#allocation2 + $0x1] sm:$0x1]  ;;  %v105_v38 = vld [vmem:[#allocation2 + $0x4] sm:$0x1]  ;;  %v109_v44 = vld [vmem:[#allocation2 + $0x6] sm:$0x1] }
  0x12   :  { %2063 = vmatmul.msk.bf16.vlgmr.msra.gmra.mxu0 %vm118_vm0, %v97_v4  ;;  %v2506_v40 = vld [vmem:[#allocation4 + $0x18] sm:$0xff]  ;;  %vm147_vm5 = vcmask 261120  }
  0x13   :  { %301 = vmatpush.bf16.msrb.mxu0 %v2466_v1  ;;  %158 = vmatpush.bf16.msra.mxu1 %v2468_v2 }
  0x14   :  { %241 = vmatpush.bf16.msra.mxu3 %v2468_v2  ;;  %2073 = vmatmul.msk.bf16.vlgmr.msra.gmra.mxu2 %vm118_vm0, %v99_v37 }
  0x15   :  { %319 = vmatpush.bf16.msrb.mxu2 %v2464_v0 }
  0x16   :  { %159 = vmatmul.bf16.vlgmr.msra.gmra.mxu1 %v2430_v5 }
  0x17   :  { %459 = vmatpush.bf16.msra.mxu0 %v2466_v1  ;;  %380 = vmatpush.bf16.msrb.mxu1 %v2466_v1 }
  0x18   :  { %398 = vmatpush.bf16.msrb.mxu3 %v2464_v0 }
  0x19   :  { %320 = vmatpush.bf16.msrb.mxu2 %v2468_v2 }
  0x1b   :  { %538 = vmatpush.bf16.msra.mxu1 %v2466_v1 }
  0x1c   :  { %399 = vmatpush.bf16.msrb.mxu3 %v2468_v2 }
  0x1d   :  { %477 = vmatpush.bf16.msra.mxu2 %v2464_v0 }
  0x21   :  { %478 = vmatpush.bf16.msra.mxu2 %v2468_v2 }
  0x22   :  { %2076 = vmatmul.msk.bf16.vlgmr.msrb.gmra.mxu0 %vm118_vm0, %v101_v36 }
  0x23   :  { %617 = vmatpush.bf16.msrb.mxu0 %v2466_v1 }
  0x32   :  { %2082 = vmatmul.msk.bf16.vlgmr.msra.gmra.mxu0 %vm118_vm0, %v105_v38 }
  0x33   :  { %783 = vmatpush.bf16.msra.mxu0 %v2502_v39 }
  0x37   :  { %784 = vmatpush.bf16.msra.mxu0 %v2506_v40 }
  0x42   :  { %2088 = vmatmul.msk.bf16.vlgmr.msrb.gmra.mxu0 %vm118_vm0, %v109_v44 }
  0x43   :  { %945 = vmatpush.bf16.msrb.mxu0 %v2502_v39 }
  0x47   :  { %946 = vmatpush.bf16.msrb.mxu0 %v2506_v40 }
  0x82   :  { %v2487_v7 = vpop.permute.xlu0 %185 }
  0x8f   :  { %v131_v6 = vpop.f32.mrf.mxu0 }
  0x90   :  { %v132_v13 = vadd.f32 %v2491_v12, %v131_v6 }
  0x93   :  { %v160_v8 = vpop.f32.mrf.mxu1 }
  0x94   :  { %v188_v9 = vadd.f32 %v2487_v7, %v160_v8  ;;  %v164_v14 = vadd.f32 %v160_v8, %v132_v13 }
  0x96   :  { %190 = vrot.lane.b32.xlu0 %v188_v9, %s2424_s20  ;;  %v2072_v15 = vmul.f32 -1.442695, %v164_v14 }
  0x97   :  { %v133_v10 = vpop.f32.mrf.mxu0  ;;  %v224_v52 = vpop.f32.mrf.mxu2 }
  0x98   :  { %2201 = vpow2.f32 %v2072_v15  ;;  %v225_v59 = vadd.f32 %v2491_v12, %v224_v52 }
  0x9b   :  { %v162_v11 = vpop.f32.mrf.mxu1 }
  0x9e   :  { %v2202_v16 = vpop.eup %2201 }
  0x9f   :  { %v168_v17 = vadd.f32 1.0, %v2202_v16  ;;  %v2517_v46 = vpop.f32.mrf.mxu0  ;;  %v226_v53 = vpop.f32.mrf.mxu2 }
  0xa1   :  { %2203 = vrcp.f32 %v168_v17  ;;  %v180_v23 = vand.u32 2147483648, %v168_v17  ;;  %vm174_vm2 = vweird.f32 %v168_v17  ;;  %v178_v24 = vand.u32 2147483647, %v168_v17 }
  0xa3   :  { %v181_v26 = vor.u32 1.1754944e-38, %v180_v23  ;;  %vm179_vm4 = vcmp.eq.f32.partialorder %v178_v24, 8.507059e+37  ;;  %v103_v24 = vld [vmem:[#allocation2 + $0x3] sm:$0x1] }
  0xa4   :  { %2079 = vmatmul.msk.bf16.vlgmr.msrb.gmra.mxu1 %vm118_vm0, %v103_v24 }
  0xa5   :  { %696 = vmatpush.bf16.msrb.mxu1 %v2466_v1 }
  0xa7   :  { %v2204_v18 = vpop.eup %2203  ;;  %v305_v47 = vpop.f32.mrf.mxu0 }
  0xa8   :  { %v170_v19 = vmul.f32 %v2204_v18, %v168_v17  ;;  %vm175_vm1 = vweird.f32 %v2204_v18 }
  0xa9   :  { %vm176_vm3 = vmor %vm174_vm2, %vm175_vm1 }
  0xaa   :  { %v171_v20 = vsub.f32 1.0, %v170_v19 }
  0xac   :  { %v172_v21 = vmul.f32 %v2204_v18, %v171_v20 }
  0xae   :  { %v173_v22 = vadd.f32 %v2204_v18, %v172_v21 }
  0xaf   :  { %v2521_v48 = vpop.f32.mrf.mxu0 }
  0xb0   :  { %v177_v25 = vsel %vm176_vm3, %v2204_v18, %v173_v22 }
  0xb1   :  { %v182_v28 = vsel %vm179_vm4, %v181_v26, %v177_v25  ;;  %v107_v25 = vld [vmem:[#allocation2 + $0x5] sm:$0x1] }
  0xb4   :  { %2085 = vmatmul.msk.bf16.vlgmr.msra.gmra.mxu1 %vm118_vm0, %v107_v25 }
  0xb5   :  { %869 = vmatpush.bf16.msra.mxu1 %v2502_v39 }
  0xb7   :  { %v463_v49 = vpop.f32.mrf.mxu0 }
  0xb9   :  { %870 = vmatpush.bf16.msra.mxu1 %v2506_v40 }
  0xbf   :  { %v2523_v50 = vpop.f32.mrf.mxu0 }
  0xc7   :  { %v621_v51 = vpop.f32.mrf.mxu0 }
 0x108   :  { %v191_v27 = vpop.permute.xlu0 %190 }
 0x109   :  { %v193_v29 = vmul.f32 %v191_v27, %v182_v28 }
 0x10b   :  { %195 = vrot.lane.b32.xlu1 %v193_v29, %s2424_s20  ;;  %v111_v29 = vld [vmem:[#allocation2 + $0x7] sm:$0x1] }
 0x10c   :  { %2091 = vmatmul.msk.bf16.vlgmr.msrb.gmra.mxu1 %vm118_vm0, %v111_v29 }
 0x10d   :  { %1021 = vmatpush.bf16.msrb.mxu1 %v2502_v39 }
 0x111   :  { %1022 = vmatpush.bf16.msrb.mxu1 %v2506_v40 }
 0x121   :  { %v2542_v1 = vpop.f32.mrf.mxu1 }
 0x17d   :  { %v196_v30 = vpop.permute.xlu1 %195 }
 0x17e   :  { %v198_v31 = vadd.f32 %v196_v30, %v132_v13  ;;  %v384_v30 = vpop.f32.mrf.mxu1 }
 0x180   :  { %2205 = vtanh.f32 %v198_v31 }
 0x186   :  { %v2206_v32 = vpop.eup %2205  ;;  %v2544_v31 = vpop.f32.mrf.mxu1 }
 0x187   :  { %v200_v33 = vsub.f32 0.0, %v2206_v32 }
 0x189   :  { %202 = vrot.lane.b32.xlu1 %v200_v33, %s2431_s0 }
 0x18e   :  { %v542_v33 = vpop.f32.mrf.mxu1 }
 0x1fb   :  { %v203_v34 = vpop.permute.xlu1 %202 }
 0x1fc   :  { %v205_v35 = vmul.f32 %v203_v34, %v182_v28  ;;  %v2552_v34 = vpop.f32.mrf.mxu1 }
 0x1fe   :  { %207 = vrot.lane.b32.xlu2 %v205_v35, %s2432_s2 }
 0x204   :  { %v700_v35 = vpop.f32.mrf.mxu1 }
 0x258   :  { %v208_v41 = vpop.permute.xlu2 %207 }
 0x259   :  { %v210_v42 = vadd.f32 %v2206_v32, %v208_v41 }
 0x25b   :  { %v211_v43 = vpack.c.bf16 %v210_v42, %v210_v42 }
 0x25d   :  { %229 = vrot.lane.b32.xlu2 %v211_v43, %s2424_s20  ;;  %v304_v43 = vadd.f32 %v2491_v12, %v2517_v46 }
 0x2b7   :  { %v230_v45 = vpop.permute.xlu2 %229 }
 0x2b8   :  { %2074 = vmatmul.msk.bf16.vlgmr.msra.gmra.mxu3 %vm147_vm5, %v230_v45  ;;  %2102 = vmatmul.msk.bf16.vlgmr.msra.gmra.mxu0 %vm147_vm5, %v230_v45 }
 0x2b9   :  { %556 = vmatpush.bf16.msra.mxu3 %v2464_v0  ;;  %1097 = vmatpush.bf16.msra.mxu0 %v2502_v39 }
 0x2bd   :  { %557 = vmatpush.bf16.msra.mxu3 %v2468_v2  ;;  %1098 = vmatpush.bf16.msra.mxu0 %v2506_v40 }
 0x335   :  { %v2525_v54 = vpop.f32.mrf.mxu0 }
 0x33b   :  { %v243_v55 = vpop.f32.mrf.mxu3 }
 0x33c   :  { %v267_v56 = vadd.f32 %v243_v55, %v2487_v7  ;;  %v247_v60 = vadd.f32 %v243_v55, %v225_v59 }
 0x33d   :  { %v788_v57 = vpop.f32.mrf.mxu0 }
 0x33e   :  { %269 = vrot.lane.b32.xlu0 %v267_v56, %s2424_s20  ;;  %v2075_v61 = vmul.f32 -1.442695, %v247_v60 }
 0x340   :  { %2207 = vpow2.f32 %v2075_v61 }
 0x343   :  { %v245_v58 = vpop.f32.mrf.mxu3 }
 0x346   :  { %v2208_v62 = vpop.eup %2207 }
 0x347   :  { %v251_v63 = vadd.f32 1.0, %v2208_v62 }
 0x349   :  { %2209 = vrcp.f32 %v251_v63  ;;  %v263_v10 = vand.u32 2147483648, %v251_v63  ;;  %vm257_vm7 = vweird.f32 %v251_v63  ;;  %v261_v11 = vand.u32 2147483647, %v251_v63 }
 0x34b   :  { %v264_v14 = vor.u32 1.1754944e-38, %v263_v10  ;;  %vm262_vm9 = vcmp.eq.f32.partialorder %v261_v11, 8.507059e+37 }
 0x34f   :  { %v2210_v3 = vpop.eup %2209 }
 0x350   :  { %v253_v4 = vmul.f32 %v2210_v3, %v251_v63  ;;  %vm258_vm6 = vweird.f32 %v2210_v3 }
 0x351   :  { %vm259_vm8 = vmor %vm257_vm7, %vm258_vm6 }
 0x352   :  { %v254_v6 = vsub.f32 1.0, %v253_v4 }
 0x354   :  { %v255_v8 = vmul.f32 %v2210_v3, %v254_v6 }
 0x356   :  { %v256_v9 = vadd.f32 %v2210_v3, %v255_v8 }
 0x358   :  { %v260_v13 = vsel %vm259_vm8, %v2210_v3, %v256_v9 }
 0x359   :  { %v265_v16 = vsel %vm262_vm9, %v264_v14, %v260_v13 }
 0x3b0   :  { %v270_v15 = vpop.permute.xlu0 %269 }
 0x3b1   :  { %v272_v17 = vmul.f32 %v270_v15, %v265_v16 }
 0x3b3   :  { %274 = vrot.lane.b32.xlu1 %v272_v17, %s2424_s20 }
 0x425   :  { %v275_v18 = vpop.permute.xlu1 %274 }
 0x426   :  { %v277_v19 = vadd.f32 %v275_v18, %v225_v59 }
 0x428   :  { %2211 = vtanh.f32 %v277_v19 }
 0x42e   :  { %v2212_v20 = vpop.eup %2211 }
 0x42f   :  { %v279_v21 = vsub.f32 %v210_v42, %v2212_v20 }
 0x431   :  { %281 = vrot.lane.b32.xlu2 %v279_v21, %s2431_s0 }
 0x48b   :  { %v282_v22 = vpop.permute.xlu2 %281 }
 0x48c   :  { %v284_v23 = vmul.f32 %v282_v22, %v265_v16 }
 0x48e   :  { %286 = vrot.lane.b32.xlu0 %v284_v23, %s2432_s2 }
 0x500   :  { %v287_v26 = vpop.permute.xlu0 %286 }
 0x501   :  { %v289_v27 = vadd.f32 %v2212_v20, %v287_v26  ;;  %v383_v20 = vadd.f32 %v2491_v12, %v2542_v1 }
 0x503   :  { %v290_v28 = vpack.c.bf16 %v289_v27, %v289_v27 }
 0x505   :  { %308 = vrot.lane.b32.xlu1 %v290_v28, %s2424_s20 }
 0x577   :  { %v309_v32 = vpop.permute.xlu1 %308 }
 0x578   :  { %2077 = vmatmul.msk.bf16.vlgmr.msrb.gmra.mxu2 %vm147_vm5, %v309_v32  ;;  %2112 = vmatmul.msk.bf16.vlgmr.msra.gmra.mxu1 %vm147_vm5, %v309_v32 }
 0x579   :  { %635 = vmatpush.bf16.msrb.mxu2 %v2464_v0  ;;  %1173 = vmatpush.bf16.msra.mxu1 %v2502_v39 }
 0x57d   :  { %636 = vmatpush.bf16.msrb.mxu2 %v2468_v2  ;;  %1174 = vmatpush.bf16.msra.mxu1 %v2506_v40 }
 0x5f5   :  { %v2554_v36 = vpop.f32.mrf.mxu1 }
 0x5fb   :  { %v322_v37 = vpop.f32.mrf.mxu2 }
 0x5fc   :  { %v346_v38 = vadd.f32 %v322_v37, %v2487_v7  ;;  %v326_v44 = vadd.f32 %v322_v37, %v304_v43 }
 0x5fd   :  { %v874_v41 = vpop.f32.mrf.mxu1 }
 0x5fe   :  { %348 = vrot.lane.b32.xlu2 %v346_v38, %s2424_s20  ;;  %v2078_v45 = vmul.f32 -1.442695, %v326_v44 }
 0x600   :  { %2213 = vpow2.f32 %v2078_v45 }
 0x603   :  { %v324_v42 = vpop.f32.mrf.mxu2 }
 0x606   :  { %v2214_v47 = vpop.eup %2213 }
 0x607   :  { %v330_v49 = vadd.f32 1.0, %v2214_v47 }
 0x609   :  { %2215 = vrcp.f32 %v330_v49  ;;  %v342_v57 = vand.u32 2147483648, %v330_v49  ;;  %vm336_vm11 = vweird.f32 %v330_v49  ;;  %v340_v58 = vand.u32 2147483647, %v330_v49 }
 0x60b   :  { %v343_v60 = vor.u32 1.1754944e-38, %v342_v57  ;;  %vm341_vm13 = vcmp.eq.f32.partialorder %v340_v58, 8.507059e+37  ;;  %v462_v58 = vadd.f32 %v2491_v12, %v2521_v48 }
 0x60f   :  { %v2216_v51 = vpop.eup %2215 }
 0x610   :  { %v332_v52 = vmul.f32 %v2216_v51, %v330_v49  ;;  %vm337_vm10 = vweird.f32 %v2216_v51 }
 0x611   :  { %vm338_vm12 = vmor %vm336_vm11, %vm337_vm10 }
 0x612   :  { %v333_v53 = vsub.f32 1.0, %v332_v52 }
 0x614   :  { %v334_v55 = vmul.f32 %v2216_v51, %v333_v53 }
 0x616   :  { %v335_v56 = vadd.f32 %v2216_v51, %v334_v55 }
 0x618   :  { %v339_v59 = vsel %vm338_vm12, %v2216_v51, %v335_v56 }
 0x619   :  { %v344_v61 = vsel %vm341_vm13, %v343_v60, %v339_v59 }
 0x658   :  { %v349_v46 = vpop.permute.xlu2 %348 }
 0x659   :  { %v351_v62 = vmul.f32 %v349_v46, %v344_v61 }
 0x65b   :  { %353 = vrot.lane.b32.xlu0 %v351_v62, %s2424_s20 }
 0x6cd   :  { %v354_v63 = vpop.permute.xlu0 %353 }
 0x6ce   :  { %v356_v3 = vadd.f32 %v354_v63, %v304_v43 }
 0x6d0   :  { %2217 = vtanh.f32 %v356_v3 }
 0x6d6   :  { %v2218_v4 = vpop.eup %2217 }
 0x6d7   :  { %v358_v6 = vsub.f32 %v289_v27, %v2218_v4 }
 0x6d9   :  { %360 = vrot.lane.b32.xlu1 %v358_v6, %s2431_s0 }
 0x74b   :  { %v361_v8 = vpop.permute.xlu1 %360 }
 0x74c   :  { %v363_v9 = vmul.f32 %v361_v8, %v344_v61 }
 0x74e   :  { %365 = vrot.lane.b32.xlu2 %v363_v9, %s2432_s2 }
 0x7a8   :  { %v366_v10 = vpop.permute.xlu2 %365 }
 0x7a9   :  { %v368_v11 = vadd.f32 %v2218_v4, %v366_v10 }
 0x7ab   :  { %v369_v13 = vpack.c.bf16 %v368_v11, %v368_v11 }
 0x7ad   :  { %387 = vrot.lane.b32.xlu0 %v369_v13, %s2424_s20 }
 0x81f   :  { %v388_v14 = vpop.permute.xlu0 %387 }
 0x820   :  { %2080 = vmatmul.msk.bf16.vlgmr.msrb.gmra.mxu3 %vm147_vm5, %v388_v14  ;;  %2115 = vmatmul.msk.bf16.vlgmr.msrb.gmra.mxu0 %vm147_vm5, %v388_v14 }
 0x821   :  { %714 = vmatpush.bf16.msrb.mxu3 %v2464_v0  ;;  %1249 = vmatpush.bf16.msrb.mxu0 %v2502_v39 }
 0x825   :  { %715 = vmatpush.bf16.msrb.mxu3 %v2468_v2  ;;  %1250 = vmatpush.bf16.msrb.mxu0 %v2506_v40 }
 0x89d   :  { %v2570_v15 = vpop.f32.mrf.mxu0 }
 0x8a3   :  { %v401_v16 = vpop.f32.mrf.mxu3 }
 0x8a4   :  { %v425_v17 = vadd.f32 %v401_v16, %v2487_v7  ;;  %v405_v21 = vadd.f32 %v401_v16, %v383_v20 }
 0x8a5   :  { %v950_v18 = vpop.f32.mrf.mxu0 }
 0x8a6   :  { %427 = vrot.lane.b32.xlu1 %v425_v17, %s2424_s20  ;;  %v2081_v0 = vmul.f32 -1.442695, %v405_v21 }
 0x8a8   :  { %2219 = vpow2.f32 %v2081_v0 }
 0x8ab   :  { %v403_v19 = vpop.f32.mrf.mxu3 }
 0x8ae   :  { %v2220_v22 = vpop.eup %2219 }
 0x8af   :  { %v409_v23 = vadd.f32 1.0, %v2220_v22 }
 0x8b1   :  { %2221 = vrcp.f32 %v409_v23  ;;  %v421_v28 = vand.u32 2147483648, %v409_v23  ;;  %vm415_vm15 = vweird.f32 %v409_v23  ;;  %v419_v29 = vand.u32 2147483647, %v409_v23 }
 0x8b3   :  { %v422_v32 = vor.u32 1.1754944e-38, %v421_v28  ;;  %vm420_vm1 = vcmp.eq.f32.partialorder %v419_v29, 8.507059e+37 }
 0x8b7   :  { %v2222_v2 = vpop.eup %2221 }
 0x8b8   :  { %v411_v24 = vmul.f32 %v2222_v2, %v409_v23  ;;  %vm416_vm14 = vweird.f32 %v2222_v2 }
 0x8b9   :  { %vm417_vm0 = vmor %vm415_vm15, %vm416_vm14 }
 0x8ba   :  { %v412_v25 = vsub.f32 1.0, %v411_v24 }
 0x8bc   :  { %v413_v26 = vmul.f32 %v2222_v2, %v412_v25 }
 0x8be   :  { %v414_v27 = vadd.f32 %v2222_v2, %v413_v26 }
 0x8c0   :  { %v418_v30 = vsel %vm417_vm0, %v2222_v2, %v414_v27  ;;  %v541_v27 = vadd.f32 %v2491_v12, %v2544_v31 }
 0x8c1   :  { %v423_v33 = vsel %vm420_vm1, %v422_v32, %v418_v30 }
 0x918   :  { %v428_v1 = vpop.permute.xlu1 %427 }
 0x919   :  { %v430_v35 = vmul.f32 %v428_v1, %v423_v33 }
 0x91b   :  { %432 = vrot.lane.b32.xlu2 %v430_v35, %s2424_s20 }
 0x975   :  { %v433_v37 = vpop.permute.xlu2 %432 }
 0x976   :  { %v435_v38 = vadd.f32 %v433_v37, %v383_v20 }
 0x978   :  { %2223 = vtanh.f32 %v435_v38 }
 0x97e   :  { %v2224_v41 = vpop.eup %2223 }
 0x97f   :  { %v437_v42 = vsub.f32 %v368_v11, %v2224_v41 }
 0x981   :  { %439 = vrot.lane.b32.xlu0 %v437_v42, %s2431_s0 }
 0x9f3   :  { %v440_v43 = vpop.permute.xlu0 %439 }
 0x9f4   :  { %v442_v44 = vmul.f32 %v440_v43, %v423_v33 }
 0x9f6   :  { %444 = vrot.lane.b32.xlu1 %v442_v44, %s2432_s2 }
 0xa68   :  { %v445_v45 = vpop.permute.xlu1 %444 }
 0xa69   :  { %v447_v47 = vadd.f32 %v2224_v41, %v445_v45 }
 0xa6b   :  { %v448_v49 = vpack.c.bf16 %v447_v47, %v447_v47 }
 0xa6d   :  { %466 = vrot.lane.b32.xlu2 %v448_v49, %s2424_s20 }
 0xac7   :  { %v467_v51 = vpop.permute.xlu2 %466 }
 0xac8   :  { %2083 = vmatmul.msk.bf16.vlgmr.msra.gmra.mxu2 %vm147_vm5, %v467_v51  ;;  %2118 = vmatmul.msk.bf16.vlgmr.msrb.gmra.mxu1 %vm147_vm5, %v467_v51 }
 0xac9   :  { %1331 = vmatpush.bf16.msrb.mxu1 %v2502_v39 }
 0xacd   :  { %1332 = vmatpush.bf16.msrb.mxu1 %v2506_v40 }
 0xb45   :  { %v2584_v52 = vpop.f32.mrf.mxu1 }
 0xb4b   :  { %v480_v53 = vpop.f32.mrf.mxu2 }
 0xb4c   :  { %v504_v55 = vadd.f32 %v480_v53, %v2487_v7  ;;  %v484_v59 = vadd.f32 %v480_v53, %v462_v58 }
 0xb4d   :  { %v1026_v56 = vpop.f32.mrf.mxu1 }
 0xb4e   :  { %506 = vrot.lane.b32.xlu0 %v504_v55, %s2424_s20  ;;  %v2084_v60 = vmul.f32 -1.442695, %v484_v59 }
 0xb50   :  { %2225 = vpow2.f32 %v2084_v60 }
 0xb53   :  { %v482_v57 = vpop.f32.mrf.mxu2 }
 0xb56   :  { %v2226_v46 = vpop.eup %2225 }
 0xb57   :  { %v488_v61 = vadd.f32 1.0, %v2226_v46  ;;  %v2610_v46 = vld [vmem:[#allocation4 + $0x30] sm:$0xff] }
 0xb58   :  { %808 = vmatpush.bf16.msra.mxu2 %v2610_v46 }
 0xb59   :  { %2227 = vrcp.f32 %v488_v61  ;;  %v500_v4 = vand.u32 2147483648, %v488_v61  ;;  %vm494_vm3 = vweird.f32 %v488_v61  ;;  %v498_v6 = vand.u32 2147483647, %v488_v61 }
 0xb5b   :  { %v501_v9 = vor.u32 1.1754944e-38, %v500_v4  ;;  %vm499_vm6 = vcmp.eq.f32.partialorder %v498_v6, 8.507059e+37 }
 0xb5f   :  { %v2228_v39 = vpop.eup %2227 }
 0xb60   :  { %v490_v40 = vmul.f32 %v2228_v39, %v488_v61  ;;  %vm495_vm2 = vweird.f32 %v2228_v39  ;;  %v2613_v61 = vld [vmem:[#allocation4 + $0x28] sm:$0xff] }
 0xb61   :  { %vm496_vm4 = vmor %vm494_vm3, %vm495_vm2  ;;  %809 = vmatpush.bf16.msra.mxu2 %v2613_v61 }
 0xb62   :  { %v491_v62 = vsub.f32 1.0, %v490_v40 }
 0xb64   :  { %v492_v63 = vmul.f32 %v2228_v39, %v491_v62 }
 0xb66   :  { %v493_v3 = vadd.f32 %v2228_v39, %v492_v63 }
 0xb68   :  { %v497_v8 = vsel %vm496_vm4, %v2228_v39, %v493_v3  ;;  %v2196_v39 = vld [vmem:[#allocation6 + $0x4] ss:$0 sm:$0xff] }
 0xb69   :  { %v502_v10 = vsel %vm499_vm6, %v501_v9, %v497_v8 }
 0xbc0   :  { %v507_v48 = vpop.permute.xlu0 %506 }
 0xbc1   :  { %v509_v11 = vmul.f32 %v507_v48, %v502_v10 }
 0xbc3   :  { %511 = vrot.lane.b32.xlu1 %v509_v11, %s2424_s20  ;;  %v620_v11 = vadd.f32 %v2491_v12, %v2523_v50 }
 0xc35   :  { %v512_v13 = vpop.permute.xlu1 %511 }
 0xc36   :  { %v514_v14 = vadd.f32 %v512_v13, %v462_v58 }
 0xc38   :  { %2229 = vtanh.f32 %v514_v14 }
 0xc3e   :  { %v2230_v16 = vpop.eup %2229 }
 0xc3f   :  { %v516_v17 = vsub.f32 %v447_v47, %v2230_v16 }
 0xc41   :  { %518 = vrot.lane.b32.xlu2 %v516_v17, %s2431_s0 }
 0xc9b   :  { %v519_v18 = vpop.permute.xlu2 %518 }
 0xc9c   :  { %v521_v19 = vmul.f32 %v519_v18, %v502_v10 }
 0xc9e   :  { %523 = vrot.lane.b32.xlu0 %v521_v19, %s2432_s2 }
 0xd10   :  { %v524_v20 = vpop.permute.xlu0 %523 }
 0xd11   :  { %v526_v21 = vadd.f32 %v2230_v16, %v524_v20  ;;  %v2636_v20 = vld [vmem:[#allocation6 + $0x1] ss:$0 sm:$0xff] }
 0xd13   :  { %v527_v0 = vpack.c.bf16 %v526_v21, %v526_v21 }
 0xd15   :  { %545 = vrot.lane.b32.xlu1 %v527_v0, %s2424_s20  ;;  %v787_v0 = vadd.f32 %v2636_v20, %v2525_v54 }
 0xd87   :  { %v546_v22 = vpop.permute.xlu1 %545 }
 0xd88   :  { %2086 = vmatmul.msk.bf16.vlgmr.msra.gmra.mxu3 %vm147_vm5, %v546_v22  ;;  %2121 = vmatmul.msk.bf16.vlgmr.msra.gmra.mxu0 %vm147_vm5, %v546_v22 }
 0xd89   :  { %888 = vmatpush.bf16.msra.mxu3 %v2610_v46 }
 0xd8d   :  { %889 = vmatpush.bf16.msra.mxu3 %v2613_v61 }
 0xe05   :  { %v2596_v23 = vpop.f32.mrf.mxu0 }
 0xe0b   :  { %v559_v2 = vpop.f32.mrf.mxu3 }
 0xe0c   :  { %v583_v24 = vadd.f32 %v559_v2, %v2487_v7  ;;  %v563_v28 = vadd.f32 %v559_v2, %v541_v27 }
 0xe0d   :  { %v1102_v25 = vpop.f32.mrf.mxu0 }
 0xe0e   :  { %585 = vrot.lane.b32.xlu2 %v583_v24, %s2424_s20  ;;  %v2087_v29 = vmul.f32 -1.442695, %v563_v28 }
 0xe10   :  { %2231 = vpow2.f32 %v2087_v29 }
 0xe13   :  { %v561_v26 = vpop.f32.mrf.mxu3 }
 0xe16   :  { %v2232_v30 = vpop.eup %2231 }
 0xe17   :  { %v567_v32 = vadd.f32 1.0, %v2232_v30 }
 0xe19   :  { %2233 = vrcp.f32 %v567_v32  ;;  %v579_v41 = vand.u32 2147483648, %v567_v32  ;;  %vm573_vm8 = vweird.f32 %v567_v32  ;;  %v577_v42 = vand.u32 2147483647, %v567_v32 }
 0xe1b   :  { %v580_v44 = vor.u32 1.1754944e-38, %v579_v41  ;;  %vm578_vm10 = vcmp.eq.f32.partialorder %v577_v42, 8.507059e+37 }
 0xe1f   :  { %v2234_v1 = vpop.eup %2233 }
 0xe20   :  { %v569_v33 = vmul.f32 %v2234_v1, %v567_v32  ;;  %vm574_vm7 = vweird.f32 %v2234_v1 }
 0xe21   :  { %vm575_vm9 = vmor %vm573_vm8, %vm574_vm7 }
 0xe22   :  { %v570_v35 = vsub.f32 1.0, %v569_v33 }
 0xe24   :  { %v571_v37 = vmul.f32 %v2234_v1, %v570_v35 }
 0xe26   :  { %v572_v38 = vadd.f32 %v2234_v1, %v571_v37 }
 0xe28   :  { %v576_v43 = vsel %vm575_vm9, %v2234_v1, %v572_v38 }
 0xe29   :  { %v581_v45 = vsel %vm578_vm10, %v580_v44, %v576_v43 }
 0xe68   :  { %v586_v31 = vpop.permute.xlu2 %585 }
 0xe69   :  { %v588_v47 = vmul.f32 %v586_v31, %v581_v45 }
 0xe6b   :  { %590 = vrot.lane.b32.xlu0 %v588_v47, %s2424_s20 }
 0xedd   :  { %v591_v49 = vpop.permute.xlu0 %590 }
 0xede   :  { %v593_v51 = vadd.f32 %v591_v49, %v541_v27 }
 0xee0   :  { %2235 = vtanh.f32 %v593_v51 }
 0xee6   :  { %v2236_v53 = vpop.eup %2235 }
 0xee7   :  { %v595_v55 = vsub.f32 %v526_v21, %v2236_v53 }
 0xee9   :  { %597 = vrot.lane.b32.xlu1 %v595_v55, %s2431_s0 }
 0xef1   :  { %836 = vrot.lane.b32.xlu1 %v2196_v39, %s2424_s20 }
 0xf5b   :  { %v598_v56 = vpop.permute.xlu1 %597 }
 0xf5c   :  { %v600_v57 = vmul.f32 %v598_v56, %v581_v45 }
 0xf5e   :  { %602 = vrot.lane.b32.xlu2 %v600_v57, %s2432_s2 }
 0xf63   :  { %v2630_v8 = vpop.permute.xlu1 %836 }
 0xfb8   :  { %v603_v58 = vpop.permute.xlu2 %602 }
 0xfb9   :  { %v2605_v59 = vadd.f32 %v2236_v53, %v603_v58 }
 0xfbb   :  { %v606_v60 = vpack.c.bf16 %v2605_v59, %v2605_v59 }
 0xfbd   :  { %624 = vrot.lane.b32.xlu0 %v606_v60, %s2424_s20 }
0x102f   :  { %v625_v40 = vpop.permute.xlu0 %624 }
0x1030   :  { %2089 = vmatmul.msk.bf16.vlgmr.msrb.gmra.mxu2 %vm147_vm5, %v625_v40  ;;  %2124 = vmatmul.msk.bf16.vlgmr.msra.gmra.mxu1 %vm147_vm5, %v625_v40 }
0x1031   :  { %964 = vmatpush.bf16.msrb.mxu2 %v2610_v46 }
0x1035   :  { %965 = vmatpush.bf16.msrb.mxu2 %v2613_v61 }
0x1040   :  { %810 = vmatmul.bf16.vlgmr.msra.gmra.mxu2 %v2430_v5 }
0x1041   :  { %1116 = vmatpush.bf16.msra.mxu2 %v2610_v46 }
0x1045   :  { %1117 = vmatpush.bf16.msra.mxu2 %v2613_v61 }
0x10ad   :  { %v2626_v62 = vpop.f32.mrf.mxu1 }
0x10b3   :  { %v638_v63 = vpop.f32.mrf.mxu2 }
0x10b4   :  { %v662_v3 = vadd.f32 %v638_v63, %v2487_v7  ;;  %v642_v13 = vadd.f32 %v638_v63, %v620_v11 }
0x10b5   :  { %v1178_v4 = vpop.f32.mrf.mxu1 }
0x10b6   :  { %664 = vrot.lane.b32.xlu2 %v662_v3, %s2424_s20  ;;  %v2090_v14 = vmul.f32 -1.442695, %v642_v13  ;;  %v2656_v13 = vld [vmem:[#allocation4 + $0x38] sm:$0xff] }
0x10b8   :  { %2237 = vpow2.f32 %v2090_v14 }
0x10bb   :  { %v640_v6 = vpop.f32.mrf.mxu2 }
0x10be   :  { %v2238_v16 = vpop.eup %2237 }
0x10bf   :  { %v646_v17 = vadd.f32 1.0, %v2238_v16 }
0x10c1   :  { %2239 = vrcp.f32 %v646_v17  ;;  %v658_v25 = vand.u32 2147483648, %v646_v17  ;;  %vm652_vm12 = vweird.f32 %v646_v17  ;;  %v656_v50 = vand.u32 2147483647, %v646_v17 }
0x10c3   :  { %v811_v9 = vpop.f32.mrf.mxu2  ;;  %v659_v27 = vor.u32 1.1754944e-38, %v658_v25  ;;  %vm657_vm14 = vcmp.eq.f32.partialorder %v656_v50, 8.507059e+37 }
0x10c4   :  { %v839_v48 = vadd.f32 %v2630_v8, %v811_v9  ;;  %v815_v2 = vadd.f32 %v811_v9, %v787_v0 }
0x10c6   :  { %841 = vrot.lane.b32.xlu0 %v839_v48, %s2424_s20  ;;  %v2111_v12 = vmul.f32 -1.442695, %v815_v2 }
0x10c7   :  { %v2240_v18 = vpop.eup %2239 }
0x10c8   :  { %v648_v19 = vmul.f32 %v2240_v18, %v646_v17  ;;  %vm653_vm11 = vweird.f32 %v2240_v18  ;;  %2241 = vpow2.f32 %v2111_v12  ;;  %v873_v12 = vadd.f32 %v2636_v20, %v2554_v36 }
0x10c9   :  { %vm654_vm13 = vmor %vm652_vm12, %vm653_vm11 }
0x10ca   :  { %v649_v21 = vsub.f32 1.0, %v648_v19 }
0x10cb   :  { %v813_v10 = vpop.f32.mrf.mxu2 }
0x10cc   :  { %v650_v22 = vmul.f32 %v2240_v18, %v649_v21 }
0x10ce   :  { %v651_v24 = vadd.f32 %v2240_v18, %v650_v22  ;;  %v2242_v32 = vpop.eup %2241 }
0x10cf   :  { %v819_v54 = vadd.f32 1.0, %v2242_v32 }
0x10d0   :  { %v655_v26 = vsel %vm654_vm13, %v2240_v18, %v651_v24 }
0x10d1   :  { %v660_v29 = vsel %vm657_vm14, %v659_v27, %v655_v26  ;;  %2243 = vrcp.f32 %v819_v54  ;;  %v831_v41 = vand.u32 2147483648, %v819_v54  ;;  %vm825_vm0 = vweird.f32 %v819_v54 }
0x10d2   :  { %v829_v42 = vand.u32 2147483647, %v819_v54 }
0x10d3   :  { %v832_v44 = vor.u32 1.1754944e-38, %v831_v41 }
0x10d4   :  { %vm830_vm2 = vcmp.eq.f32.partialorder %v829_v42, 8.507059e+37 }
0x10d7   :  { %v2244_v1 = vpop.eup %2243 }
0x10d8   :  { %v821_v33 = vmul.f32 %v2244_v1, %v819_v54  ;;  %vm826_vm15 = vweird.f32 %v2244_v1 }
0x10d9   :  { %vm827_vm1 = vmor %vm825_vm0, %vm826_vm15 }
0x10da   :  { %v822_v35 = vsub.f32 1.0, %v821_v33 }
0x10dc   :  { %v823_v37 = vmul.f32 %v2244_v1, %v822_v35 }
0x10de   :  { %v824_v38 = vadd.f32 %v2244_v1, %v823_v37 }
0x10e0   :  { %v828_v43 = vsel %vm827_vm1, %v2244_v1, %v824_v38 }
0x10e1   :  { %v833_v31 = vsel %vm830_vm2, %v832_v44, %v828_v43 }
0x1110   :  { %v665_v28 = vpop.permute.xlu2 %664 }
0x1111   :  { %v667_v30 = vmul.f32 %v665_v28, %v660_v29 }
0x1113   :  { %669 = vrot.lane.b32.xlu1 %v667_v30, %s2424_s20 }
0x1138   :  { %v842_v45 = vpop.permute.xlu0 %841 }
0x1139   :  { %v844_v47 = vmul.f32 %v842_v45, %v833_v31 }
0x113b   :  { %846 = vrot.lane.b32.xlu2 %v844_v47, %s2424_s20 }
0x1185   :  { %v670_v49 = vpop.permute.xlu1 %669 }
0x1186   :  { %v672_v51 = vadd.f32 %v670_v49, %v620_v11  ;;  %v2653_v11 = vld [vmem:[#allocation4 + $0x40] sm:$0xff] }
0x1187   :  { %1419 = vmatpush.bf16.msra.mxu0 %v2653_v11  ;;  %1505 = vmatpush.bf16.msra.mxu1 %v2653_v11 }
0x1188   :  { %2245 = vtanh.f32 %v672_v51 }
0x118b   :  { %1420 = vmatpush.bf16.msra.mxu0 %v2656_v13  ;;  %1506 = vmatpush.bf16.msra.mxu1 %v2656_v13 }
0x118e   :  { %v2246_v53 = vpop.eup %2245 }
0x118f   :  { %v674_v55 = vsub.f32 %v2605_v59, %v2246_v53 }
0x1191   :  { %676 = vrot.lane.b32.xlu0 %v674_v55, %s2431_s0 }
0x1195   :  { %v847_v56 = vpop.permute.xlu2 %846 }
0x1196   :  { %v849_v57 = vadd.f32 %v847_v56, %v787_v0 }
0x1198   :  { %2247 = vtanh.f32 %v849_v57 }
0x119e   :  { %v2248_v58 = vpop.eup %2247 }
0x119f   :  { %v851_v60 = vsub.f32 0.0, %v2248_v58 }
0x11a1   :  { %853 = vrot.lane.b32.xlu1 %v851_v60, %s2431_s0 }
0x1203   :  { %v677_v39 = vpop.permute.xlu0 %676 }
0x1204   :  { %v679_v40 = vmul.f32 %v677_v39, %v660_v29  ;;  %v949_v39 = vadd.f32 %v2636_v20, %v2570_v15 }
0x1206   :  { %681 = vrot.lane.b32.xlu2 %v679_v40, %s2432_s2 }
0x1213   :  { %v854_v63 = vpop.permute.xlu1 %853 }
0x1214   :  { %v856_v3 = vmul.f32 %v854_v63, %v833_v31 }
0x1216   :  { %858 = vrot.lane.b32.xlu0 %v856_v3, %s2432_s2 }
0x1260   :  { %v682_v4 = vpop.permute.xlu2 %681 }
0x1261   :  { %v2647_v6 = vadd.f32 %v2246_v53, %v682_v4 }
0x1263   :  { %v685_v59 = vpack.c.bf16 %v2647_v6, %v2647_v6 }
0x1265   :  { %703 = vrot.lane.b32.xlu1 %v685_v59, %s2424_s20 }
0x1288   :  { %v859_v9 = vpop.permute.xlu0 %858 }
0x1289   :  { %v861_v48 = vadd.f32 %v2248_v58, %v859_v9 }
0x128b   :  { %v862_v10 = vpack.c.bf16 %v861_v48, %v861_v48 }
0x128d   :  { %877 = vrot.lane.b32.xlu2 %v862_v10, %s2424_s20 }
0x12d7   :  { %v704_v14 = vpop.permute.xlu1 %703 }
0x12d8   :  { %2092 = vmatmul.msk.bf16.vlgmr.msrb.gmra.mxu3 %vm147_vm5, %v704_v14  ;;  %2127 = vmatmul.msk.bf16.vlgmr.msrb.gmra.mxu0 %vm147_vm5, %v704_v14 }
0x12d9   :  { %1040 = vmatpush.bf16.msrb.mxu3 %v2610_v46  ;;  %1581 = vmatpush.bf16.msrb.mxu0 %v2653_v11 }
0x12dd   :  { %1041 = vmatpush.bf16.msrb.mxu3 %v2613_v61  ;;  %1582 = vmatpush.bf16.msrb.mxu0 %v2656_v13 }
0x12e7   :  { %v878_v16 = vpop.permute.xlu2 %877 }
0x12e8   :  { %2113 = vmatmul.msk.bf16.vlgmr.msra.gmra.mxu3 %vm147_vm5, %v878_v16  ;;  %2141 = vmatmul.msk.bf16.vlgmr.msra.gmra.mxu0 %vm147_vm5, %v878_v16 }
0x12e9   :  { %1192 = vmatpush.bf16.msra.mxu3 %v2610_v46  ;;  %1733 = vmatpush.bf16.msra.mxu0 %v2653_v11 }
0x12ed   :  { %1193 = vmatpush.bf16.msra.mxu3 %v2613_v61  ;;  %1734 = vmatpush.bf16.msra.mxu0 %v2656_v13 }
0x1355   :  { %v2673_v17 = vpop.f32.mrf.mxu0 }
0x135b   :  { %v2675_v18 = vpop.f32.mrf.mxu3 }
0x135d   :  { %v1254_v19 = vpop.f32.mrf.mxu0 }
0x1363   :  { %v719_v21 = vpop.f32.mrf.mxu3 }
0x1365   :  { %v2677_v0 = vpop.f32.mrf.mxu0 }
0x136b   :  { %v891_v22 = vpop.f32.mrf.mxu3 }
0x136c   :  { %v915_v2 = vadd.f32 %v891_v22, %v2630_v8  ;;  %v895_v50 = vadd.f32 %v891_v22, %v873_v12 }
0x136d   :  { %v1424_v24 = vpop.f32.mrf.mxu0 }
0x136e   :  { %917 = vrot.lane.b32.xlu0 %v915_v2, %s2424_s20  ;;  %v2114_v26 = vmul.f32 -1.442695, %v895_v50 }
0x1370   :  { %2249 = vpow2.f32 %v2114_v26 }
0x1373   :  { %v893_v25 = vpop.f32.mrf.mxu3 }
0x1376   :  { %v2250_v27 = vpop.eup %2249 }
0x1377   :  { %v899_v28 = vadd.f32 1.0, %v2250_v27 }
0x1379   :  { %2251 = vrcp.f32 %v899_v28  ;;  %v911_v33 = vand.u32 2147483648, %v899_v28  ;;  %vm905_vm4 = vweird.f32 %v899_v28  ;;  %v909_v35 = vand.u32 2147483647, %v899_v28 }
0x137b   :  { %v912_v38 = vor.u32 1.1754944e-38, %v911_v33  ;;  %vm910_vm7 = vcmp.eq.f32.partialorder %v909_v35, 8.507059e+37 }
0x137f   :  { %v2252_v29 = vpop.eup %2251 }
0x1380   :  { %v901_v30 = vmul.f32 %v2252_v29, %v899_v28  ;;  %vm906_vm3 = vweird.f32 %v2252_v29 }
0x1381   :  { %vm907_vm6 = vmor %vm905_vm4, %vm906_vm3 }
0x1382   :  { %v902_v32 = vsub.f32 1.0, %v901_v30 }
0x1384   :  { %v903_v54 = vmul.f32 %v2252_v29, %v902_v32 }
0x1386   :  { %v904_v1 = vadd.f32 %v2252_v29, %v903_v54 }
0x1388   :  { %v908_v37 = vsel %vm907_vm6, %v2252_v29, %v904_v1 }
0x1389   :  { %v913_v41 = vsel %vm910_vm7, %v912_v38, %v908_v37 }
0x13e0   :  { %v918_v36 = vpop.permute.xlu0 %917 }
0x13e1   :  { %v920_v42 = vmul.f32 %v918_v36, %v913_v41  ;;  %v1025_v36 = vadd.f32 %v2636_v20, %v2584_v52 }
0x13e3   :  { %922 = vrot.lane.b32.xlu1 %v920_v42, %s2424_s20 }
0x1455   :  { %v923_v43 = vpop.permute.xlu1 %922 }
0x1456   :  { %v925_v44 = vadd.f32 %v923_v43, %v873_v12 }
0x1458   :  { %2253 = vtanh.f32 %v925_v44 }
0x145e   :  { %v2254_v31 = vpop.eup %2253 }
0x145f   :  { %v927_v45 = vsub.f32 %v861_v48, %v2254_v31 }
0x1461   :  { %929 = vrot.lane.b32.xlu2 %v927_v45, %s2431_s0 }
0x14bb   :  { %v930_v47 = vpop.permute.xlu2 %929 }
0x14bc   :  { %v932_v49 = vmul.f32 %v930_v47, %v913_v41 }
0x14be   :  { %934 = vrot.lane.b32.xlu0 %v932_v49, %s2432_s2 }
0x1530   :  { %v935_v51 = vpop.permute.xlu0 %934 }
0x1531   :  { %v937_v53 = vadd.f32 %v2254_v31, %v935_v51 }
0x1533   :  { %v938_v55 = vpack.c.bf16 %v937_v53, %v937_v53 }
0x1535   :  { %953 = vrot.lane.b32.xlu1 %v938_v55, %s2424_s20 }
0x15a7   :  { %v2687_v56 = vpop.permute.xlu1 %953 }
0x15a8   :  { %2116 = vmatmul.msk.bf16.vlgmr.msrb.gmra.mxu2 %vm147_vm5, %v2687_v56 }
0x15a9   :  { %1268 = vmatpush.bf16.msrb.mxu2 %v2610_v46 }
0x15ad   :  { %1269 = vmatpush.bf16.msrb.mxu2 %v2613_v61 }
0x162b   :  { %v967_v57 = vpop.f32.mrf.mxu2 }
0x162c   :  { %v991_v58 = vadd.f32 %v967_v57, %v2630_v8  ;;  %v971_v40 = vadd.f32 %v967_v57, %v949_v39 }
0x162e   :  { %993 = vrot.lane.b32.xlu2 %v991_v58, %s2424_s20  ;;  %v2117_v63 = vmul.f32 -1.442695, %v971_v40 }
0x1630   :  { %2255 = vpow2.f32 %v2117_v63 }
0x1633   :  { %v969_v60 = vpop.f32.mrf.mxu2 }
0x1636   :  { %v2256_v3 = vpop.eup %2255 }
0x1637   :  { %v975_v4 = vadd.f32 1.0, %v2256_v3 }
0x1639   :  { %2257 = vrcp.f32 %v975_v4  ;;  %v987_v16 = vand.u32 2147483648, %v975_v4  ;;  %vm981_vm9 = vweird.f32 %v975_v4  ;;  %v985_v19 = vand.u32 2147483647, %v975_v4 }
0x163b   :  { %v988_v22 = vor.u32 1.1754944e-38, %v987_v16  ;;  %vm986_vm11 = vcmp.eq.f32.partialorder %v985_v19, 8.507059e+37 }
0x163f   :  { %v2258_v59 = vpop.eup %2257 }
0x1640   :  { %v977_v9 = vmul.f32 %v2258_v59, %v975_v4  ;;  %vm982_vm8 = vweird.f32 %v2258_v59 }
0x1641   :  { %vm983_vm10 = vmor %vm981_vm9, %vm982_vm8 }
0x1642   :  { %v978_v48 = vsub.f32 1.0, %v977_v9 }
0x1644   :  { %v979_v10 = vmul.f32 %v2258_v59, %v978_v48 }
0x1646   :  { %v980_v14 = vadd.f32 %v2258_v59, %v979_v10 }
0x1648   :  { %v984_v21 = vsel %vm983_vm10, %v2258_v59, %v980_v14 }
0x1649   :  { %v989_v2 = vsel %vm986_vm11, %v988_v22, %v984_v21  ;;  %v1101_v21 = vadd.f32 %v2636_v20, %v2596_v23 }
0x1688   :  { %v994_v15 = vpop.permute.xlu2 %993 }
0x1689   :  { %v996_v24 = vmul.f32 %v994_v15, %v989_v2 }
0x168b   :  { %998 = vrot.lane.b32.xlu0 %v996_v24, %s2424_s20 }
0x16fd   :  { %v999_v25 = vpop.permute.xlu0 %998 }
0x16fe   :  { %v1001_v12 = vadd.f32 %v999_v25, %v949_v39 }
0x1700   :  { %2259 = vtanh.f32 %v1001_v12 }
0x1706   :  { %v2260_v50 = vpop.eup %2259 }
0x1707   :  { %v1003_v26 = vsub.f32 %v937_v53, %v2260_v50 }
0x1709   :  { %1005 = vrot.lane.b32.xlu1 %v1003_v26, %s2431_s0 }
0x177b   :  { %v1006_v27 = vpop.permute.xlu1 %1005 }
0x177c   :  { %v1008_v28 = vmul.f32 %v1006_v27, %v989_v2 }
0x177e   :  { %1010 = vrot.lane.b32.xlu2 %v1008_v28, %s2432_s2 }
0x17d8   :  { %v1011_v29 = vpop.permute.xlu2 %1010 }
0x17d9   :  { %v1013_v30 = vadd.f32 %v2260_v50, %v1011_v29 }
0x17db   :  { %v1014_v32 = vpack.c.bf16 %v1013_v30, %v1013_v30 }
0x17dd   :  { %1029 = vrot.lane.b32.xlu0 %v1014_v32, %s2424_s20 }
0x184f   :  { %v1030_v54 = vpop.permute.xlu0 %1029 }
0x1850   :  { %2119 = vmatmul.msk.bf16.vlgmr.msrb.gmra.mxu3 %vm147_vm5, %v1030_v54  ;;  %2154 = vmatmul.msk.bf16.vlgmr.msrb.gmra.mxu0 %vm147_vm5, %v1030_v54 }
0x1851   :  { %1350 = vmatpush.bf16.msrb.mxu3 %v2610_v46  ;;  %1885 = vmatpush.bf16.msrb.mxu0 %v2653_v11 }
0x1855   :  { %1351 = vmatpush.bf16.msrb.mxu3 %v2613_v61  ;;  %1886 = vmatpush.bf16.msrb.mxu0 %v2656_v13 }
0x18cd   :  { %v2707_v1 = vpop.f32.mrf.mxu0 }
0x18d3   :  { %v1043_v33 = vpop.f32.mrf.mxu3 }
0x18d4   :  { %v1067_v35 = vadd.f32 %v1043_v33, %v2630_v8  ;;  %v1047_v41 = vadd.f32 %v1043_v33, %v1025_v36 }
0x18d5   :  { %v1586_v37 = vpop.f32.mrf.mxu0 }
0x18d6   :  { %1069 = vrot.lane.b32.xlu1 %v1067_v35, %s2424_s20  ;;  %v2120_v46 = vmul.f32 -1.442695, %v1047_v41 }
0x18d8   :  { %2261 = vpow2.f32 %v2120_v46 }
0x18db   :  { %v1045_v38 = vpop.f32.mrf.mxu3 }
0x18de   :  { %v2262_v42 = vpop.eup %2261 }
0x18df   :  { %v1051_v43 = vadd.f32 1.0, %v2262_v42 }
0x18e1   :  { %2263 = vrcp.f32 %v1051_v43  ;;  %v1063_v49 = vand.u32 2147483648, %v1051_v43  ;;  %vm1057_vm13 = vweird.f32 %v1051_v43  ;;  %v1061_v51 = vand.u32 2147483647, %v1051_v43 }
0x18e3   :  { %v1064_v55 = vor.u32 1.1754944e-38, %v1063_v49  ;;  %vm1062_vm15 = vcmp.eq.f32.partialorder %v1061_v51, 8.507059e+37 }
0x18e7   :  { %v2264_v61 = vpop.eup %2263 }
0x18e8   :  { %v1053_v44 = vmul.f32 %v2264_v61, %v1051_v43  ;;  %vm1058_vm12 = vweird.f32 %v2264_v61 }
0x18e9   :  { %vm1059_vm14 = vmor %vm1057_vm13, %vm1058_vm12 }
0x18ea   :  { %v1054_v31 = vsub.f32 1.0, %v1053_v44 }
0x18ec   :  { %v1055_v45 = vmul.f32 %v2264_v61, %v1054_v31 }
0x18ee   :  { %v1056_v47 = vadd.f32 %v2264_v61, %v1055_v45 }
0x18f0   :  { %v1060_v53 = vsel %vm1059_vm14, %v2264_v61, %v1056_v47 }
0x18f1   :  { %v1065_v57 = vsel %vm1062_vm15, %v1064_v55, %v1060_v53  ;;  %v1177_v53 = vadd.f32 %v2636_v20, %v2626_v62 }
0x1948   :  { %v1070_v52 = vpop.permute.xlu1 %1069 }
0x1949   :  { %v1072_v58 = vmul.f32 %v1070_v52, %v1065_v57 }
0x194b   :  { %1074 = vrot.lane.b32.xlu2 %v1072_v58, %s2424_s20 }
0x19a5   :  { %v1075_v60 = vpop.permute.xlu2 %1074 }
0x19a6   :  { %v1077_v39 = vadd.f32 %v1075_v60, %v1025_v36 }
0x19a8   :  { %2265 = vtanh.f32 %v1077_v39 }
0x19ae   :  { %v2266_v40 = vpop.eup %2265 }
0x19af   :  { %v1079_v63 = vsub.f32 %v1013_v30, %v2266_v40 }
0x19b1   :  { %1081 = vrot.lane.b32.xlu0 %v1079_v63, %s2431_s0 }
0x1a23   :  { %v1082_v3 = vpop.permute.xlu0 %1081 }
0x1a24   :  { %v1084_v4 = vmul.f32 %v1082_v3, %v1065_v57 }
0x1a26   :  { %1086 = vrot.lane.b32.xlu1 %v1084_v4, %s2432_s2 }
0x1a98   :  { %v1087_v59 = vpop.permute.xlu1 %1086 }
0x1a99   :  { %v1089_v9 = vadd.f32 %v2266_v40, %v1087_v59 }
0x1a9b   :  { %v1090_v48 = vpack.c.bf16 %v1089_v9, %v1089_v9 }
0x1a9d   :  { %1105 = vrot.lane.b32.xlu2 %v1090_v48, %s2424_s20 }
0x1af7   :  { %v2717_v10 = vpop.permute.xlu2 %1105 }
0x1af8   :  { %2122 = vmatmul.msk.bf16.vlgmr.msra.gmra.mxu2 %vm147_vm5, %v2717_v10 }
0x1b7b   :  { %v1119_v14 = vpop.f32.mrf.mxu2 }
0x1b7c   :  { %v1143_v16 = vadd.f32 %v1119_v14, %v2630_v8  ;;  %v1123_v22 = vadd.f32 %v1119_v14, %v1101_v21 }
0x1b7e   :  { %1145 = vrot.lane.b32.xlu0 %v1143_v16, %s2424_s20  ;;  %v2123_v15 = vmul.f32 -1.442695, %v1123_v22 }
0x1b80   :  { %2267 = vpow2.f32 %v2123_v15 }
0x1b83   :  { %v1121_v19 = vpop.f32.mrf.mxu2 }
0x1b86   :  { %v2268_v2 = vpop.eup %2267 }
0x1b87   :  { %v1127_v24 = vadd.f32 1.0, %v2268_v2 }
0x1b89   :  { %2269 = vrcp.f32 %v1127_v24  ;;  %v1139_v28 = vand.u32 2147483648, %v1127_v24  ;;  %vm1133_vm1 = vweird.f32 %v1127_v24  ;;  %v1137_v29 = vand.u32 2147483647, %v1127_v24 }
0x1b8b   :  { %v1140_v32 = vor.u32 1.1754944e-38, %v1139_v28  ;;  %vm1138_vm3 = vcmp.eq.f32.partialorder %v1137_v29, 8.507059e+37 }
0x1b8f   :  { %v2270_v25 = vpop.eup %2269 }
0x1b90   :  { %v1129_v12 = vmul.f32 %v2270_v25, %v1127_v24  ;;  %vm1134_vm0 = vweird.f32 %v2270_v25 }
0x1b91   :  { %vm1135_vm2 = vmor %vm1133_vm1, %vm1134_vm0 }
0x1b92   :  { %v1130_v50 = vsub.f32 1.0, %v1129_v12 }
0x1b94   :  { %v1131_v26 = vmul.f32 %v2270_v25, %v1130_v50 }
0x1b96   :  { %v1132_v27 = vadd.f32 %v2270_v25, %v1131_v26  ;;  %v741_v26 = vadd.f32 %v2675_v18, %v2487_v7  ;;  %v2198_v7 = vld [vmem:[#allocation6 + $0x5] ss:$0 sm:$0xff] }
0x1b98   :  { %v1136_v30 = vsel %vm1135_vm2, %v2270_v25, %v1132_v27  ;;  %v2345_v27 = vld [vmem:[#allocation6] ss:$0 sm:$0xff] }
0x1b99   :  { %v1141_v54 = vsel %vm1138_vm3, %v1140_v32, %v1136_v30  ;;  %v699_v28 = vadd.f32 %v2345_v27, %v2552_v34  ;;  %v2750_v32 = vld [vmem:[#allocation4 + $0x50] sm:$0xff] }
0x1b9a   :  { %1444 = vmatpush.bf16.msra.mxu2 %v2750_v32 }
0x1b9b   :  { %v721_v29 = vadd.f32 %v2675_v18, %v699_v28 }
0x1b9d   :  { %v2093_v30 = vmul.f32 -1.442695, %v721_v29 }
0x1bf0   :  { %v1146_v23 = vpop.permute.xlu0 %1145 }
0x1bf1   :  { %v1148_v33 = vmul.f32 %v1146_v23, %v1141_v54 }
0x1bf3   :  { %1150 = vrot.lane.b32.xlu1 %v1148_v33, %s2424_s20  ;;  %v2754_v33 = vld [vmem:[#allocation4 + $0x48] sm:$0xff] }
0x1bf4   :  { %1445 = vmatpush.bf16.msra.mxu2 %v2754_v33 }
0x1c65   :  { %v1151_v35 = vpop.permute.xlu1 %1150 }
0x1c66   :  { %v1153_v37 = vadd.f32 %v1151_v35, %v1101_v21 }
0x1c68   :  { %2271 = vtanh.f32 %v1153_v37 }
0x1c6e   :  { %v2272_v38 = vpop.eup %2271 }
0x1c6f   :  { %v1155_v36 = vsub.f32 %v1089_v9, %v2272_v38 }
0x1c71   :  { %1157 = vrot.lane.b32.xlu2 %v1155_v36, %s2431_s0 }
0x1ccb   :  { %v1158_v41 = vpop.permute.xlu2 %1157 }
0x1ccc   :  { %v1160_v46 = vmul.f32 %v1158_v41, %v1141_v54 }
0x1cce   :  { %1162 = vrot.lane.b32.xlu0 %v1160_v46, %s2432_s2 }
0x1d40   :  { %v1163_v42 = vpop.permute.xlu0 %1162 }
0x1d41   :  { %v1165_v43 = vadd.f32 %v2272_v38, %v1163_v42 }
0x1d43   :  { %v1166_v61 = vpack.c.bf16 %v1165_v43, %v1165_v43 }
0x1d45   :  { %1181 = vrot.lane.b32.xlu1 %v1166_v61, %s2424_s20 }
0x1db7   :  { %v1182_v44 = vpop.permute.xlu1 %1181 }
0x1db8   :  { %2125 = vmatmul.msk.bf16.vlgmr.msra.gmra.mxu3 %vm147_vm5, %v1182_v44  ;;  %2160 = vmatmul.msk.bf16.vlgmr.msra.gmra.mxu0 %vm147_vm5, %v1182_v44 }
0x1db9   :  { %1524 = vmatpush.bf16.msra.mxu3 %v2750_v32 }
0x1dbd   :  { %1525 = vmatpush.bf16.msra.mxu3 %v2754_v33 }
0x1e35   :  { %v2731_v31 = vpop.f32.mrf.mxu0 }
0x1e3b   :  { %v1195_v45 = vpop.f32.mrf.mxu3 }
0x1e3c   :  { %v1219_v47 = vadd.f32 %v1195_v45, %v2630_v8  ;;  %v1199_v55 = vadd.f32 %v1195_v45, %v1177_v53 }
0x1e3d   :  { %v1738_v49 = vpop.f32.mrf.mxu0 }
0x1e3e   :  { %1221 = vrot.lane.b32.xlu2 %v1219_v47, %s2424_s20  ;;  %v2126_v52 = vmul.f32 -1.442695, %v1199_v55 }
0x1e40   :  { %2273 = vpow2.f32 %v2126_v52 }
0x1e43   :  { %v1197_v51 = vpop.f32.mrf.mxu3 }
0x1e46   :  { %v2274_v57 = vpop.eup %2273 }
0x1e47   :  { %v1203_v58 = vadd.f32 1.0, %v2274_v57 }
0x1e49   :  { %2275 = vrcp.f32 %v1203_v58  ;;  %v1215_v4 = vand.u32 2147483648, %v1203_v58  ;;  %vm1209_vm6 = vweird.f32 %v1203_v58  ;;  %v1213_v59 = vand.u32 2147483647, %v1203_v58 }
0x1e4b   :  { %v1216_v48 = vor.u32 1.1754944e-38, %v1215_v4  ;;  %vm1214_vm8 = vcmp.eq.f32.partialorder %v1213_v59, 8.507059e+37 }
0x1e4f   :  { %v2276_v60 = vpop.eup %2275 }
0x1e50   :  { %v1205_v39 = vmul.f32 %v2276_v60, %v1203_v58  ;;  %vm1210_vm4 = vweird.f32 %v2276_v60 }
0x1e51   :  { %vm1211_vm7 = vmor %vm1209_vm6, %vm1210_vm4 }
0x1e52   :  { %v1206_v40 = vsub.f32 1.0, %v1205_v39 }
0x1e54   :  { %v1207_v63 = vmul.f32 %v2276_v60, %v1206_v40  ;;  %v1253_v40 = vadd.f32 %v2636_v20, %v2673_v17 }
0x1e56   :  { %v1208_v3 = vadd.f32 %v2276_v60, %v1207_v63 }
0x1e58   :  { %v1212_v9 = vsel %vm1211_vm7, %v2276_v60, %v1208_v3 }
0x1e59   :  { %v1217_v14 = vsel %vm1214_vm8, %v1216_v48, %v1212_v9  ;;  %v2782_v48 = vld [vmem:[#allocation6 + $0x2] ss:$0 sm:$0xff] }
0x1e98   :  { %v1222_v62 = vpop.permute.xlu2 %1221 }
0x1e99   :  { %v1224_v16 = vmul.f32 %v1222_v62, %v1217_v14 }
0x1e9b   :  { %1226 = vrot.lane.b32.xlu0 %v1224_v16, %s2424_s20 }
0x1f0d   :  { %v1227_v19 = vpop.permute.xlu0 %1226 }
0x1f0e   :  { %v1229_v21 = vadd.f32 %v1227_v19, %v1177_v53 }
0x1f10   :  { %2277 = vtanh.f32 %v1229_v21 }
0x1f11   :  { %2279 = vpow2.f32 %v2093_v30 }
0x1f16   :  { %v2278_v22 = vpop.eup %2277 }
0x1f17   :  { %v1231_v15 = vsub.f32 %v1165_v43, %v2278_v22  ;;  %v2280_v23 = vpop.eup %2279 }
0x1f18   :  { %v725_v54 = vadd.f32 1.0, %v2280_v23 }
0x1f19   :  { %1233 = vrot.lane.b32.xlu1 %v1231_v15, %s2431_s0 }
0x1f1a   :  { %2281 = vrcp.f32 %v725_v54  ;;  %v737_v41 = vand.u32 2147483648, %v725_v54  ;;  %vm731_vm10 = vweird.f32 %v725_v54  ;;  %v735_v46 = vand.u32 2147483647, %v725_v54 }
0x1f1c   :  { %v738_v43 = vor.u32 1.1754944e-38, %v737_v41  ;;  %vm736_vm12 = vcmp.eq.f32.partialorder %v735_v46, 8.507059e+37 }
0x1f20   :  { %v2282_v34 = vpop.eup %2281 }
0x1f21   :  { %1472 = vrot.lane.b32.xlu1 %v2198_v7, %s2424_s20  ;;  %v727_v18 = vmul.f32 %v2282_v34, %v725_v54  ;;  %vm732_vm9 = vweird.f32 %v2282_v34 }
0x1f22   :  { %vm733_vm11 = vmor %vm731_vm10, %vm732_vm9 }
0x1f23   :  { %v728_v35 = vsub.f32 1.0, %v727_v18 }
0x1f25   :  { %v729_v37 = vmul.f32 %v2282_v34, %v728_v35 }
0x1f27   :  { %v730_v36 = vadd.f32 %v2282_v34, %v729_v37 }
0x1f29   :  { %v734_v42 = vsel %vm733_vm11, %v2282_v34, %v730_v36 }
0x1f2a   :  { %v739_v61 = vsel %vm736_vm12, %v738_v43, %v734_v42 }
0x1f8b   :  { %v1234_v2 = vpop.permute.xlu1 %1233 }
0x1f8c   :  { %v1236_v24 = vmul.f32 %v1234_v2, %v1217_v14  ;;  %v1423_v14 = vadd.f32 %v2782_v48, %v2677_v0 }
0x1f8e   :  { %1238 = vrot.lane.b32.xlu2 %v1236_v24, %s2432_s2 }
0x1f93   :  { %v2776_v57 = vpop.permute.xlu1 %1472 }
0x1fe8   :  { %v1239_v25 = vpop.permute.xlu2 %1238 }
0x1fe9   :  { %v2740_v12 = vadd.f32 %v2278_v22, %v1239_v25 }
0x1feb   :  { %v1242_v50 = vpack.c.bf16 %v2740_v12, %v2740_v12 }
0x1fed   :  { %1257 = vrot.lane.b32.xlu0 %v1242_v50, %s2424_s20 }
0x1ff5   :  { %743 = vrot.lane.b32.xlu0 %v741_v26, %s2424_s20 }
0x205f   :  { %v2759_v38 = vpop.permute.xlu0 %1257 }
0x2060   :  { %2128 = vmatmul.msk.bf16.vlgmr.msrb.gmra.mxu2 %vm147_vm5, %v2759_v38 }
0x2061   :  { %1600 = vmatpush.bf16.msrb.mxu2 %v2750_v32 }
0x2065   :  { %1601 = vmatpush.bf16.msrb.mxu2 %v2754_v33 }
0x2067   :  { %v744_v44 = vpop.permute.xlu0 %743 }
0x2068   :  { %v746_v45 = vmul.f32 %v744_v44, %v739_v61 }
0x206a   :  { %748 = vrot.lane.b32.xlu0 %v746_v45, %s2424_s20 }
0x2070   :  { %1446 = vmatmul.bf16.vlgmr.msra.gmra.mxu2 %v2430_v5 }
0x2071   :  { %1752 = vmatpush.bf16.msra.mxu2 %v2750_v32 }
0x2075   :  { %1753 = vmatpush.bf16.msra.mxu2 %v2754_v33 }
0x20dc   :  { %v749_v47 = vpop.permute.xlu0 %748 }
0x20dd   :  { %v751_v49 = vadd.f32 %v749_v47, %v699_v28 }
0x20df   :  { %2283 = vtanh.f32 %v751_v49 }
0x20e3   :  { %v1271_v51 = vpop.f32.mrf.mxu2 }
0x20e4   :  { %v1295_v53 = vadd.f32 %v1271_v51, %v2630_v8  ;;  %v1275_v63 = vadd.f32 %v1271_v51, %v1253_v40 }
0x20e5   :  { %v2770_v55 = vpop.eup %2283 }
0x20e6   :  { %1297 = vrot.lane.b32.xlu2 %v1295_v53, %s2424_s20  ;;  %v753_v52 = vsub.f32 %v2647_v6, %v2770_v55  ;;  %v2129_v3 = vmul.f32 -1.442695, %v1275_v63 }
0x20e8   :  { %755 = vrot.lane.b32.xlu0 %v753_v52, %s2431_s0  ;;  %2285 = vpow2.f32 %v2129_v3 }
0x20eb   :  { %v1273_v5 = vpop.f32.mrf.mxu2 }
0x20ee   :  { %v2286_v4 = vpop.eup %2285 }
0x20ef   :  { %v1279_v59 = vadd.f32 1.0, %v2286_v4 }
0x20f1   :  { %2287 = vrcp.f32 %v1279_v59  ;;  %v1291_v22 = vand.u32 2147483648, %v1279_v59  ;;  %vm1285_vm14 = vweird.f32 %v1279_v59  ;;  %v1289_v17 = vand.u32 2147483647, %v1279_v59 }
0x20f3   :  { %v1447_v58 = vpop.f32.mrf.mxu2  ;;  %v1292_v2 = vor.u32 1.1754944e-38, %v1291_v22  ;;  %vm1290_vm0 = vcmp.eq.f32.partialorder %v1289_v17, 8.507059e+37 }
0x20f4   :  { %v1475_v60 = vadd.f32 %v2776_v57, %v1447_v58  ;;  %v1451_v19 = vadd.f32 %v1447_v58, %v1423_v14 }
0x20f6   :  { %1477 = vrot.lane.b32.xlu1 %v1475_v60, %s2424_s20  ;;  %v2150_v20 = vmul.f32 -1.442695, %v1451_v19 }
0x20f7   :  { %v2288_v6 = vpop.eup %2287 }
0x20f8   :  { %v1281_v9 = vmul.f32 %v2288_v6, %v1279_v59  ;;  %vm1286_vm13 = vweird.f32 %v2288_v6  ;;  %2289 = vpow2.f32 %v2150_v20 }
0x20f9   :  { %vm1287_vm15 = vmor %vm1285_vm14, %vm1286_vm13 }
0x20fa   :  { %v1282_v62 = vsub.f32 1.0, %v1281_v9 }
0x20fb   :  { %v1449_v39 = vpop.f32.mrf.mxu2 }
0x20fc   :  { %v1283_v16 = vmul.f32 %v2288_v6, %v1282_v62 }
0x20fe   :  { %v1284_v21 = vadd.f32 %v2288_v6, %v1283_v16  ;;  %v2290_v26 = vpop.eup %2289 }
0x20ff   :  { %v1455_v0 = vadd.f32 1.0, %v2290_v26 }
0x2100   :  { %v1288_v15 = vsel %vm1287_vm15, %v2288_v6, %v1284_v21 }
0x2101   :  { %v1293_v25 = vsel %vm1290_vm0, %v1292_v2, %v1288_v15  ;;  %2291 = vrcp.f32 %v1455_v0  ;;  %v1467_v34 = vand.u32 2147483648, %v1455_v0  ;;  %vm1461_vm2 = vweird.f32 %v1455_v0 }
0x2102   :  { %v1465_v18 = vand.u32 2147483647, %v1455_v0 }
0x2103   :  { %v1468_v37 = vor.u32 1.1754944e-38, %v1467_v34 }
0x2104   :  { %vm1466_vm4 = vcmp.eq.f32.partialorder %v1465_v18, 8.507059e+37 }
0x2107   :  { %v2292_v27 = vpop.eup %2291 }
0x2108   :  { %v1457_v28 = vmul.f32 %v2292_v27, %v1455_v0  ;;  %vm1462_vm1 = vweird.f32 %v2292_v27 }
0x2109   :  { %vm1463_vm3 = vmor %vm1461_vm2, %vm1462_vm1 }
0x210a   :  { %v1458_v29 = vsub.f32 1.0, %v1457_v28 }
0x210c   :  { %v1459_v54 = vmul.f32 %v2292_v27, %v1458_v29 }
0x210e   :  { %v1460_v7 = vadd.f32 %v2292_v27, %v1459_v54 }
0x2110   :  { %v1464_v35 = vsel %vm1463_vm3, %v2292_v27, %v1460_v7 }
0x2111   :  { %v1469_v36 = vsel %vm1466_vm4, %v1468_v37, %v1464_v35 }
0x2140   :  { %v1298_v24 = vpop.permute.xlu2 %1297 }
0x2141   :  { %v1300_v50 = vmul.f32 %v1298_v24, %v1293_v25 }
0x2143   :  { %1302 = vrot.lane.b32.xlu2 %v1300_v50, %s2424_s20 }
0x215a   :  { %v756_v30 = vpop.permute.xlu0 %755 }
0x215b   :  { %v758_v23 = vmul.f32 %v756_v30, %v739_v61 }
0x215d   :  { %760 = vrot.lane.b32.xlu0 %v758_v23, %s2432_s2 }
0x2168   :  { %v1478_v41 = vpop.permute.xlu1 %1477 }
0x2169   :  { %v1480_v46 = vmul.f32 %v1478_v41, %v1469_v36 }
0x216b   :  { %1482 = vrot.lane.b32.xlu1 %v1480_v46, %s2424_s20 }
0x219d   :  { %v1303_v42 = vpop.permute.xlu2 %1302 }
0x219e   :  { %v1305_v43 = vadd.f32 %v1303_v42, %v1253_v40 }
0x21a0   :  { %2293 = vtanh.f32 %v1305_v43 }
0x21a6   :  { %v2294_v61 = vpop.eup %2293 }
0x21a7   :  { %v1307_v44 = vsub.f32 %v2740_v12, %v2294_v61 }
0x21a9   :  { %1309 = vrot.lane.b32.xlu2 %v1307_v44, %s2431_s0 }
0x21cf   :  { %v761_v45 = vpop.permute.xlu0 %760 }
0x21d0   :  { %v763_v47 = vadd.f32 %v2770_v55, %v761_v45 }
0x21d2   :  { %v764_v49 = vpack.c.bf16 %v763_v47, %v763_v47 }
0x21d4   :  { %1320 = vrot.lane.b32.xlu0 %v764_v49, %s2424_s20 }
0x21dd   :  { %v1483_v51 = vpop.permute.xlu1 %1482 }
0x21de   :  { %v1485_v53 = vadd.f32 %v1483_v51, %v1423_v14 }
0x21e0   :  { %2295 = vtanh.f32 %v1485_v53 }
0x21e6   :  { %v2296_v52 = vpop.eup %2295 }
0x21e7   :  { %v1487_v5 = vsub.f32 0.0, %v2296_v52 }
0x21e9   :  { %1489 = vrot.lane.b32.xlu1 %v1487_v5, %s2431_s0 }
0x2203   :  { %v1310_v58 = vpop.permute.xlu2 %1309 }
0x2204   :  { %v1312_v60 = vmul.f32 %v1310_v58, %v1293_v25 }
0x2206   :  { %1314 = vrot.lane.b32.xlu2 %v1312_v60, %s2432_s2  ;;  %v1585_v60 = vadd.f32 %v2782_v48, %v2707_v1 }
0x2246   :  { %v1321_v12 = vpop.permute.xlu0 %1320 }
0x2247   :  { %2130 = vmatmul.msk.bf16.vlgmr.msrb.gmra.mxu1 %vm147_vm5, %v1321_v12 }
0x2248   :  { %1657 = vmatpush.bf16.msrb.mxu1 %v2653_v11 }
0x224c   :  { %1658 = vmatpush.bf16.msrb.mxu1 %v2656_v13 }
0x2257   :  { %2151 = vmatmul.msk.bf16.vlgmr.msra.gmra.mxu1 %vm147_vm5, %v2687_v56 }
0x2258   :  { %1809 = vmatpush.bf16.msra.mxu1 %v2653_v11 }
0x225b   :  { %v1490_v55 = vpop.permute.xlu1 %1489 }
0x225c   :  { %v1492_v39 = vmul.f32 %v1490_v55, %v1469_v36  ;;  %1810 = vmatpush.bf16.msra.mxu1 %v2656_v13 }
0x225e   :  { %1494 = vrot.lane.b32.xlu1 %v1492_v39, %s2432_s2 }
0x2260   :  { %v1315_v40 = vpop.permute.xlu2 %1314 }
0x2261   :  { %v2803_v63 = vadd.f32 %v2294_v61, %v1315_v40 }
0x2263   :  { %v1318_v3 = vpack.c.bf16 %v2803_v63, %v2803_v63 }
0x2265   :  { %1339 = vrot.lane.b32.xlu2 %v1318_v3, %s2424_s20 }
0x2267   :  { %2157 = vmatmul.msk.bf16.vlgmr.msrb.gmra.mxu1 %vm147_vm5, %v2717_v10 }
0x2268   :  { %1967 = vmatpush.bf16.msrb.mxu1 %v2653_v11 }
0x226c   :  { %1968 = vmatpush.bf16.msrb.mxu1 %v2656_v13 }
0x2277   :  { %2163 = vmatmul.msk.bf16.vlgmr.msra.gmra.mxu1 %vm147_vm5, %v2759_v38 }
0x22bf   :  { %v1340_v56 = vpop.permute.xlu2 %1339 }
0x22c0   :  { %2131 = vmatmul.msk.bf16.vlgmr.msrb.gmra.mxu3 %vm147_vm5, %v1340_v56  ;;  %2166 = vmatmul.msk.bf16.vlgmr.msrb.gmra.mxu0 %vm147_vm5, %v1340_v56 }
0x22c1   :  { %1676 = vmatpush.bf16.msrb.mxu3 %v2750_v32 }
0x22c4   :  { %v2817_v4 = vpop.f32.mrf.mxu1 }
0x22c5   :  { %1677 = vmatpush.bf16.msrb.mxu3 %v2754_v33 }
0x22cc   :  { %v1336_v59 = vpop.f32.mrf.mxu1 }
0x22d0   :  { %v1495_v10 = vpop.permute.xlu1 %1494 }
0x22d1   :  { %v1497_v6 = vadd.f32 %v2296_v52, %v1495_v10 }
0x22d3   :  { %v1498_v11 = vpack.c.bf16 %v1497_v6, %v1497_v6 }
0x22d4   :  { %v1508_v9 = vpop.f32.mrf.mxu1 }
0x22d5   :  { %1513 = vrot.lane.b32.xlu1 %v1498_v11, %s2424_s20  ;;  %v1509_v25 = vadd.f32 %v2782_v48, %v1508_v9 }
0x22dc   :  { %v1510_v13 = vpop.f32.mrf.mxu1 }
0x22e4   :  { %v2821_v38 = vpop.f32.mrf.mxu1 }
0x22ec   :  { %v1662_v62 = vpop.f32.mrf.mxu1 }
0x22f4   :  { %v2823_v14 = vpop.f32.mrf.mxu1 }
0x22fc   :  { %v1814_v16 = vpop.f32.mrf.mxu1 }
0x233d   :  { %v2825_v19 = vpop.f32.mrf.mxu0 }
0x2343   :  { %v2827_v21 = vpop.f32.mrf.mxu3 }
0x2345   :  { %v1890_v22 = vpop.f32.mrf.mxu0 }
0x2347   :  { %v1514_v20 = vpop.permute.xlu1 %1513 }
0x2348   :  { %2152 = vmatmul.msk.bf16.vlgmr.msra.gmra.mxu3 %vm147_vm5, %v1514_v20 }
0x2349   :  { %1828 = vmatpush.bf16.msra.mxu3 %v2750_v32 }
0x234b   :  { %v1355_v17 = vpop.f32.mrf.mxu3 }
0x234d   :  { %1829 = vmatpush.bf16.msra.mxu3 %v2754_v33 }
0x23cb   :  { %v1527_v15 = vpop.f32.mrf.mxu3 }
0x23cc   :  { %v1551_v2 = vadd.f32 %v1527_v15, %v2776_v57  ;;  %v1531_v50 = vadd.f32 %v1527_v15, %v1509_v25 }
0x23ce   :  { %1553 = vrot.lane.b32.xlu2 %v1551_v2, %s2424_s20  ;;  %v2153_v26 = vmul.f32 -1.442695, %v1531_v50 }
0x23d0   :  { %2297 = vpow2.f32 %v2153_v26 }
0x23d3   :  { %v1529_v24 = vpop.f32.mrf.mxu3 }
0x23d6   :  { %v2298_v0 = vpop.eup %2297 }
0x23d7   :  { %v1535_v27 = vadd.f32 1.0, %v2298_v0 }
0x23d9   :  { %2299 = vrcp.f32 %v1535_v27  ;;  %v1547_v7 = vand.u32 2147483648, %v1535_v27  ;;  %vm1541_vm7 = vweird.f32 %v1535_v27  ;;  %v1545_v34 = vand.u32 2147483647, %v1535_v27 }
0x23db   :  { %v1548_v35 = vor.u32 1.1754944e-38, %v1547_v7  ;;  %vm1546_vm9 = vcmp.eq.f32.partialorder %v1545_v34, 8.507059e+37 }
0x23df   :  { %v2300_v28 = vpop.eup %2299 }
0x23e0   :  { %v1537_v29 = vmul.f32 %v2300_v28, %v1535_v27  ;;  %vm1542_vm6 = vweird.f32 %v2300_v28 }
0x23e1   :  { %vm1543_vm8 = vmor %vm1541_vm7, %vm1542_vm6 }
0x23e2   :  { %v1538_v30 = vsub.f32 1.0, %v1537_v29 }
0x23e4   :  { %v1539_v23 = vmul.f32 %v2300_v28, %v1538_v30 }
0x23e6   :  { %v1540_v54 = vadd.f32 %v2300_v28, %v1539_v23  ;;  %v1661_v23 = vadd.f32 %v2782_v48, %v2821_v38 }
0x23e8   :  { %v1544_v18 = vsel %vm1543_vm8, %v2300_v28, %v1540_v54 }
0x23e9   :  { %v1549_v36 = vsel %vm1546_vm9, %v1548_v35, %v1544_v18 }
0x2428   :  { %v1554_v37 = vpop.permute.xlu2 %1553 }
0x2429   :  { %v1556_v41 = vmul.f32 %v1554_v37, %v1549_v36 }
0x242b   :  { %1558 = vrot.lane.b32.xlu0 %v1556_v41, %s2424_s20 }
0x249d   :  { %v1559_v46 = vpop.permute.xlu0 %1558 }
0x249e   :  { %v1561_v42 = vadd.f32 %v1559_v46, %v1509_v25 }
0x24a0   :  { %2301 = vtanh.f32 %v1561_v42 }
0x24a6   :  { %v2302_v43 = vpop.eup %2301 }
0x24a7   :  { %v1563_v61 = vsub.f32 %v1497_v6, %v2302_v43 }
0x24a9   :  { %1565 = vrot.lane.b32.xlu1 %v1563_v61, %s2431_s0 }
0x251b   :  { %v1566_v44 = vpop.permute.xlu1 %1565 }
0x251c   :  { %v1568_v45 = vmul.f32 %v1566_v44, %v1549_v36 }
0x251e   :  { %1570 = vrot.lane.b32.xlu2 %v1568_v45, %s2432_s2 }
0x2578   :  { %v1571_v47 = vpop.permute.xlu2 %1570 }
0x2579   :  { %v1573_v49 = vadd.f32 %v2302_v43, %v1571_v47 }
0x257b   :  { %v1574_v51 = vpack.c.bf16 %v1573_v49, %v1573_v49 }
0x257d   :  { %1589 = vrot.lane.b32.xlu0 %v1574_v51, %s2424_s20 }
0x25ef   :  { %v1590_v53 = vpop.permute.xlu0 %1589 }
0x25f0   :  { %2155 = vmatmul.msk.bf16.vlgmr.msrb.gmra.mxu2 %vm147_vm5, %v1590_v53 }
0x25f1   :  { %1904 = vmatpush.bf16.msrb.mxu2 %v2750_v32 }
0x25f5   :  { %1905 = vmatpush.bf16.msrb.mxu2 %v2754_v33 }
0x2673   :  { %v1603_v52 = vpop.f32.mrf.mxu2 }
0x2674   :  { %v1627_v5 = vadd.f32 %v1603_v52, %v2776_v57  ;;  %v1607_v12 = vadd.f32 %v1603_v52, %v1585_v60 }
0x2676   :  { %1629 = vrot.lane.b32.xlu1 %v1627_v5, %s2424_s20  ;;  %v2156_v55 = vmul.f32 -1.442695, %v1607_v12 }
0x2678   :  { %2303 = vpow2.f32 %v2156_v55 }
0x267b   :  { %v1605_v58 = vpop.f32.mrf.mxu2 }
0x267e   :  { %v2304_v39 = vpop.eup %2303 }
0x267f   :  { %v1611_v40 = vadd.f32 1.0, %v2304_v39 }
0x2681   :  { %2305 = vrcp.f32 %v1611_v40  ;;  %v1623_v11 = vand.u32 2147483648, %v1611_v40  ;;  %vm1617_vm11 = vweird.f32 %v1611_v40  ;;  %v1621_v9 = vand.u32 2147483647, %v1611_v40 }
0x2683   :  { %v1624_v62 = vor.u32 1.1754944e-38, %v1623_v11  ;;  %vm1622_vm13 = vcmp.eq.f32.partialorder %v1621_v9, 8.507059e+37 }
0x2687   :  { %v2306_v3 = vpop.eup %2305 }
0x2688   :  { %v1613_v56 = vmul.f32 %v2306_v3, %v1611_v40  ;;  %vm1618_vm10 = vweird.f32 %v2306_v3 }
0x2689   :  { %vm1619_vm12 = vmor %vm1617_vm11, %vm1618_vm10 }
0x268a   :  { %v1614_v59 = vsub.f32 1.0, %v1613_v56 }
0x268c   :  { %v1615_v10 = vmul.f32 %v2306_v3, %v1614_v59 }
0x268e   :  { %v1616_v6 = vadd.f32 %v2306_v3, %v1615_v10 }
0x2690   :  { %v1620_v13 = vsel %vm1619_vm12, %v2306_v3, %v1616_v6  ;;  %v1737_v3 = vadd.f32 %v2782_v48, %v2731_v31 }
0x2691   :  { %v1625_v16 = vsel %vm1622_vm13, %v1624_v62, %v1620_v13 }
0x26e8   :  { %v1630_v1 = vpop.permute.xlu1 %1629 }
0x26e9   :  { %v1632_v22 = vmul.f32 %v1630_v1, %v1625_v16 }
0x26eb   :  { %1634 = vrot.lane.b32.xlu2 %v1632_v22, %s2424_s20 }
0x2745   :  { %v1635_v20 = vpop.permute.xlu2 %1634 }
0x2746   :  { %v1637_v17 = vadd.f32 %v1635_v20, %v1585_v60 }
0x2748   :  { %2307 = vtanh.f32 %v1637_v17 }
0x274e   :  { %v2308_v15 = vpop.eup %2307 }
0x274f   :  { %v1639_v2 = vsub.f32 %v1573_v49, %v2308_v15 }
0x2751   :  { %1641 = vrot.lane.b32.xlu0 %v1639_v2, %s2431_s0 }
0x27c3   :  { %v1642_v24 = vpop.permute.xlu0 %1641 }
0x27c4   :  { %v1644_v25 = vmul.f32 %v1642_v24, %v1625_v16 }
0x27c6   :  { %1646 = vrot.lane.b32.xlu1 %v1644_v25, %s2432_s2 }
0x2838   :  { %v1647_v50 = vpop.permute.xlu1 %1646 }
0x2839   :  { %v1649_v26 = vadd.f32 %v2308_v15, %v1647_v50 }
0x283b   :  { %v1650_v0 = vpack.c.bf16 %v1649_v26, %v1649_v26 }
0x283d   :  { %1665 = vrot.lane.b32.xlu2 %v1650_v0, %s2424_s20 }
0x2897   :  { %v1666_v27 = vpop.permute.xlu2 %1665 }
0x2898   :  { %2158 = vmatmul.msk.bf16.vlgmr.msrb.gmra.mxu3 %vm147_vm5, %v1666_v27 }
0x2899   :  { %1986 = vmatpush.bf16.msrb.mxu3 %v2750_v32 }
0x289d   :  { %1987 = vmatpush.bf16.msrb.mxu3 %v2754_v33 }
0x291b   :  { %v1679_v28 = vpop.f32.mrf.mxu3 }
0x291c   :  { %v1703_v29 = vadd.f32 %v1679_v28, %v2776_v57  ;;  %v1683_v54 = vadd.f32 %v1679_v28, %v1661_v23 }
0x291e   :  { %1705 = vrot.lane.b32.xlu0 %v1703_v29, %s2424_s20  ;;  %v2159_v7 = vmul.f32 -1.442695, %v1683_v54 }
0x2920   :  { %2309 = vpow2.f32 %v2159_v7 }
0x2923   :  { %v1681_v30 = vpop.f32.mrf.mxu3 }
0x2926   :  { %v2310_v34 = vpop.eup %2309 }
0x2927   :  { %v1687_v18 = vadd.f32 1.0, %v2310_v34 }
0x2929   :  { %2311 = vrcp.f32 %v1687_v18  ;;  %v1699_v41 = vand.u32 2147483648, %v1687_v18  ;;  %vm1693_vm15 = vweird.f32 %v1687_v18  ;;  %v1697_v46 = vand.u32 2147483647, %v1687_v18 }
0x292b   :  { %v1700_v43 = vor.u32 1.1754944e-38, %v1699_v41  ;;  %vm1698_vm1 = vcmp.eq.f32.partialorder %v1697_v46, 8.507059e+37 }
0x292f   :  { %v2312_v35 = vpop.eup %2311 }
0x2930   :  { %v1689_v37 = vmul.f32 %v2312_v35, %v1687_v18  ;;  %vm1694_vm14 = vweird.f32 %v2312_v35  ;;  %v1813_v18 = vadd.f32 %v2782_v48, %v2823_v14 }
0x2931   :  { %vm1695_vm0 = vmor %vm1693_vm15, %vm1694_vm14 }
0x2932   :  { %v1690_v32 = vsub.f32 1.0, %v1689_v37 }
0x2934   :  { %v1691_v36 = vmul.f32 %v2312_v35, %v1690_v32 }
0x2936   :  { %v1692_v33 = vadd.f32 %v2312_v35, %v1691_v36 }
0x2938   :  { %v1696_v42 = vsel %vm1695_vm0, %v2312_v35, %v1692_v33 }
0x2939   :  { %v1701_v61 = vsel %vm1698_vm1, %v1700_v43, %v1696_v42 }
0x2990   :  { %v1706_v38 = vpop.permute.xlu0 %1705 }
0x2991   :  { %v1708_v44 = vmul.f32 %v1706_v38, %v1701_v61 }
0x2993   :  { %1710 = vrot.lane.b32.xlu1 %v1708_v44, %s2424_s20 }
0x2a05   :  { %v1711_v45 = vpop.permute.xlu1 %1710 }
0x2a06   :  { %v1713_v47 = vadd.f32 %v1711_v45, %v1661_v23 }
0x2a08   :  { %2313 = vtanh.f32 %v1713_v47 }
0x2a0e   :  { %v2314_v49 = vpop.eup %2313 }
0x2a0f   :  { %v1715_v51 = vsub.f32 %v1649_v26, %v2314_v49 }
0x2a11   :  { %1717 = vrot.lane.b32.xlu2 %v1715_v51, %s2431_s0 }
0x2a6b   :  { %v1718_v53 = vpop.permute.xlu2 %1717 }
0x2a6c   :  { %v1720_v52 = vmul.f32 %v1718_v53, %v1701_v61 }
0x2a6e   :  { %1722 = vrot.lane.b32.xlu0 %v1720_v52, %s2432_s2 }
0x2ae0   :  { %v1723_v5 = vpop.permute.xlu0 %1722 }
0x2ae1   :  { %v1725_v58 = vadd.f32 %v2314_v49, %v1723_v5 }
0x2ae3   :  { %v1726_v60 = vpack.c.bf16 %v1725_v58, %v1725_v58 }
0x2ae5   :  { %1741 = vrot.lane.b32.xlu1 %v1726_v60, %s2424_s20 }
0x2b57   :  { %v1742_v12 = vpop.permute.xlu1 %1741 }
0x2b58   :  { %2161 = vmatmul.msk.bf16.vlgmr.msra.gmra.mxu2 %vm147_vm5, %v1742_v12  ;;  %v1377_v12 = vadd.f32 %v2827_v21, %v2630_v8 }
0x2bdb   :  { %v1755_v55 = vpop.f32.mrf.mxu2 }
0x2bdc   :  { %v1779_v39 = vadd.f32 %v1755_v55, %v2776_v57  ;;  %v1759_v56 = vadd.f32 %v1755_v55, %v1737_v3 }
0x2bde   :  { %1781 = vrot.lane.b32.xlu2 %v1779_v39, %s2424_s20  ;;  %v2162_v59 = vmul.f32 -1.442695, %v1759_v56  ;;  %v2346_v56 = vld [vmem:[#allocation6 + $0x1] ss:$0 sm:$0xff] }
0x2be0   :  { %2315 = vpow2.f32 %v2162_v59  ;;  %v1335_v59 = vadd.f32 %v2346_v56, %v2817_v4 }
0x2be3   :  { %v1757_v40 = vpop.f32.mrf.mxu2 }
0x2be6   :  { %v2316_v10 = vpop.eup %2315 }
0x2be7   :  { %v1763_v6 = vadd.f32 1.0, %v2316_v10  ;;  %v1357_v10 = vadd.f32 %v2827_v21, %v1335_v59 }
0x2be9   :  { %2317 = vrcp.f32 %v1763_v6  ;;  %v1775_v16 = vand.u32 2147483648, %v1763_v6  ;;  %vm1769_vm3 = vweird.f32 %v1763_v6  ;;  %v1773_v22 = vand.u32 2147483647, %v1763_v6 }
0x2beb   :  { %v1776_v17 = vor.u32 1.1754944e-38, %v1775_v16  ;;  %vm1774_vm6 = vcmp.eq.f32.partialorder %v1773_v22, 8.507059e+37 }
0x2bef   :  { %v2318_v11 = vpop.eup %2317 }
0x2bf0   :  { %v1765_v9 = vmul.f32 %v2318_v11, %v1763_v6  ;;  %vm1770_vm2 = vweird.f32 %v2318_v11  ;;  %v2132_v6 = vmul.f32 -1.442695, %v1357_v10 }
0x2bf1   :  { %vm1771_vm4 = vmor %vm1769_vm3, %vm1770_vm2 }
0x2bf2   :  { %v1766_v13 = vsub.f32 1.0, %v1765_v9 }
0x2bf4   :  { %v1767_v62 = vmul.f32 %v2318_v11, %v1766_v13 }
0x2bf6   :  { %v1768_v1 = vadd.f32 %v2318_v11, %v1767_v62 }
0x2bf8   :  { %v1772_v20 = vsel %vm1771_vm4, %v2318_v11, %v1768_v1 }
0x2bf9   :  { %v1777_v15 = vsel %vm1774_vm6, %v1776_v17, %v1772_v20 }
0x2c38   :  { %v1782_v31 = vpop.permute.xlu2 %1781 }
0x2c39   :  { %v1784_v2 = vmul.f32 %v1782_v31, %v1777_v15 }
0x2c3b   :  { %1786 = vrot.lane.b32.xlu0 %v1784_v2, %s2424_s20 }
0x2cad   :  { %v1787_v24 = vpop.permute.xlu0 %1786 }
0x2cae   :  { %v1789_v25 = vadd.f32 %v1787_v24, %v1737_v3 }
0x2cb0   :  { %2319 = vtanh.f32 %v1789_v25 }
0x2cb6   :  { %v2320_v50 = vpop.eup %2319 }
0x2cb7   :  { %v1791_v26 = vsub.f32 %v1725_v58, %v2320_v50 }
0x2cb9   :  { %1793 = vrot.lane.b32.xlu1 %v1791_v26, %s2431_s0 }
0x2d2b   :  { %v1794_v0 = vpop.permute.xlu1 %1793 }
0x2d2c   :  { %v1796_v27 = vmul.f32 %v1794_v0, %v1777_v15 }
0x2d2e   :  { %1798 = vrot.lane.b32.xlu2 %v1796_v27, %s2432_s2 }
0x2d88   :  { %v1799_v28 = vpop.permute.xlu2 %1798 }
0x2d89   :  { %v1801_v29 = vadd.f32 %v2320_v50, %v1799_v28  ;;  %v1889_v50 = vadd.f32 %v2782_v48, %v2825_v19 }
0x2d8b   :  { %v1802_v30 = vpack.c.bf16 %v1801_v29, %v1801_v29 }
0x2d8d   :  { %1817 = vrot.lane.b32.xlu0 %v1802_v30, %s2424_s20 }
0x2dff   :  { %v1818_v23 = vpop.permute.xlu0 %1817 }
0x2e00   :  { %2164 = vmatmul.msk.bf16.vlgmr.msra.gmra.mxu3 %vm147_vm5, %v1818_v23 }
0x2e83   :  { %v1831_v54 = vpop.f32.mrf.mxu3 }
0x2e84   :  { %v1855_v7 = vadd.f32 %v1831_v54, %v2776_v57  ;;  %v1835_v35 = vadd.f32 %v1831_v54, %v1813_v18 }
0x2e86   :  { %1857 = vrot.lane.b32.xlu1 %v1855_v7, %s2424_s20  ;;  %v2165_v37 = vmul.f32 -1.442695, %v1835_v35 }
0x2e88   :  { %2321 = vpow2.f32 %v2165_v37 }
0x2e8b   :  { %v1833_v34 = vpop.f32.mrf.mxu3 }
0x2e8e   :  { %v2322_v32 = vpop.eup %2321 }
0x2e8f   :  { %v1839_v36 = vadd.f32 1.0, %v2322_v32 }
0x2e91   :  { %2323 = vrcp.f32 %v1839_v36  ;;  %v1851_v38 = vand.u32 2147483648, %v1839_v36  ;;  %vm1845_vm8 = vweird.f32 %v1839_v36  ;;  %v1849_v61 = vand.u32 2147483647, %v1839_v36 }
0x2e93   :  { %v1852_v45 = vor.u32 1.1754944e-38, %v1851_v38  ;;  %vm1850_vm10 = vcmp.eq.f32.partialorder %v1849_v61, 8.507059e+37 }
0x2e97   :  { %v2324_v33 = vpop.eup %2323 }
0x2e98   :  { %v1841_v41 = vmul.f32 %v2324_v33, %v1839_v36  ;;  %vm1846_vm7 = vweird.f32 %v2324_v33 }
0x2e99   :  { %vm1847_vm9 = vmor %vm1845_vm8, %vm1846_vm7  ;;  %vm2045_vm7 = vcmask 254976   ;;  %vm2051_vm8 = vcmask 1024  }
0x2e9a   :  { %v1842_v46 = vsub.f32 1.0, %v1841_v41 }
0x2e9c   :  { %v1843_v42 = vmul.f32 %v2324_v33, %v1842_v46 }
0x2e9e   :  { %v1844_v43 = vadd.f32 %v2324_v33, %v1843_v42 }
0x2ea0   :  { %v1848_v44 = vsel %vm1847_vm9, %v2324_v33, %v1844_v43 }
0x2ea1   :  { %v1853_v47 = vsel %vm1850_vm10, %v1852_v45, %v1848_v44 }
0x2ef8   :  { %v1858_v14 = vpop.permute.xlu1 %1857 }
0x2ef9   :  { %v1860_v49 = vmul.f32 %v1858_v14, %v1853_v47 }
0x2efb   :  { %1862 = vrot.lane.b32.xlu2 %v1860_v49, %s2424_s20 }
0x2f55   :  { %v1863_v51 = vpop.permute.xlu2 %1862 }
0x2f56   :  { %v1865_v53 = vadd.f32 %v1863_v51, %v1813_v18 }
0x2f58   :  { %2325 = vtanh.f32 %v1865_v53 }
0x2f59   :  { %2327 = vpow2.f32 %v2132_v6 }
0x2f5e   :  { %v2326_v52 = vpop.eup %2325 }
0x2f5f   :  { %v1867_v5 = vsub.f32 %v1801_v29, %v2326_v52  ;;  %v2328_v8 = vpop.eup %2327 }
0x2f60   :  { %v1361_v11 = vadd.f32 1.0, %v2328_v8 }
0x2f61   :  { %1869 = vrot.lane.b32.xlu0 %v1867_v5, %s2431_s0 }
0x2f62   :  { %2329 = vrcp.f32 %v1361_v11  ;;  %v1373_v17 = vand.u32 2147483648, %v1361_v11  ;;  %vm1367_vm12 = vweird.f32 %v1361_v11  ;;  %v1371_v31 = vand.u32 2147483647, %v1361_v11 }
0x2f64   :  { %v1374_v21 = vor.u32 1.1754944e-38, %v1373_v17  ;;  %vm1372_vm14 = vcmp.eq.f32.partialorder %v1371_v31, 8.507059e+37 }
0x2f68   :  { %v2330_v9 = vpop.eup %2329 }
0x2f69   :  { %v1363_v13 = vmul.f32 %v2330_v9, %v1361_v11  ;;  %vm1368_vm11 = vweird.f32 %v2330_v9 }
0x2f6a   :  { %vm1369_vm13 = vmor %vm1367_vm12, %vm1368_vm11 }
0x2f6b   :  { %v1364_v62 = vsub.f32 1.0, %v1363_v13 }
0x2f6d   :  { %v1365_v1 = vmul.f32 %v2330_v9, %v1364_v62 }
0x2f6f   :  { %v1366_v22 = vadd.f32 %v2330_v9, %v1365_v1 }
0x2f71   :  { %v1370_v4 = vsel %vm1369_vm13, %v2330_v9, %v1366_v22 }
0x2f72   :  { %v1375_v2 = vsel %vm1372_vm14, %v1374_v21, %v1370_v4 }
0x2fd3   :  { %v1870_v58 = vpop.permute.xlu0 %1869 }
0x2fd4   :  { %v1872_v60 = vmul.f32 %v1870_v58, %v1853_v47 }
0x2fd6   :  { %1874 = vrot.lane.b32.xlu1 %v1872_v60, %s2432_s2 }
0x2fde   :  { %1379 = vrot.lane.b32.xlu1 %v1377_v12, %s2424_s20 }
0x3048   :  { %v1875_v55 = vpop.permute.xlu1 %1874 }
0x3049   :  { %v2881_v39 = vadd.f32 %v2326_v52, %v1875_v55 }
0x304b   :  { %v1878_v40 = vpack.c.bf16 %v2881_v39, %v2881_v39 }
0x304d   :  { %1893 = vrot.lane.b32.xlu2 %v1878_v40, %s2424_s20 }
0x3050   :  { %v1380_v15 = vpop.permute.xlu1 %1379 }
0x3051   :  { %v1382_v25 = vmul.f32 %v1380_v15, %v1375_v2 }
0x30a7   :  { %v1894_v3 = vpop.permute.xlu2 %1893 }
0x30a8   :  { %2167 = vmatmul.msk.bf16.vlgmr.msrb.gmra.mxu2 %vm147_vm5, %v1894_v3 }
0x312b   :  { %v1907_v16 = vpop.f32.mrf.mxu2 }
0x312c   :  { %v1931_v20 = vadd.f32 %v1907_v16, %v2776_v57  ;;  %v1911_v26 = vadd.f32 %v1907_v16, %v1889_v50 }
0x312e   :  { %1933 = vrot.lane.b32.xlu0 %v1931_v20, %s2424_s20  ;;  %v2168_v0 = vmul.f32 -1.442695, %v1911_v26 }
0x3130   :  { %2331 = vpow2.f32 %v2168_v0 }
0x3133   :  { %v1909_v24 = vpop.f32.mrf.mxu2 }
0x3136   :  { %1384 = vrot.lane.b32.xlu0 %v1382_v25, %s2424_s20  ;;  %v2332_v27 = vpop.eup %2331  ;;  %v2199_v25 = vld [vmem:[#allocation6 + $0x6] ss:$0 sm:$0xff] }
0x3137   :  { %v1915_v28 = vadd.f32 1.0, %v2332_v27 }
0x3139   :  { %2333 = vrcp.f32 %v1915_v28  ;;  %v1927_v34 = vand.u32 2147483648, %v1915_v28  ;;  %vm1921_vm0 = vweird.f32 %v1915_v28  ;;  %v1925_v18 = vand.u32 2147483647, %v1915_v28 }
0x313b   :  { %v1928_v37 = vor.u32 1.1754944e-38, %v1927_v34  ;;  %vm1926_vm2 = vcmp.eq.f32.partialorder %v1925_v18, 8.507059e+37 }
0x313f   :  { %v2334_v29 = vpop.eup %2333 }
0x3140   :  { %v1917_v30 = vmul.f32 %v2334_v29, %v1915_v28  ;;  %vm1922_vm15 = vweird.f32 %v2334_v29 }
0x3141   :  { %vm1923_vm1 = vmor %vm1921_vm0, %vm1922_vm15 }
0x3142   :  { %v1918_v23 = vsub.f32 1.0, %v1917_v30 }
0x3144   :  { %v1919_v54 = vmul.f32 %v2334_v29, %v1918_v23 }
0x3146   :  { %v1920_v7 = vadd.f32 %v2334_v29, %v1919_v54  ;;  %v2200_v54 = vld [vmem:[#allocation6 + $0x7] ss:$0 sm:$0xff] }
0x3148   :  { %v1924_v35 = vsel %vm1923_vm1, %v2334_v29, %v1920_v7 }
0x3149   :  { %v1929_v32 = vsel %vm1926_vm2, %v1928_v37, %v1924_v35 }
0x31a0   :  { %v1934_v19 = vpop.permute.xlu0 %1933 }
0x31a1   :  { %v1936_v36 = vmul.f32 %v1934_v19, %v1929_v32 }
0x31a3   :  { %1938 = vrot.lane.b32.xlu2 %v1936_v36, %s2424_s20 }
0x31a8   :  { %v1385_v33 = vpop.permute.xlu0 %1384 }
0x31a9   :  { %v1387_v41 = vadd.f32 %v1385_v33, %v1335_v59 }
0x31ab   :  { %2335 = vtanh.f32 %v1387_v41 }
0x31b1   :  { %v2336_v46 = vpop.eup %2335 }
0x31b2   :  { %v1389_v42 = vsub.f32 %v2803_v63, %v2336_v46 }
0x31b4   :  { %1391 = vrot.lane.b32.xlu2 %v1389_v42, %s2431_s0 }
0x31fd   :  { %v1939_v43 = vpop.permute.xlu2 %1938 }
0x31fe   :  { %v1941_v38 = vadd.f32 %v1939_v43, %v1889_v50 }
0x3200   :  { %2337 = vtanh.f32 %v1941_v38 }
0x3206   :  { %v2338_v61 = vpop.eup %2337 }
0x3207   :  { %v1943_v44 = vsub.f32 %v2881_v39, %v2338_v61 }
0x3209   :  { %1945 = vrot.lane.b32.xlu1 %v1943_v44, %s2431_s0 }
0x320e   :  { %v1392_v45 = vpop.permute.xlu2 %1391 }
0x320f   :  { %v1394_v14 = vmul.f32 %v1392_v45, %v1375_v2 }
0x3211   :  { %1396 = vrot.lane.b32.xlu1 %v1394_v14, %s2432_s2 }
0x327b   :  { %v1946_v47 = vpop.permute.xlu1 %1945 }
0x327c   :  { %v1948_v49 = vmul.f32 %v1946_v47, %v1929_v32 }
0x327e   :  { %1950 = vrot.lane.b32.xlu0 %v1948_v49, %s2432_s2 }
0x3283   :  { %v1397_v51 = vpop.permute.xlu1 %1396 }
0x3284   :  { %v1399_v63 = vadd.f32 %v2336_v46, %v1397_v51 }
0x3286   :  { %v1400_v53 = vpack.c.bf16 %v1399_v63, %v1399_v63 }
0x3288   :  { %1956 = vrot.lane.b32.xlu0 %v1400_v53, %s2424_s20 }
0x32f0   :  { %v1951_v52 = vpop.permute.xlu0 %1950 }
0x32f1   :  { %v1953_v5 = vadd.f32 %v2338_v61, %v1951_v52 }
0x32f3   :  { %v1954_v58 = vpack.c.bf16 %v1953_v5, %v1953_v5 }
0x32f5   :  { %1975 = vrot.lane.b32.xlu2 %v1954_v58, %s2424_s20 }
0x32fa   :  { %v1957_v60 = vpop.permute.xlu0 %1956 }
0x32fb   :  { %2169 = vmatmul.msk.bf16.vlgmr.msrb.gmra.mxu1 %vm147_vm5, %v1957_v60 }
0x334f   :  { %v1976_v12 = vpop.permute.xlu2 %1975 }
0x3350   :  { %2170 = vmatmul.msk.bf16.vlgmr.msrb.gmra.mxu3 %vm147_vm5, %v1976_v12 }
0x3378   :  { %v1970_v55 = vpop.f32.mrf.mxu1 }
0x3379   :  { %v1971_v59 = vadd.f32 %v2782_v48, %v1970_v55 }
0x3380   :  { %v1972_v39 = vpop.f32.mrf.mxu1 }
0x33d3   :  { %v1989_v40 = vpop.f32.mrf.mxu3 }
0x33d4   :  { %v2013_v3 = vadd.f32 %v1989_v40, %v2776_v57  ;;  %v1993_v10 = vadd.f32 %v1989_v40, %v1971_v59 }
0x33d6   :  { %2015 = vrot.lane.b32.xlu1 %v2013_v3, %s2424_s20  ;;  %v2171_v6 = vmul.f32 -1.442695, %v1993_v10 }
0x33d8   :  { %2339 = vpow2.f32 %v2171_v6 }
0x33db   :  { %v1991_v56 = vpop.f32.mrf.mxu3 }
0x33de   :  { %v2340_v8 = vpop.eup %2339 }
0x33df   :  { %v1997_v11 = vadd.f32 1.0, %v2340_v8 }
0x33e1   :  { %2341 = vrcp.f32 %v1997_v11  ;;  %v2009_v22 = vand.u32 2147483648, %v1997_v11  ;;  %vm2003_vm3 = vweird.f32 %v1997_v11  ;;  %v2007_v57 = vand.u32 2147483647, %v1997_v11 }
0x33e3   :  { %v2010_v17 = vor.u32 1.1754944e-38, %v2009_v22  ;;  %vm2008_vm6 = vcmp.eq.f32.partialorder %v2007_v57, 8.507059e+37 }
0x33e7   :  { %v2342_v9 = vpop.eup %2341 }
0x33e8   :  { %v1999_v13 = vmul.f32 %v2342_v9, %v1997_v11  ;;  %vm2004_vm5 = vweird.f32 %v2342_v9 }
0x33e9   :  { %vm2005_vm4 = vmor %vm2003_vm3, %vm2004_vm5 }
0x33ea   :  { %v2000_v62 = vsub.f32 1.0, %v1999_v13 }
0x33ec   :  { %v2001_v1 = vmul.f32 %v2342_v9, %v2000_v62 }
0x33ee   :  { %v2002_v16 = vadd.f32 %v2342_v9, %v2001_v1 }
0x33f0   :  { %v2006_v20 = vsel %vm2005_vm4, %v2342_v9, %v2002_v16 }
0x33f1   :  { %v2011_v31 = vsel %vm2008_vm6, %v2010_v17, %v2006_v20 }
0x3448   :  { %v2016_v48 = vpop.permute.xlu1 %2015 }
0x3449   :  { %v2018_v4 = vmul.f32 %v2016_v48, %v2011_v31 }
0x344b   :  { %2020 = vrot.lane.b32.xlu2 %v2018_v4, %s2424_s20 }
0x3453   :  { %2037 = vrot.lane.b32.xlu2 %v2199_v25, %s2424_s20 }
0x34a5   :  { %v2021_v21 = vpop.permute.xlu2 %2020 }
0x34a6   :  { %v2023_v15 = vadd.f32 %v2021_v21, %v1971_v59 }
0x34a8   :  { %2343 = vtanh.f32 %v2023_v15 }
0x34ad   :  { %v2038_v27 = vpop.permute.xlu2 %2037 }
0x34ae   :  { %v2344_v2 = vpop.eup %2343 }
0x34af   :  { %v2025_v24 = vsub.f32 %v1953_v5, %v2344_v2 }
0x34b1   :  { %2027 = vrot.lane.b32.xlu0 %v2025_v24, %s2431_s0 }
0x3523   :  { %v2028_v50 = vpop.permute.xlu0 %2027 }
0x3524   :  { %v2030_v26 = vmul.f32 %v2028_v50, %v2011_v31 }
0x3526   :  { %2032 = vrot.lane.b32.xlu1 %v2030_v26, %s2432_s2 }
0x3598   :  { %v2033_v0 = vpop.permute.xlu1 %2032 }
0x3599   :  { %v2035_v28 = vadd.f32 %v2344_v2, %v2033_v0 }
0x359b   :  { %v2040_v29 = vmul.f32 %v2038_v27, %v2035_v28 }
0x359d   :  { %2042 = vrot.lane.b32.xlu0 %v2040_v29, %s2424_s20 }
0x360f   :  { %v2043_v30 = vpop.permute.xlu0 %2042 }
0x3610   :  { %v2046_v23 = vsel %vm2045_vm7, %v2043_v30, 0.0 }
0x3611   :  { %2047 = vadd.xlane.f32.xlu1 %v2046_v23 }
0x3684   :  { %v2048_v7 = vpop.xlane.xlu1 %2047 }
0x3685   :  { %v2050_v34 = vadd.f32 %v2200_v54, %v2048_v7 }
0x3687   :  { %2052 = vst.msk [vmem:[%s2919_s3] sm:$0x3] %vm2051_vm8, %v2050_v34 }
0x3688   :  { %2057 = vsyncpa [#allocation3], 1 }
0x3689   :  { %2058 = vsyncpa [#allocation5], 1 }

</bundles_post_ra>
